<compile_context>
chip_gen: v5e
topology: v5e:2x2
jax: 0.10.0
libtpu: 0.0.40
codegen_flags: <defaults>
</compile_context>

<pallas_src>
import jax
import jax.numpy as jnp
from jax.experimental import pallas as pl
from jax.experimental.pallas import tpu as pltpu  # noqa: F401  (TPU backend import)

NEG_INF = -1e30


def _cell_from_gates(gates, c_prev, H):
    """LSTM cell update given pre-activation gates (B, 4H), PyTorch order i,f,g,o.

    sigmoid/tanh are evaluated over the full 4H width (2 EUP pushes) and the
    per-gate H-wide slices are selected afterwards.
    """
    sig = jax.nn.sigmoid(gates)
    tnh = jnp.tanh(gates)
    i = sig[:, 0 * H:1 * H]
    f = sig[:, 1 * H:2 * H]
    g = tnh[:, 2 * H:3 * H]
    o = sig[:, 3 * H:4 * H]
    c_new = f * c_prev + i * g
    h_new = o * jnp.tanh(c_new)
    return h_new, c_new


def nli_kernel(x_ref, lens_ref,
               wih_f_ref, whh_f_ref, b_f_ref,
               wih_b_ref, whh_b_ref, b_b_ref,
               w1_ref, b1_ref, w2_ref, b2_ref, w3_ref, b3_ref,
               out_ref):
    """Fused BiLSTM-max-pool encoder (premise+hypothesis stacked on batch) + MLP."""
    B2 = lens_ref.shape[0]            # 2 * B  (premise rows then hypothesis rows)
    B = B2 // 2
    H = whh_f_ref.shape[0]
    TB, _ = x_ref.shape               # (T * 2B, E)
    T = TB // B2

    lens = lens_ref[...]              # (2B, 1) int32

    # ---- hoisted input projections for all timesteps, both directions -------
    xb = x_ref[...].astype(jnp.bfloat16)                              # (T*2B, E)
    pf = (jnp.dot(xb, wih_f_ref[...].astype(jnp.bfloat16),
                  preferred_element_type=jnp.float32) + b_f_ref[...])  # (T*2B, 4H)
    pb = (jnp.dot(xb, wih_b_ref[...].astype(jnp.bfloat16),
                  preferred_element_type=jnp.float32) + b_b_ref[...])  # (T*2B, 4H)

    whh_f = whh_f_ref[...].astype(jnp.bfloat16)
    whh_b = whh_b_ref[...].astype(jnp.bfloat16)

    # ---- interleaved fwd/bwd recurrence, fully unrolled, state in vregs ------
    zeros = jnp.zeros((B2, H), jnp.float32)
    h_f, c_f, h_b, c_b = zeros, zeros, zeros, zeros
    mx_f = jnp.full((B2, H), NEG_INF, jnp.float32)
    mx_b = jnp.full((B2, H), NEG_INF, jnp.float32)

    for i in range(T):                # T is static & tiny -> full unroll
        tf = i
        tb = T - 1 - i

        g_f = pf[tf * B2:(tf + 1) * B2, :] + jnp.dot(
            h_f.astype(jnp.bfloat16), whh_f, preferred_element_type=jnp.float32)
        g_b = pb[tb * B2:(tb + 1) * B2, :] + jnp.dot(
            h_b.astype(jnp.bfloat16), whh_b, preferred_element_type=jnp.float32)

        hn_f, cn_f = _cell_from_gates(g_f, c_f, H)
        hn_b, cn_b = _cell_from_gates(g_b, c_b, H)

        m_f = tf < lens               # (2B, 1) bool
        m_b = tb < lens

        h_f = jnp.where(m_f, hn_f, h_f)
        c_f = jnp.where(m_f, cn_f, c_f)
        h_b = jnp.where(m_b, hn_b, h_b)
        c_b = jnp.where(m_b, cn_b, c_b)

        # padded steps contribute zero rows to the max, as pad_packed_sequence does
        mx_f = jnp.maximum(mx_f, jnp.where(m_f, hn_f, 0.0))
        mx_b = jnp.maximum(mx_b, jnp.where(m_b, hn_b, 0.0))

    # ---- classifier (fused; u/v never leave VMEM) ----------------------------
    u = jnp.concatenate([mx_f[0:B, :], mx_b[0:B, :]], axis=1)     # (B, 2H)
    v = jnp.concatenate([mx_f[B:B2, :], mx_b[B:B2, :]], axis=1)   # (B, 2H)
    feats = jnp.concatenate([u, v, jnp.abs(u - v), u * v], axis=1)  # (B, 8H)

    h1 = jnp.tanh(jnp.dot(feats.astype(jnp.bfloat16),
                          w1_ref[...].astype(jnp.bfloat16),
                          preferred_element_type=jnp.float32) + b1_ref[...])
    h2 = jnp.tanh(jnp.dot(h1.astype(jnp.bfloat16),
                          w2_ref[...].astype(jnp.bfloat16),
                          preferred_element_type=jnp.float32) + b2_ref[...])
    out_ref[...] = (jnp.dot(h2.astype(jnp.bfloat16),
                            w3_ref[...].astype(jnp.bfloat16),
                            preferred_element_type=jnp.float32) + b3_ref[...])


@jax.jit
def nli_net_forward(prem, prem_len, hyp, hyp_len, params):
    T, B, E = prem.shape
    enc, cls = params["enc"], params["cls"]
    O = cls["w3"].shape[1]

    # stack premise + hypothesis on the batch axis so one kernel call handles both
    x2d = jnp.concatenate([prem, hyp], axis=1).reshape(T * 2 * B, E)   # (T*2B, E)
    lens = jnp.concatenate([prem_len, hyp_len], axis=0)                # (2B, 1)

    return pl.pallas_call(
        nli_kernel,
        out_shape=jax.ShapeDtypeStruct((B, O), jnp.float32),
    )(x2d, lens,
      enc["wih_f"], enc["whh_f"], enc["b_f"],
      enc["wih_b"], enc["whh_b"], enc["b_b"],
      cls["w1"], cls["b1"], cls["w2"], cls["b2"], cls["w3"], cls["b3"])


def init_params(key, emb_dim, lstm_dim, mlp_dim, output_dim):
    ks = jax.random.split(key, 12)
    H = lstm_dim

    def unif(k, shape, fan_in):
        bound = 1.0 / jnp.sqrt(jnp.float32(fan_in))
        return jax.random.uniform(k, shape, jnp.float32, -bound, bound)

    enc = {
        # stored transposed for (B, E) @ (E, 4H) matmuls; bias = b_ih + b_hh folded
        "wih_f": unif(ks[0], (emb_dim, 4 * H), H),
        "whh_f": unif(ks[1], (H, 4 * H), H),
        "b_f":   unif(ks[2], (1, 4 * H), H),
        "wih_b": unif(ks[3], (emb_dim, 4 * H), H),
        "whh_b": unif(ks[4], (H, 4 * H), H),
        "b_b":   unif(ks[5], (1, 4 * H), H),
    }
    input_dim = 4 * 2 * H
    cls = {
        "w1": unif(ks[6], (input_dim, mlp_dim), input_dim),
        "b1": unif(ks[7], (1, mlp_dim), input_dim),
        "w2": unif(ks[8], (mlp_dim, mlp_dim), mlp_dim),
        "b2": unif(ks[9], (1, mlp_dim), mlp_dim),
        "w3": unif(ks[10], (mlp_dim, output_dim), mlp_dim),
        "b3": unif(ks[11], (1, output_dim), mlp_dim),
    }
    return {"enc": enc, "cls": cls}


if __name__ == "__main__":
    # config: word_emb_dim=32, lstm_dim=32, lstm_layers=1, mlp_dim=64, output_dim=3
    T, B, E, H, M, O = 8, 8, 32, 32, 64, 3

    key = jax.random.PRNGKey(0)
    k_p, k_h, k_w = jax.random.split(key, 3)

    premises = jax.random.normal(k_p, (T, B, E), jnp.float32)
    hypothesises = jax.random.normal(k_h, (T, B, E), jnp.float32)
    # max length equals T in each batch (so padding rows match pad_packed_sequence exactly)
    prem_len = jnp.array([[8], [6], [8], [5], [7], [8], [4], [8]], jnp.int32)
    hyp_len = jnp.array([[8], [8], [3], [8], [6], [8], [5], [7]], jnp.int32)

    params = init_params(k_w, E, H, M, O)

    logits = nli_net_forward(premises, prem_len, hypothesises, hyp_len, params)
    jax.block_until_ready(logits)
    assert logits.shape == (B, O) and logits.dtype == jnp.float32
    print("KERNEL_OK")
</pallas_src>

<mosaic_0001>
module attributes {stable_mosaic.version = 11 : i64} {
  func.func @nli_kernel(%arg0: memref<128x32xf32, #tpu.memory_space<vmem>>, %arg1: memref<16x1xi32, #tpu.memory_space<vmem>>, %arg2: memref<32x128xf32, #tpu.memory_space<vmem>>, %arg3: memref<32x128xf32, #tpu.memory_space<vmem>>, %arg4: memref<1x128xf32, #tpu.memory_space<vmem>>, %arg5: memref<32x128xf32, #tpu.memory_space<vmem>>, %arg6: memref<32x128xf32, #tpu.memory_space<vmem>>, %arg7: memref<1x128xf32, #tpu.memory_space<vmem>>, %arg8: memref<256x64xf32, #tpu.memory_space<vmem>>, %arg9: memref<1x64xf32, #tpu.memory_space<vmem>>, %arg10: memref<64x64xf32, #tpu.memory_space<vmem>>, %arg11: memref<1x64xf32, #tpu.memory_space<vmem>>, %arg12: memref<64x3xf32, #tpu.memory_space<vmem>>, %arg13: memref<1x3xf32, #tpu.memory_space<vmem>>, %arg14: memref<8x3xf32, #tpu.memory_space<vmem>>) attributes {dimension_semantics = [], scalar_prefetch = 0 : i64, scratch_operands = 0 : i64, tpu.core_type = #tpu.core_type<tc>} {
    %c0 = arith.constant 0 : index
    %c0_0 = arith.constant 0 : index
    %0 = vector.load %arg1[%c0, %c0_0] : memref<16x1xi32, #tpu.memory_space<vmem>>, vector<16x1xi32>
    %c0_1 = arith.constant 0 : index
    %c0_2 = arith.constant 0 : index
    %1 = vector.load %arg0[%c0_1, %c0_2] : memref<128x32xf32, #tpu.memory_space<vmem>>, vector<128x32xf32>
    %2 = arith.truncf %1 : vector<128x32xf32> to vector<128x32xbf16>
    %c0_3 = arith.constant 0 : index
    %c0_4 = arith.constant 0 : index
    %3 = vector.load %arg2[%c0_3, %c0_4] : memref<32x128xf32, #tpu.memory_space<vmem>>, vector<32x128xf32>
    %4 = arith.truncf %3 : vector<32x128xf32> to vector<32x128xbf16>
    %cst = arith.constant dense<0.000000e+00> : vector<128x128xf32>
    %5 = tpu.matmul %2, %4, %cst {dimension_numbers = #tpu.dot_dimension_numbers<[1], [0], [0], [1], [0, 0, 1, 1], [], []>} : vector<128x32xbf16>, vector<32x128xbf16>, vector<128x128xf32> -> vector<128x128xf32>
    %c0_5 = arith.constant 0 : index
    %c0_6 = arith.constant 0 : index
    %6 = vector.load %arg4[%c0_5, %c0_6] : memref<1x128xf32, #tpu.memory_space<vmem>>, vector<1x128xf32>
    %7 = vector.broadcast %6 : vector<1x128xf32> to vector<128x128xf32>
    %8 = arith.addf %5, %7 : vector<128x128xf32>
    %c0_7 = arith.constant 0 : index
    %c0_8 = arith.constant 0 : index
    %9 = vector.load %arg5[%c0_7, %c0_8] : memref<32x128xf32, #tpu.memory_space<vmem>>, vector<32x128xf32>
    %10 = arith.truncf %9 : vector<32x128xf32> to vector<32x128xbf16>
    %cst_9 = arith.constant dense<0.000000e+00> : vector<128x128xf32>
    %11 = tpu.matmul %2, %10, %cst_9 {dimension_numbers = #tpu.dot_dimension_numbers<[1], [0], [0], [1], [0, 0, 1, 1], [], []>} : vector<128x32xbf16>, vector<32x128xbf16>, vector<128x128xf32> -> vector<128x128xf32>
    %c0_10 = arith.constant 0 : index
    %c0_11 = arith.constant 0 : index
    %12 = vector.load %arg7[%c0_10, %c0_11] : memref<1x128xf32, #tpu.memory_space<vmem>>, vector<1x128xf32>
    %13 = vector.broadcast %12 : vector<1x128xf32> to vector<128x128xf32>
    %14 = arith.addf %11, %13 : vector<128x128xf32>
    %c0_12 = arith.constant 0 : index
    %c0_13 = arith.constant 0 : index
    %15 = vector.load %arg3[%c0_12, %c0_13] : memref<32x128xf32, #tpu.memory_space<vmem>>, vector<32x128xf32>
    %16 = arith.truncf %15 : vector<32x128xf32> to vector<32x128xbf16>
    %c0_14 = arith.constant 0 : index
    %c0_15 = arith.constant 0 : index
    %17 = vector.load %arg6[%c0_14, %c0_15] : memref<32x128xf32, #tpu.memory_space<vmem>>, vector<32x128xf32>
    %18 = arith.truncf %17 : vector<32x128xf32> to vector<32x128xbf16>
    %cst_16 = arith.constant 0.000000e+00 : f32
    %19 = vector.broadcast %cst_16 : f32 to vector<16x32xf32>
    %cst_17 = arith.constant -1.000000e+30 : f32
    %20 = vector.broadcast %cst_17 : f32 to vector<16x32xf32>
    %cst_18 = arith.constant -1.000000e+30 : f32
    %21 = vector.broadcast %cst_18 : f32 to vector<16x32xf32>
    %22 = vector.extract_strided_slice %8 {offsets = [0, 0], sizes = [16, 128], strides = [1, 1]} : vector<128x128xf32> to vector<16x128xf32>
    %23 = arith.truncf %19 : vector<16x32xf32> to vector<16x32xbf16>
    %cst_19 = arith.constant dense<0.000000e+00> : vector<16x128xf32>
    %24 = tpu.matmul %23, %16, %cst_19 {dimension_numbers = #tpu.dot_dimension_numbers<[1], [0], [0], [1], [0, 0, 1, 1], [], []>} : vector<16x32xbf16>, vector<32x128xbf16>, vector<16x128xf32> -> vector<16x128xf32>
    %25 = arith.addf %22, %24 : vector<16x128xf32>
    %26 = vector.extract_strided_slice %14 {offsets = [112, 0], sizes = [16, 128], strides = [1, 1]} : vector<128x128xf32> to vector<16x128xf32>
    %27 = arith.truncf %19 : vector<16x32xf32> to vector<16x32xbf16>
    %cst_20 = arith.constant dense<0.000000e+00> : vector<16x128xf32>
    %28 = tpu.matmul %27, %18, %cst_20 {dimension_numbers = #tpu.dot_dimension_numbers<[1], [0], [0], [1], [0, 0, 1, 1], [], []>} : vector<16x32xbf16>, vector<32x128xbf16>, vector<16x128xf32> -> vector<16x128xf32>
    %29 = arith.addf %26, %28 : vector<16x128xf32>
    %30 = arith.negf %25 : vector<16x128xf32>
    %31 = math.exp %30 : vector<16x128xf32>
    %cst_21 = arith.constant 1.000000e+00 : f32
    %32 = vector.broadcast %cst_21 : f32 to vector<16x128xf32>
    %33 = arith.addf %32, %31 : vector<16x128xf32>
    %34 = arith.divf %32, %33 : vector<16x128xf32>
    %35 = math.tanh %25 : vector<16x128xf32>
    %36 = vector.extract_strided_slice %34 {offsets = [0, 0], sizes = [16, 32], strides = [1, 1]} : vector<16x128xf32> to vector<16x32xf32>
    %37 = vector.extract_strided_slice %34 {offsets = [0, 32], sizes = [16, 32], strides = [1, 1]} : vector<16x128xf32> to vector<16x32xf32>
    %38 = vector.extract_strided_slice %35 {offsets = [0, 64], sizes = [16, 32], strides = [1, 1]} : vector<16x128xf32> to vector<16x32xf32>
    %39 = vector.extract_strided_slice %34 {offsets = [0, 96], sizes = [16, 32], strides = [1, 1]} : vector<16x128xf32> to vector<16x32xf32>
    %40 = arith.mulf %37, %19 : vector<16x32xf32>
    %41 = arith.mulf %36, %38 : vector<16x32xf32>
    %42 = arith.addf %40, %41 : vector<16x32xf32>
    %43 = math.tanh %42 : vector<16x32xf32>
    %44 = arith.mulf %39, %43 : vector<16x32xf32>
    %45 = arith.negf %29 : vector<16x128xf32>
    %46 = math.exp %45 : vector<16x128xf32>
    %cst_22 = arith.constant 1.000000e+00 : f32
    %47 = vector.broadcast %cst_22 : f32 to vector<16x128xf32>
    %48 = arith.addf %47, %46 : vector<16x128xf32>
    %49 = arith.divf %47, %48 : vector<16x128xf32>
    %50 = math.tanh %29 : vector<16x128xf32>
    %51 = vector.extract_strided_slice %49 {offsets = [0, 0], sizes = [16, 32], strides = [1, 1]} : vector<16x128xf32> to vector<16x32xf32>
    %52 = vector.extract_strided_slice %49 {offsets = [0, 32], sizes = [16, 32], strides = [1, 1]} : vector<16x128xf32> to vector<16x32xf32>
    %53 = vector.extract_strided_slice %50 {offsets = [0, 64], sizes = [16, 32], strides = [1, 1]} : vector<16x128xf32> to vector<16x32xf32>
    %54 = vector.extract_strided_slice %49 {offsets = [0, 96], sizes = [16, 32], strides = [1, 1]} : vector<16x128xf32> to vector<16x32xf32>
    %55 = arith.mulf %52, %19 : vector<16x32xf32>
    %56 = arith.mulf %51, %53 : vector<16x32xf32>
    %57 = arith.addf %55, %56 : vector<16x32xf32>
    %58 = math.tanh %57 : vector<16x32xf32>
    %59 = arith.mulf %54, %58 : vector<16x32xf32>
    %c0_i32 = arith.constant 0 : i32
    %60 = vector.broadcast %c0_i32 : i32 to vector<16x1xi32>
    %61 = arith.cmpi sgt, %0, %60 : vector<16x1xi32>
    %c7_i32 = arith.constant 7 : i32
    %62 = vector.broadcast %c7_i32 : i32 to vector<16x1xi32>
    %63 = arith.cmpi sgt, %0, %62 : vector<16x1xi32>
    %64 = vector.shape_cast %61 : vector<16x1xi1> to vector<16x1xi1>
    %65 = vector.broadcast %64 : vector<16x1xi1> to vector<16x32xi1>
    %66 = arith.select %65, %44, %19 : vector<16x32xi1>, vector<16x32xf32>
    %67 = vector.shape_cast %61 : vector<16x1xi1> to vector<16x1xi1>
    %68 = vector.broadcast %67 : vector<16x1xi1> to vector<16x32xi1>
    %69 = arith.select %68, %42, %19 : vector<16x32xi1>, vector<16x32xf32>
    %70 = vector.shape_cast %63 : vector<16x1xi1> to vector<16x1xi1>
    %71 = vector.broadcast %70 : vector<16x1xi1> to vector<16x32xi1>
    %72 = arith.select %71, %59, %19 : vector<16x32xi1>, vector<16x32xf32>
    %73 = vector.shape_cast %63 : vector<16x1xi1> to vector<16x1xi1>
    %74 = vector.broadcast %73 : vector<16x1xi1> to vector<16x32xi1>
    %75 = arith.select %74, %57, %19 : vector<16x32xi1>, vector<16x32xf32>
    %cst_23 = arith.constant 0.000000e+00 : f32
    %76 = vector.shape_cast %61 : vector<16x1xi1> to vector<16x1xi1>
    %77 = vector.broadcast %76 : vector<16x1xi1> to vector<16x32xi1>
    %78 = vector.broadcast %cst_23 : f32 to vector<16x32xf32>
    %79 = arith.select %77, %44, %78 : vector<16x32xi1>, vector<16x32xf32>
    %80 = arith.maximumf %20, %79 : vector<16x32xf32>
    %cst_24 = arith.constant 0.000000e+00 : f32
    %81 = vector.shape_cast %63 : vector<16x1xi1> to vector<16x1xi1>
    %82 = vector.broadcast %81 : vector<16x1xi1> to vector<16x32xi1>
    %83 = vector.broadcast %cst_24 : f32 to vector<16x32xf32>
    %84 = arith.select %82, %59, %83 : vector<16x32xi1>, vector<16x32xf32>
    %85 = arith.maximumf %21, %84 : vector<16x32xf32>
    %86 = vector.extract_strided_slice %8 {offsets = [16, 0], sizes = [16, 128], strides = [1, 1]} : vector<128x128xf32> to vector<16x128xf32>
    %87 = arith.truncf %66 : vector<16x32xf32> to vector<16x32xbf16>
    %cst_25 = arith.constant dense<0.000000e+00> : vector<16x128xf32>
    %88 = tpu.matmul %87, %16, %cst_25 {dimension_numbers = #tpu.dot_dimension_numbers<[1], [0], [0], [1], [0, 0, 1, 1], [], []>} : vector<16x32xbf16>, vector<32x128xbf16>, vector<16x128xf32> -> vector<16x128xf32>
    %89 = arith.addf %86, %88 : vector<16x128xf32>
    %90 = vector.extract_strided_slice %14 {offsets = [96, 0], sizes = [16, 128], strides = [1, 1]} : vector<128x128xf32> to vector<16x128xf32>
    %91 = arith.truncf %72 : vector<16x32xf32> to vector<16x32xbf16>
    %cst_26 = arith.constant dense<0.000000e+00> : vector<16x128xf32>
    %92 = tpu.matmul %91, %18, %cst_26 {dimension_numbers = #tpu.dot_dimension_numbers<[1], [0], [0], [1], [0, 0, 1, 1], [], []>} : vector<16x32xbf16>, vector<32x128xbf16>, vector<16x128xf32> -> vector<16x128xf32>
    %93 = arith.addf %90, %92 : vector<16x128xf32>
    %94 = arith.negf %89 : vector<16x128xf32>
    %95 = math.exp %94 : vector<16x128xf32>
    %cst_27 = arith.constant 1.000000e+00 : f32
    %96 = vector.broadcast %cst_27 : f32 to vector<16x128xf32>
    %97 = arith.addf %96, %95 : vector<16x128xf32>
    %98 = arith.divf %96, %97 : vector<16x128xf32>
    %99 = math.tanh %89 : vector<16x128xf32>
    %100 = vector.extract_strided_slice %98 {offsets = [0, 0], sizes = [16, 32], strides = [1, 1]} : vector<16x128xf32> to vector<16x32xf32>
    %101 = vector.extract_strided_slice %98 {offsets = [0, 32], sizes = [16, 32], strides = [1, 1]} : vector<16x128xf32> to vector<16x32xf32>
    %102 = vector.extract_strided_slice %99 {offsets = [0, 64], sizes = [16, 32], strides = [1, 1]} : vector<16x128xf32> to vector<16x32xf32>
    %103 = vector.extract_strided_slice %98 {offsets = [0, 96], sizes = [16, 32], strides = [1, 1]} : vector<16x128xf32> to vector<16x32xf32>
    %104 = arith.mulf %101, %69 : vector<16x32xf32>
    %105 = arith.mulf %100, %102 : vector<16x32xf32>
    %106 = arith.addf %104, %105 : vector<16x32xf32>
    %107 = math.tanh %106 : vector<16x32xf32>
    %108 = arith.mulf %103, %107 : vector<16x32xf32>
    %109 = arith.negf %93 : vector<16x128xf32>
    %110 = math.exp %109 : vector<16x128xf32>
    %cst_28 = arith.constant 1.000000e+00 : f32
    %111 = vector.broadcast %cst_28 : f32 to vector<16x128xf32>
    %112 = arith.addf %111, %110 : vector<16x128xf32>
    %113 = arith.divf %111, %112 : vector<16x128xf32>
    %114 = math.tanh %93 : vector<16x128xf32>
    %115 = vector.extract_strided_slice %113 {offsets = [0, 0], sizes = [16, 32], strides = [1, 1]} : vector<16x128xf32> to vector<16x32xf32>
    %116 = vector.extract_strided_slice %113 {offsets = [0, 32], sizes = [16, 32], strides = [1, 1]} : vector<16x128xf32> to vector<16x32xf32>
    %117 = vector.extract_strided_slice %114 {offsets = [0, 64], sizes = [16, 32], strides = [1, 1]} : vector<16x128xf32> to vector<16x32xf32>
    %118 = vector.extract_strided_slice %113 {offsets = [0, 96], sizes = [16, 32], strides = [1, 1]} : vector<16x128xf32> to vector<16x32xf32>
    %119 = arith.mulf %116, %75 : vector<16x32xf32>
    %120 = arith.mulf %115, %117 : vector<16x32xf32>
    %121 = arith.addf %119, %120 : vector<16x32xf32>
    %122 = math.tanh %121 : vector<16x32xf32>
    %123 = arith.mulf %118, %122 : vector<16x32xf32>
    %c1_i32 = arith.constant 1 : i32
    %124 = vector.broadcast %c1_i32 : i32 to vector<16x1xi32>
    %125 = arith.cmpi sgt, %0, %124 : vector<16x1xi32>
    %c6_i32 = arith.constant 6 : i32
    %126 = vector.broadcast %c6_i32 : i32 to vector<16x1xi32>
    %127 = arith.cmpi sgt, %0, %126 : vector<16x1xi32>
    %128 = vector.shape_cast %125 : vector<16x1xi1> to vector<16x1xi1>
    %129 = vector.broadcast %128 : vector<16x1xi1> to vector<16x32xi1>
    %130 = arith.select %129, %108, %66 : vector<16x32xi1>, vector<16x32xf32>
    %131 = vector.shape_cast %125 : vector<16x1xi1> to vector<16x1xi1>
    %132 = vector.broadcast %131 : vector<16x1xi1> to vector<16x32xi1>
    %133 = arith.select %132, %106, %69 : vector<16x32xi1>, vector<16x32xf32>
    %134 = vector.shape_cast %127 : vector<16x1xi1> to vector<16x1xi1>
    %135 = vector.broadcast %134 : vector<16x1xi1> to vector<16x32xi1>
    %136 = arith.select %135, %123, %72 : vector<16x32xi1>, vector<16x32xf32>
    %137 = vector.shape_cast %127 : vector<16x1xi1> to vector<16x1xi1>
    %138 = vector.broadcast %137 : vector<16x1xi1> to vector<16x32xi1>
    %139 = arith.select %138, %121, %75 : vector<16x32xi1>, vector<16x32xf32>
    %cst_29 = arith.constant 0.000000e+00 : f32
    %140 = vector.shape_cast %125 : vector<16x1xi1> to vector<16x1xi1>
    %141 = vector.broadcast %140 : vector<16x1xi1> to vector<16x32xi1>
    %142 = vector.broadcast %cst_29 : f32 to vector<16x32xf32>
    %143 = arith.select %141, %108, %142 : vector<16x32xi1>, vector<16x32xf32>
    %144 = arith.maximumf %80, %143 : vector<16x32xf32>
    %cst_30 = arith.constant 0.000000e+00 : f32
    %145 = vector.shape_cast %127 : vector<16x1xi1> to vector<16x1xi1>
    %146 = vector.broadcast %145 : vector<16x1xi1> to vector<16x32xi1>
    %147 = vector.broadcast %cst_30 : f32 to vector<16x32xf32>
    %148 = arith.select %146, %123, %147 : vector<16x32xi1>, vector<16x32xf32>
    %149 = arith.maximumf %85, %148 : vector<16x32xf32>
    %150 = vector.extract_strided_slice %8 {offsets = [32, 0], sizes = [16, 128], strides = [1, 1]} : vector<128x128xf32> to vector<16x128xf32>
    %151 = arith.truncf %130 : vector<16x32xf32> to vector<16x32xbf16>
    %cst_31 = arith.constant dense<0.000000e+00> : vector<16x128xf32>
    %152 = tpu.matmul %151, %16, %cst_31 {dimension_numbers = #tpu.dot_dimension_numbers<[1], [0], [0], [1], [0, 0, 1, 1], [], []>} : vector<16x32xbf16>, vector<32x128xbf16>, vector<16x128xf32> -> vector<16x128xf32>
    %153 = arith.addf %150, %152 : vector<16x128xf32>
    %154 = vector.extract_strided_slice %14 {offsets = [80, 0], sizes = [16, 128], strides = [1, 1]} : vector<128x128xf32> to vector<16x128xf32>
    %155 = arith.truncf %136 : vector<16x32xf32> to vector<16x32xbf16>
    %cst_32 = arith.constant dense<0.000000e+00> : vector<16x128xf32>
    %156 = tpu.matmul %155, %18, %cst_32 {dimension_numbers = #tpu.dot_dimension_numbers<[1], [0], [0], [1], [0, 0, 1, 1], [], []>} : vector<16x32xbf16>, vector<32x128xbf16>, vector<16x128xf32> -> vector<16x128xf32>
    %157 = arith.addf %154, %156 : vector<16x128xf32>
    %158 = arith.negf %153 : vector<16x128xf32>
    %159 = math.exp %158 : vector<16x128xf32>
    %cst_33 = arith.constant 1.000000e+00 : f32
    %160 = vector.broadcast %cst_33 : f32 to vector<16x128xf32>
    %161 = arith.addf %160, %159 : vector<16x128xf32>
    %162 = arith.divf %160, %161 : vector<16x128xf32>
    %163 = math.tanh %153 : vector<16x128xf32>
    %164 = vector.extract_strided_slice %162 {offsets = [0, 0], sizes = [16, 32], strides = [1, 1]} : vector<16x128xf32> to vector<16x32xf32>
    %165 = vector.extract_strided_slice %162 {offsets = [0, 32], sizes = [16, 32], strides = [1, 1]} : vector<16x128xf32> to vector<16x32xf32>
    %166 = vector.extract_strided_slice %163 {offsets = [0, 64], sizes = [16, 32], strides = [1, 1]} : vector<16x128xf32> to vector<16x32xf32>
    %167 = vector.extract_strided_slice %162 {offsets = [0, 96], sizes = [16, 32], strides = [1, 1]} : vector<16x128xf32> to vector<16x32xf32>
    %168 = arith.mulf %165, %133 : vector<16x32xf32>
    %169 = arith.mulf %164, %166 : vector<16x32xf32>
    %170 = arith.addf %168, %169 : vector<16x32xf32>
    %171 = math.tanh %170 : vector<16x32xf32>
    %172 = arith.mulf %167, %171 : vector<16x32xf32>
    %173 = arith.negf %157 : vector<16x128xf32>
    %174 = math.exp %173 : vector<16x128xf32>
    %cst_34 = arith.constant 1.000000e+00 : f32
    %175 = vector.broadcast %cst_34 : f32 to vector<16x128xf32>
    %176 = arith.addf %175, %174 : vector<16x128xf32>
    %177 = arith.divf %175, %176 : vector<16x128xf32>
    %178 = math.tanh %157 : vector<16x128xf32>
    %179 = vector.extract_strided_slice %177 {offsets = [0, 0], sizes = [16, 32], strides = [1, 1]} : vector<16x128xf32> to vector<16x32xf32>
    %180 = vector.extract_strided_slice %177 {offsets = [0, 32], sizes = [16, 32], strides = [1, 1]} : vector<16x128xf32> to vector<16x32xf32>
    %181 = vector.extract_strided_slice %178 {offsets = [0, 64], sizes = [16, 32], strides = [1, 1]} : vector<16x128xf32> to vector<16x32xf32>
    %182 = vector.extract_strided_slice %177 {offsets = [0, 96], sizes = [16, 32], strides = [1, 1]} : vector<16x128xf32> to vector<16x32xf32>
    %183 = arith.mulf %180, %139 : vector<16x32xf32>
    %184 = arith.mulf %179, %181 : vector<16x32xf32>
    %185 = arith.addf %183, %184 : vector<16x32xf32>
    %186 = math.tanh %185 : vector<16x32xf32>
    %187 = arith.mulf %182, %186 : vector<16x32xf32>
    %c2_i32 = arith.constant 2 : i32
    %188 = vector.broadcast %c2_i32 : i32 to vector<16x1xi32>
    %189 = arith.cmpi sgt, %0, %188 : vector<16x1xi32>
    %c5_i32 = arith.constant 5 : i32
    %190 = vector.broadcast %c5_i32 : i32 to vector<16x1xi32>
    %191 = arith.cmpi sgt, %0, %190 : vector<16x1xi32>
    %192 = vector.shape_cast %189 : vector<16x1xi1> to vector<16x1xi1>
    %193 = vector.broadcast %192 : vector<16x1xi1> to vector<16x32xi1>
    %194 = arith.select %193, %172, %130 : vector<16x32xi1>, vector<16x32xf32>
    %195 = vector.shape_cast %189 : vector<16x1xi1> to vector<16x1xi1>
    %196 = vector.broadcast %195 : vector<16x1xi1> to vector<16x32xi1>
    %197 = arith.select %196, %170, %133 : vector<16x32xi1>, vector<16x32xf32>
    %198 = vector.shape_cast %191 : vector<16x1xi1> to vector<16x1xi1>
    %199 = vector.broadcast %198 : vector<16x1xi1> to vector<16x32xi1>
    %200 = arith.select %199, %187, %136 : vector<16x32xi1>, vector<16x32xf32>
    %201 = vector.shape_cast %191 : vector<16x1xi1> to vector<16x1xi1>
    %202 = vector.broadcast %201 : vector<16x1xi1> to vector<16x32xi1>
    %203 = arith.select %202, %185, %139 : vector<16x32xi1>, vector<16x32xf32>
    %cst_35 = arith.constant 0.000000e+00 : f32
    %204 = vector.shape_cast %189 : vector<16x1xi1> to vector<16x1xi1>
    %205 = vector.broadcast %204 : vector<16x1xi1> to vector<16x32xi1>
    %206 = vector.broadcast %cst_35 : f32 to vector<16x32xf32>
    %207 = arith.select %205, %172, %206 : vector<16x32xi1>, vector<16x32xf32>
    %208 = arith.maximumf %144, %207 : vector<16x32xf32>
    %cst_36 = arith.constant 0.000000e+00 : f32
    %209 = vector.shape_cast %191 : vector<16x1xi1> to vector<16x1xi1>
    %210 = vector.broadcast %209 : vector<16x1xi1> to vector<16x32xi1>
    %211 = vector.broadcast %cst_36 : f32 to vector<16x32xf32>
    %212 = arith.select %210, %187, %211 : vector<16x32xi1>, vector<16x32xf32>
    %213 = arith.maximumf %149, %212 : vector<16x32xf32>
    %214 = vector.extract_strided_slice %8 {offsets = [48, 0], sizes = [16, 128], strides = [1, 1]} : vector<128x128xf32> to vector<16x128xf32>
    %215 = arith.truncf %194 : vector<16x32xf32> to vector<16x32xbf16>
    %cst_37 = arith.constant dense<0.000000e+00> : vector<16x128xf32>
    %216 = tpu.matmul %215, %16, %cst_37 {dimension_numbers = #tpu.dot_dimension_numbers<[1], [0], [0], [1], [0, 0, 1, 1], [], []>} : vector<16x32xbf16>, vector<32x128xbf16>, vector<16x128xf32> -> vector<16x128xf32>
    %217 = arith.addf %214, %216 : vector<16x128xf32>
    %218 = vector.extract_strided_slice %14 {offsets = [64, 0], sizes = [16, 128], strides = [1, 1]} : vector<128x128xf32> to vector<16x128xf32>
    %219 = arith.truncf %200 : vector<16x32xf32> to vector<16x32xbf16>
    %cst_38 = arith.constant dense<0.000000e+00> : vector<16x128xf32>
    %220 = tpu.matmul %219, %18, %cst_38 {dimension_numbers = #tpu.dot_dimension_numbers<[1], [0], [0], [1], [0, 0, 1, 1], [], []>} : vector<16x32xbf16>, vector<32x128xbf16>, vector<16x128xf32> -> vector<16x128xf32>
    %221 = arith.addf %218, %220 : vector<16x128xf32>
    %222 = arith.negf %217 : vector<16x128xf32>
    %223 = math.exp %222 : vector<16x128xf32>
    %cst_39 = arith.constant 1.000000e+00 : f32
    %224 = vector.broadcast %cst_39 : f32 to vector<16x128xf32>
    %225 = arith.addf %224, %223 : vector<16x128xf32>
    %226 = arith.divf %224, %225 : vector<16x128xf32>
    %227 = math.tanh %217 : vector<16x128xf32>
    %228 = vector.extract_strided_slice %226 {offsets = [0, 0], sizes = [16, 32], strides = [1, 1]} : vector<16x128xf32> to vector<16x32xf32>
    %229 = vector.extract_strided_slice %226 {offsets = [0, 32], sizes = [16, 32], strides = [1, 1]} : vector<16x128xf32> to vector<16x32xf32>
    %230 = vector.extract_strided_slice %227 {offsets = [0, 64], sizes = [16, 32], strides = [1, 1]} : vector<16x128xf32> to vector<16x32xf32>
    %231 = vector.extract_strided_slice %226 {offsets = [0, 96], sizes = [16, 32], strides = [1, 1]} : vector<16x128xf32> to vector<16x32xf32>
    %232 = arith.mulf %229, %197 : vector<16x32xf32>
    %233 = arith.mulf %228, %230 : vector<16x32xf32>
    %234 = arith.addf %232, %233 : vector<16x32xf32>
    %235 = math.tanh %234 : vector<16x32xf32>
    %236 = arith.mulf %231, %235 : vector<16x32xf32>
    %237 = arith.negf %221 : vector<16x128xf32>
    %238 = math.exp %237 : vector<16x128xf32>
    %cst_40 = arith.constant 1.000000e+00 : f32
    %239 = vector.broadcast %cst_40 : f32 to vector<16x128xf32>
    %240 = arith.addf %239, %238 : vector<16x128xf32>
    %241 = arith.divf %239, %240 : vector<16x128xf32>
    %242 = math.tanh %221 : vector<16x128xf32>
    %243 = vector.extract_strided_slice %241 {offsets = [0, 0], sizes = [16, 32], strides = [1, 1]} : vector<16x128xf32> to vector<16x32xf32>
    %244 = vector.extract_strided_slice %241 {offsets = [0, 32], sizes = [16, 32], strides = [1, 1]} : vector<16x128xf32> to vector<16x32xf32>
    %245 = vector.extract_strided_slice %242 {offsets = [0, 64], sizes = [16, 32], strides = [1, 1]} : vector<16x128xf32> to vector<16x32xf32>
    %246 = vector.extract_strided_slice %241 {offsets = [0, 96], sizes = [16, 32], strides = [1, 1]} : vector<16x128xf32> to vector<16x32xf32>
    %247 = arith.mulf %244, %203 : vector<16x32xf32>
    %248 = arith.mulf %243, %245 : vector<16x32xf32>
    %249 = arith.addf %247, %248 : vector<16x32xf32>
    %250 = math.tanh %249 : vector<16x32xf32>
    %251 = arith.mulf %246, %250 : vector<16x32xf32>
    %c3_i32 = arith.constant 3 : i32
    %252 = vector.broadcast %c3_i32 : i32 to vector<16x1xi32>
    %253 = arith.cmpi sgt, %0, %252 : vector<16x1xi32>
    %c4_i32 = arith.constant 4 : i32
    %254 = vector.broadcast %c4_i32 : i32 to vector<16x1xi32>
    %255 = arith.cmpi sgt, %0, %254 : vector<16x1xi32>
    %256 = vector.shape_cast %253 : vector<16x1xi1> to vector<16x1xi1>
    %257 = vector.broadcast %256 : vector<16x1xi1> to vector<16x32xi1>
    %258 = arith.select %257, %236, %194 : vector<16x32xi1>, vector<16x32xf32>
    %259 = vector.shape_cast %253 : vector<16x1xi1> to vector<16x1xi1>
    %260 = vector.broadcast %259 : vector<16x1xi1> to vector<16x32xi1>
    %261 = arith.select %260, %234, %197 : vector<16x32xi1>, vector<16x32xf32>
    %262 = vector.shape_cast %255 : vector<16x1xi1> to vector<16x1xi1>
    %263 = vector.broadcast %262 : vector<16x1xi1> to vector<16x32xi1>
    %264 = arith.select %263, %251, %200 : vector<16x32xi1>, vector<16x32xf32>
    %265 = vector.shape_cast %255 : vector<16x1xi1> to vector<16x1xi1>
    %266 = vector.broadcast %265 : vector<16x1xi1> to vector<16x32xi1>
    %267 = arith.select %266, %249, %203 : vector<16x32xi1>, vector<16x32xf32>
    %cst_41 = arith.constant 0.000000e+00 : f32
    %268 = vector.shape_cast %253 : vector<16x1xi1> to vector<16x1xi1>
    %269 = vector.broadcast %268 : vector<16x1xi1> to vector<16x32xi1>
    %270 = vector.broadcast %cst_41 : f32 to vector<16x32xf32>
    %271 = arith.select %269, %236, %270 : vector<16x32xi1>, vector<16x32xf32>
    %272 = arith.maximumf %208, %271 : vector<16x32xf32>
    %cst_42 = arith.constant 0.000000e+00 : f32
    %273 = vector.shape_cast %255 : vector<16x1xi1> to vector<16x1xi1>
    %274 = vector.broadcast %273 : vector<16x1xi1> to vector<16x32xi1>
    %275 = vector.broadcast %cst_42 : f32 to vector<16x32xf32>
    %276 = arith.select %274, %251, %275 : vector<16x32xi1>, vector<16x32xf32>
    %277 = arith.maximumf %213, %276 : vector<16x32xf32>
    %278 = vector.extract_strided_slice %8 {offsets = [64, 0], sizes = [16, 128], strides = [1, 1]} : vector<128x128xf32> to vector<16x128xf32>
    %279 = arith.truncf %258 : vector<16x32xf32> to vector<16x32xbf16>
    %cst_43 = arith.constant dense<0.000000e+00> : vector<16x128xf32>
    %280 = tpu.matmul %279, %16, %cst_43 {dimension_numbers = #tpu.dot_dimension_numbers<[1], [0], [0], [1], [0, 0, 1, 1], [], []>} : vector<16x32xbf16>, vector<32x128xbf16>, vector<16x128xf32> -> vector<16x128xf32>
    %281 = arith.addf %278, %280 : vector<16x128xf32>
    %282 = vector.extract_strided_slice %14 {offsets = [48, 0], sizes = [16, 128], strides = [1, 1]} : vector<128x128xf32> to vector<16x128xf32>
    %283 = arith.truncf %264 : vector<16x32xf32> to vector<16x32xbf16>
    %cst_44 = arith.constant dense<0.000000e+00> : vector<16x128xf32>
    %284 = tpu.matmul %283, %18, %cst_44 {dimension_numbers = #tpu.dot_dimension_numbers<[1], [0], [0], [1], [0, 0, 1, 1], [], []>} : vector<16x32xbf16>, vector<32x128xbf16>, vector<16x128xf32> -> vector<16x128xf32>
    %285 = arith.addf %282, %284 : vector<16x128xf32>
    %286 = arith.negf %281 : vector<16x128xf32>
    %287 = math.exp %286 : vector<16x128xf32>
    %cst_45 = arith.constant 1.000000e+00 : f32
    %288 = vector.broadcast %cst_45 : f32 to vector<16x128xf32>
    %289 = arith.addf %288, %287 : vector<16x128xf32>
    %290 = arith.divf %288, %289 : vector<16x128xf32>
    %291 = math.tanh %281 : vector<16x128xf32>
    %292 = vector.extract_strided_slice %290 {offsets = [0, 0], sizes = [16, 32], strides = [1, 1]} : vector<16x128xf32> to vector<16x32xf32>
    %293 = vector.extract_strided_slice %290 {offsets = [0, 32], sizes = [16, 32], strides = [1, 1]} : vector<16x128xf32> to vector<16x32xf32>
    %294 = vector.extract_strided_slice %291 {offsets = [0, 64], sizes = [16, 32], strides = [1, 1]} : vector<16x128xf32> to vector<16x32xf32>
    %295 = vector.extract_strided_slice %290 {offsets = [0, 96], sizes = [16, 32], strides = [1, 1]} : vector<16x128xf32> to vector<16x32xf32>
    %296 = arith.mulf %293, %261 : vector<16x32xf32>
    %297 = arith.mulf %292, %294 : vector<16x32xf32>
    %298 = arith.addf %296, %297 : vector<16x32xf32>
    %299 = math.tanh %298 : vector<16x32xf32>
    %300 = arith.mulf %295, %299 : vector<16x32xf32>
    %301 = arith.negf %285 : vector<16x128xf32>
    %302 = math.exp %301 : vector<16x128xf32>
    %cst_46 = arith.constant 1.000000e+00 : f32
    %303 = vector.broadcast %cst_46 : f32 to vector<16x128xf32>
    %304 = arith.addf %303, %302 : vector<16x128xf32>
    %305 = arith.divf %303, %304 : vector<16x128xf32>
    %306 = math.tanh %285 : vector<16x128xf32>
    %307 = vector.extract_strided_slice %305 {offsets = [0, 0], sizes = [16, 32], strides = [1, 1]} : vector<16x128xf32> to vector<16x32xf32>
    %308 = vector.extract_strided_slice %305 {offsets = [0, 32], sizes = [16, 32], strides = [1, 1]} : vector<16x128xf32> to vector<16x32xf32>
    %309 = vector.extract_strided_slice %306 {offsets = [0, 64], sizes = [16, 32], strides = [1, 1]} : vector<16x128xf32> to vector<16x32xf32>
    %310 = vector.extract_strided_slice %305 {offsets = [0, 96], sizes = [16, 32], strides = [1, 1]} : vector<16x128xf32> to vector<16x32xf32>
    %311 = arith.mulf %308, %267 : vector<16x32xf32>
    %312 = arith.mulf %307, %309 : vector<16x32xf32>
    %313 = arith.addf %311, %312 : vector<16x32xf32>
    %314 = math.tanh %313 : vector<16x32xf32>
    %315 = arith.mulf %310, %314 : vector<16x32xf32>
    %c4_i32_47 = arith.constant 4 : i32
    %316 = vector.broadcast %c4_i32_47 : i32 to vector<16x1xi32>
    %317 = arith.cmpi sgt, %0, %316 : vector<16x1xi32>
    %c3_i32_48 = arith.constant 3 : i32
    %318 = vector.broadcast %c3_i32_48 : i32 to vector<16x1xi32>
    %319 = arith.cmpi sgt, %0, %318 : vector<16x1xi32>
    %320 = vector.shape_cast %317 : vector<16x1xi1> to vector<16x1xi1>
    %321 = vector.broadcast %320 : vector<16x1xi1> to vector<16x32xi1>
    %322 = arith.select %321, %300, %258 : vector<16x32xi1>, vector<16x32xf32>
    %323 = vector.shape_cast %317 : vector<16x1xi1> to vector<16x1xi1>
    %324 = vector.broadcast %323 : vector<16x1xi1> to vector<16x32xi1>
    %325 = arith.select %324, %298, %261 : vector<16x32xi1>, vector<16x32xf32>
    %326 = vector.shape_cast %319 : vector<16x1xi1> to vector<16x1xi1>
    %327 = vector.broadcast %326 : vector<16x1xi1> to vector<16x32xi1>
    %328 = arith.select %327, %315, %264 : vector<16x32xi1>, vector<16x32xf32>
    %329 = vector.shape_cast %319 : vector<16x1xi1> to vector<16x1xi1>
    %330 = vector.broadcast %329 : vector<16x1xi1> to vector<16x32xi1>
    %331 = arith.select %330, %313, %267 : vector<16x32xi1>, vector<16x32xf32>
    %cst_49 = arith.constant 0.000000e+00 : f32
    %332 = vector.shape_cast %317 : vector<16x1xi1> to vector<16x1xi1>
    %333 = vector.broadcast %332 : vector<16x1xi1> to vector<16x32xi1>
    %334 = vector.broadcast %cst_49 : f32 to vector<16x32xf32>
    %335 = arith.select %333, %300, %334 : vector<16x32xi1>, vector<16x32xf32>
    %336 = arith.maximumf %272, %335 : vector<16x32xf32>
    %cst_50 = arith.constant 0.000000e+00 : f32
    %337 = vector.shape_cast %319 : vector<16x1xi1> to vector<16x1xi1>
    %338 = vector.broadcast %337 : vector<16x1xi1> to vector<16x32xi1>
    %339 = vector.broadcast %cst_50 : f32 to vector<16x32xf32>
    %340 = arith.select %338, %315, %339 : vector<16x32xi1>, vector<16x32xf32>
    %341 = arith.maximumf %277, %340 : vector<16x32xf32>
    %342 = vector.extract_strided_slice %8 {offsets = [80, 0], sizes = [16, 128], strides = [1, 1]} : vector<128x128xf32> to vector<16x128xf32>
    %343 = arith.truncf %322 : vector<16x32xf32> to vector<16x32xbf16>
    %cst_51 = arith.constant dense<0.000000e+00> : vector<16x128xf32>
    %344 = tpu.matmul %343, %16, %cst_51 {dimension_numbers = #tpu.dot_dimension_numbers<[1], [0], [0], [1], [0, 0, 1, 1], [], []>} : vector<16x32xbf16>, vector<32x128xbf16>, vector<16x128xf32> -> vector<16x128xf32>
    %345 = arith.addf %342, %344 : vector<16x128xf32>
    %346 = vector.extract_strided_slice %14 {offsets = [32, 0], sizes = [16, 128], strides = [1, 1]} : vector<128x128xf32> to vector<16x128xf32>
    %347 = arith.truncf %328 : vector<16x32xf32> to vector<16x32xbf16>
    %cst_52 = arith.constant dense<0.000000e+00> : vector<16x128xf32>
    %348 = tpu.matmul %347, %18, %cst_52 {dimension_numbers = #tpu.dot_dimension_numbers<[1], [0], [0], [1], [0, 0, 1, 1], [], []>} : vector<16x32xbf16>, vector<32x128xbf16>, vector<16x128xf32> -> vector<16x128xf32>
    %349 = arith.addf %346, %348 : vector<16x128xf32>
    %350 = arith.negf %345 : vector<16x128xf32>
    %351 = math.exp %350 : vector<16x128xf32>
    %cst_53 = arith.constant 1.000000e+00 : f32
    %352 = vector.broadcast %cst_53 : f32 to vector<16x128xf32>
    %353 = arith.addf %352, %351 : vector<16x128xf32>
    %354 = arith.divf %352, %353 : vector<16x128xf32>
    %355 = math.tanh %345 : vector<16x128xf32>
    %356 = vector.extract_strided_slice %354 {offsets = [0, 0], sizes = [16, 32], strides = [1, 1]} : vector<16x128xf32> to vector<16x32xf32>
    %357 = vector.extract_strided_slice %354 {offsets = [0, 32], sizes = [16, 32], strides = [1, 1]} : vector<16x128xf32> to vector<16x32xf32>
    %358 = vector.extract_strided_slice %355 {offsets = [0, 64], sizes = [16, 32], strides = [1, 1]} : vector<16x128xf32> to vector<16x32xf32>
    %359 = vector.extract_strided_slice %354 {offsets = [0, 96], sizes = [16, 32], strides = [1, 1]} : vector<16x128xf32> to vector<16x32xf32>
    %360 = arith.mulf %357, %325 : vector<16x32xf32>
    %361 = arith.mulf %356, %358 : vector<16x32xf32>
    %362 = arith.addf %360, %361 : vector<16x32xf32>
    %363 = math.tanh %362 : vector<16x32xf32>
    %364 = arith.mulf %359, %363 : vector<16x32xf32>
    %365 = arith.negf %349 : vector<16x128xf32>
    %366 = math.exp %365 : vector<16x128xf32>
    %cst_54 = arith.constant 1.000000e+00 : f32
    %367 = vector.broadcast %cst_54 : f32 to vector<16x128xf32>
    %368 = arith.addf %367, %366 : vector<16x128xf32>
    %369 = arith.divf %367, %368 : vector<16x128xf32>
    %370 = math.tanh %349 : vector<16x128xf32>
    %371 = vector.extract_strided_slice %369 {offsets = [0, 0], sizes = [16, 32], strides = [1, 1]} : vector<16x128xf32> to vector<16x32xf32>
    %372 = vector.extract_strided_slice %369 {offsets = [0, 32], sizes = [16, 32], strides = [1, 1]} : vector<16x128xf32> to vector<16x32xf32>
    %373 = vector.extract_strided_slice %370 {offsets = [0, 64], sizes = [16, 32], strides = [1, 1]} : vector<16x128xf32> to vector<16x32xf32>
    %374 = vector.extract_strided_slice %369 {offsets = [0, 96], sizes = [16, 32], strides = [1, 1]} : vector<16x128xf32> to vector<16x32xf32>
    %375 = arith.mulf %372, %331 : vector<16x32xf32>
    %376 = arith.mulf %371, %373 : vector<16x32xf32>
    %377 = arith.addf %375, %376 : vector<16x32xf32>
    %378 = math.tanh %377 : vector<16x32xf32>
    %379 = arith.mulf %374, %378 : vector<16x32xf32>
    %c5_i32_55 = arith.constant 5 : i32
    %380 = vector.broadcast %c5_i32_55 : i32 to vector<16x1xi32>
    %381 = arith.cmpi sgt, %0, %380 : vector<16x1xi32>
    %c2_i32_56 = arith.constant 2 : i32
    %382 = vector.broadcast %c2_i32_56 : i32 to vector<16x1xi32>
    %383 = arith.cmpi sgt, %0, %382 : vector<16x1xi32>
    %384 = vector.shape_cast %381 : vector<16x1xi1> to vector<16x1xi1>
    %385 = vector.broadcast %384 : vector<16x1xi1> to vector<16x32xi1>
    %386 = arith.select %385, %364, %322 : vector<16x32xi1>, vector<16x32xf32>
    %387 = vector.shape_cast %381 : vector<16x1xi1> to vector<16x1xi1>
    %388 = vector.broadcast %387 : vector<16x1xi1> to vector<16x32xi1>
    %389 = arith.select %388, %362, %325 : vector<16x32xi1>, vector<16x32xf32>
    %390 = vector.shape_cast %383 : vector<16x1xi1> to vector<16x1xi1>
    %391 = vector.broadcast %390 : vector<16x1xi1> to vector<16x32xi1>
    %392 = arith.select %391, %379, %328 : vector<16x32xi1>, vector<16x32xf32>
    %393 = vector.shape_cast %383 : vector<16x1xi1> to vector<16x1xi1>
    %394 = vector.broadcast %393 : vector<16x1xi1> to vector<16x32xi1>
    %395 = arith.select %394, %377, %331 : vector<16x32xi1>, vector<16x32xf32>
    %cst_57 = arith.constant 0.000000e+00 : f32
    %396 = vector.shape_cast %381 : vector<16x1xi1> to vector<16x1xi1>
    %397 = vector.broadcast %396 : vector<16x1xi1> to vector<16x32xi1>
    %398 = vector.broadcast %cst_57 : f32 to vector<16x32xf32>
    %399 = arith.select %397, %364, %398 : vector<16x32xi1>, vector<16x32xf32>
    %400 = arith.maximumf %336, %399 : vector<16x32xf32>
    %cst_58 = arith.constant 0.000000e+00 : f32
    %401 = vector.shape_cast %383 : vector<16x1xi1> to vector<16x1xi1>
    %402 = vector.broadcast %401 : vector<16x1xi1> to vector<16x32xi1>
    %403 = vector.broadcast %cst_58 : f32 to vector<16x32xf32>
    %404 = arith.select %402, %379, %403 : vector<16x32xi1>, vector<16x32xf32>
    %405 = arith.maximumf %341, %404 : vector<16x32xf32>
    %406 = vector.extract_strided_slice %8 {offsets = [96, 0], sizes = [16, 128], strides = [1, 1]} : vector<128x128xf32> to vector<16x128xf32>
    %407 = arith.truncf %386 : vector<16x32xf32> to vector<16x32xbf16>
    %cst_59 = arith.constant dense<0.000000e+00> : vector<16x128xf32>
    %408 = tpu.matmul %407, %16, %cst_59 {dimension_numbers = #tpu.dot_dimension_numbers<[1], [0], [0], [1], [0, 0, 1, 1], [], []>} : vector<16x32xbf16>, vector<32x128xbf16>, vector<16x128xf32> -> vector<16x128xf32>
    %409 = arith.addf %406, %408 : vector<16x128xf32>
    %410 = vector.extract_strided_slice %14 {offsets = [16, 0], sizes = [16, 128], strides = [1, 1]} : vector<128x128xf32> to vector<16x128xf32>
    %411 = arith.truncf %392 : vector<16x32xf32> to vector<16x32xbf16>
    %cst_60 = arith.constant dense<0.000000e+00> : vector<16x128xf32>
    %412 = tpu.matmul %411, %18, %cst_60 {dimension_numbers = #tpu.dot_dimension_numbers<[1], [0], [0], [1], [0, 0, 1, 1], [], []>} : vector<16x32xbf16>, vector<32x128xbf16>, vector<16x128xf32> -> vector<16x128xf32>
    %413 = arith.addf %410, %412 : vector<16x128xf32>
    %414 = arith.negf %409 : vector<16x128xf32>
    %415 = math.exp %414 : vector<16x128xf32>
    %cst_61 = arith.constant 1.000000e+00 : f32
    %416 = vector.broadcast %cst_61 : f32 to vector<16x128xf32>
    %417 = arith.addf %416, %415 : vector<16x128xf32>
    %418 = arith.divf %416, %417 : vector<16x128xf32>
    %419 = math.tanh %409 : vector<16x128xf32>
    %420 = vector.extract_strided_slice %418 {offsets = [0, 0], sizes = [16, 32], strides = [1, 1]} : vector<16x128xf32> to vector<16x32xf32>
    %421 = vector.extract_strided_slice %418 {offsets = [0, 32], sizes = [16, 32], strides = [1, 1]} : vector<16x128xf32> to vector<16x32xf32>
    %422 = vector.extract_strided_slice %419 {offsets = [0, 64], sizes = [16, 32], strides = [1, 1]} : vector<16x128xf32> to vector<16x32xf32>
    %423 = vector.extract_strided_slice %418 {offsets = [0, 96], sizes = [16, 32], strides = [1, 1]} : vector<16x128xf32> to vector<16x32xf32>
    %424 = arith.mulf %421, %389 : vector<16x32xf32>
    %425 = arith.mulf %420, %422 : vector<16x32xf32>
    %426 = arith.addf %424, %425 : vector<16x32xf32>
    %427 = math.tanh %426 : vector<16x32xf32>
    %428 = arith.mulf %423, %427 : vector<16x32xf32>
    %429 = arith.negf %413 : vector<16x128xf32>
    %430 = math.exp %429 : vector<16x128xf32>
    %cst_62 = arith.constant 1.000000e+00 : f32
    %431 = vector.broadcast %cst_62 : f32 to vector<16x128xf32>
    %432 = arith.addf %431, %430 : vector<16x128xf32>
    %433 = arith.divf %431, %432 : vector<16x128xf32>
    %434 = math.tanh %413 : vector<16x128xf32>
    %435 = vector.extract_strided_slice %433 {offsets = [0, 0], sizes = [16, 32], strides = [1, 1]} : vector<16x128xf32> to vector<16x32xf32>
    %436 = vector.extract_strided_slice %433 {offsets = [0, 32], sizes = [16, 32], strides = [1, 1]} : vector<16x128xf32> to vector<16x32xf32>
    %437 = vector.extract_strided_slice %434 {offsets = [0, 64], sizes = [16, 32], strides = [1, 1]} : vector<16x128xf32> to vector<16x32xf32>
    %438 = vector.extract_strided_slice %433 {offsets = [0, 96], sizes = [16, 32], strides = [1, 1]} : vector<16x128xf32> to vector<16x32xf32>
    %439 = arith.mulf %436, %395 : vector<16x32xf32>
    %440 = arith.mulf %435, %437 : vector<16x32xf32>
    %441 = arith.addf %439, %440 : vector<16x32xf32>
    %442 = math.tanh %441 : vector<16x32xf32>
    %443 = arith.mulf %438, %442 : vector<16x32xf32>
    %c6_i32_63 = arith.constant 6 : i32
    %444 = vector.broadcast %c6_i32_63 : i32 to vector<16x1xi32>
    %445 = arith.cmpi sgt, %0, %444 : vector<16x1xi32>
    %c1_i32_64 = arith.constant 1 : i32
    %446 = vector.broadcast %c1_i32_64 : i32 to vector<16x1xi32>
    %447 = arith.cmpi sgt, %0, %446 : vector<16x1xi32>
    %448 = vector.shape_cast %445 : vector<16x1xi1> to vector<16x1xi1>
    %449 = vector.broadcast %448 : vector<16x1xi1> to vector<16x32xi1>
    %450 = arith.select %449, %428, %386 : vector<16x32xi1>, vector<16x32xf32>
    %451 = vector.shape_cast %445 : vector<16x1xi1> to vector<16x1xi1>
    %452 = vector.broadcast %451 : vector<16x1xi1> to vector<16x32xi1>
    %453 = arith.select %452, %426, %389 : vector<16x32xi1>, vector<16x32xf32>
    %454 = vector.shape_cast %447 : vector<16x1xi1> to vector<16x1xi1>
    %455 = vector.broadcast %454 : vector<16x1xi1> to vector<16x32xi1>
    %456 = arith.select %455, %443, %392 : vector<16x32xi1>, vector<16x32xf32>
    %457 = vector.shape_cast %447 : vector<16x1xi1> to vector<16x1xi1>
    %458 = vector.broadcast %457 : vector<16x1xi1> to vector<16x32xi1>
    %459 = arith.select %458, %441, %395 : vector<16x32xi1>, vector<16x32xf32>
    %cst_65 = arith.constant 0.000000e+00 : f32
    %460 = vector.shape_cast %445 : vector<16x1xi1> to vector<16x1xi1>
    %461 = vector.broadcast %460 : vector<16x1xi1> to vector<16x32xi1>
    %462 = vector.broadcast %cst_65 : f32 to vector<16x32xf32>
    %463 = arith.select %461, %428, %462 : vector<16x32xi1>, vector<16x32xf32>
    %464 = arith.maximumf %400, %463 : vector<16x32xf32>
    %cst_66 = arith.constant 0.000000e+00 : f32
    %465 = vector.shape_cast %447 : vector<16x1xi1> to vector<16x1xi1>
    %466 = vector.broadcast %465 : vector<16x1xi1> to vector<16x32xi1>
    %467 = vector.broadcast %cst_66 : f32 to vector<16x32xf32>
    %468 = arith.select %466, %443, %467 : vector<16x32xi1>, vector<16x32xf32>
    %469 = arith.maximumf %405, %468 : vector<16x32xf32>
    %470 = vector.extract_strided_slice %8 {offsets = [112, 0], sizes = [16, 128], strides = [1, 1]} : vector<128x128xf32> to vector<16x128xf32>
    %471 = arith.truncf %450 : vector<16x32xf32> to vector<16x32xbf16>
    %cst_67 = arith.constant dense<0.000000e+00> : vector<16x128xf32>
    %472 = tpu.matmul %471, %16, %cst_67 {dimension_numbers = #tpu.dot_dimension_numbers<[1], [0], [0], [1], [0, 0, 1, 1], [], []>} : vector<16x32xbf16>, vector<32x128xbf16>, vector<16x128xf32> -> vector<16x128xf32>
    %473 = arith.addf %470, %472 : vector<16x128xf32>
    %474 = vector.extract_strided_slice %14 {offsets = [0, 0], sizes = [16, 128], strides = [1, 1]} : vector<128x128xf32> to vector<16x128xf32>
    %475 = arith.truncf %456 : vector<16x32xf32> to vector<16x32xbf16>
    %cst_68 = arith.constant dense<0.000000e+00> : vector<16x128xf32>
    %476 = tpu.matmul %475, %18, %cst_68 {dimension_numbers = #tpu.dot_dimension_numbers<[1], [0], [0], [1], [0, 0, 1, 1], [], []>} : vector<16x32xbf16>, vector<32x128xbf16>, vector<16x128xf32> -> vector<16x128xf32>
    %477 = arith.addf %474, %476 : vector<16x128xf32>
    %478 = arith.negf %473 : vector<16x128xf32>
    %479 = math.exp %478 : vector<16x128xf32>
    %cst_69 = arith.constant 1.000000e+00 : f32
    %480 = vector.broadcast %cst_69 : f32 to vector<16x128xf32>
    %481 = arith.addf %480, %479 : vector<16x128xf32>
    %482 = arith.divf %480, %481 : vector<16x128xf32>
    %483 = math.tanh %473 : vector<16x128xf32>
    %484 = vector.extract_strided_slice %482 {offsets = [0, 0], sizes = [16, 32], strides = [1, 1]} : vector<16x128xf32> to vector<16x32xf32>
    %485 = vector.extract_strided_slice %482 {offsets = [0, 32], sizes = [16, 32], strides = [1, 1]} : vector<16x128xf32> to vector<16x32xf32>
    %486 = vector.extract_strided_slice %483 {offsets = [0, 64], sizes = [16, 32], strides = [1, 1]} : vector<16x128xf32> to vector<16x32xf32>
    %487 = vector.extract_strided_slice %482 {offsets = [0, 96], sizes = [16, 32], strides = [1, 1]} : vector<16x128xf32> to vector<16x32xf32>
    %488 = arith.mulf %485, %453 : vector<16x32xf32>
    %489 = arith.mulf %484, %486 : vector<16x32xf32>
    %490 = arith.addf %488, %489 : vector<16x32xf32>
    %491 = math.tanh %490 : vector<16x32xf32>
    %492 = arith.mulf %487, %491 : vector<16x32xf32>
    %493 = arith.negf %477 : vector<16x128xf32>
    %494 = math.exp %493 : vector<16x128xf32>
    %cst_70 = arith.constant 1.000000e+00 : f32
    %495 = vector.broadcast %cst_70 : f32 to vector<16x128xf32>
    %496 = arith.addf %495, %494 : vector<16x128xf32>
    %497 = arith.divf %495, %496 : vector<16x128xf32>
    %498 = math.tanh %477 : vector<16x128xf32>
    %499 = vector.extract_strided_slice %497 {offsets = [0, 0], sizes = [16, 32], strides = [1, 1]} : vector<16x128xf32> to vector<16x32xf32>
    %500 = vector.extract_strided_slice %497 {offsets = [0, 32], sizes = [16, 32], strides = [1, 1]} : vector<16x128xf32> to vector<16x32xf32>
    %501 = vector.extract_strided_slice %498 {offsets = [0, 64], sizes = [16, 32], strides = [1, 1]} : vector<16x128xf32> to vector<16x32xf32>
    %502 = vector.extract_strided_slice %497 {offsets = [0, 96], sizes = [16, 32], strides = [1, 1]} : vector<16x128xf32> to vector<16x32xf32>
    %503 = arith.mulf %500, %459 : vector<16x32xf32>
    %504 = arith.mulf %499, %501 : vector<16x32xf32>
    %505 = arith.addf %503, %504 : vector<16x32xf32>
    %506 = math.tanh %505 : vector<16x32xf32>
    %507 = arith.mulf %502, %506 : vector<16x32xf32>
    %c7_i32_71 = arith.constant 7 : i32
    %508 = vector.broadcast %c7_i32_71 : i32 to vector<16x1xi32>
    %509 = arith.cmpi sgt, %0, %508 : vector<16x1xi32>
    %c0_i32_72 = arith.constant 0 : i32
    %510 = vector.broadcast %c0_i32_72 : i32 to vector<16x1xi32>
    %511 = arith.cmpi sgt, %0, %510 : vector<16x1xi32>
    %cst_73 = arith.constant 0.000000e+00 : f32
    %512 = vector.shape_cast %509 : vector<16x1xi1> to vector<16x1xi1>
    %513 = vector.broadcast %512 : vector<16x1xi1> to vector<16x32xi1>
    %514 = vector.broadcast %cst_73 : f32 to vector<16x32xf32>
    %515 = arith.select %513, %492, %514 : vector<16x32xi1>, vector<16x32xf32>
    %516 = arith.maximumf %464, %515 : vector<16x32xf32>
    %cst_74 = arith.constant 0.000000e+00 : f32
    %517 = vector.shape_cast %511 : vector<16x1xi1> to vector<16x1xi1>
    %518 = vector.broadcast %517 : vector<16x1xi1> to vector<16x32xi1>
    %519 = vector.broadcast %cst_74 : f32 to vector<16x32xf32>
    %520 = arith.select %518, %507, %519 : vector<16x32xi1>, vector<16x32xf32>
    %521 = arith.maximumf %469, %520 : vector<16x32xf32>
    %522 = vector.extract_strided_slice %516 {offsets = [0, 0], sizes = [8, 32], strides = [1, 1]} : vector<16x32xf32> to vector<8x32xf32>
    %523 = vector.extract_strided_slice %521 {offsets = [0, 0], sizes = [8, 32], strides = [1, 1]} : vector<16x32xf32> to vector<8x32xf32>
    %524 = tpu.concatenate %522, %523 in 1 : vector<8x32xf32>, vector<8x32xf32> -> vector<8x64xf32>
    %525 = vector.extract_strided_slice %516 {offsets = [8, 0], sizes = [8, 32], strides = [1, 1]} : vector<16x32xf32> to vector<8x32xf32>
    %526 = vector.extract_strided_slice %521 {offsets = [8, 0], sizes = [8, 32], strides = [1, 1]} : vector<16x32xf32> to vector<8x32xf32>
    %527 = tpu.concatenate %525, %526 in 1 : vector<8x32xf32>, vector<8x32xf32> -> vector<8x64xf32>
    %528 = arith.subf %524, %527 : vector<8x64xf32>
    %529 = math.absf %528 : vector<8x64xf32>
    %530 = arith.mulf %524, %527 : vector<8x64xf32>
    %531 = tpu.concatenate %524, %527, %529, %530 in 1 : vector<8x64xf32>, vector<8x64xf32>, vector<8x64xf32>, vector<8x64xf32> -> vector<8x256xf32>
    %532 = arith.truncf %531 : vector<8x256xf32> to vector<8x256xbf16>
    %c0_75 = arith.constant 0 : index
    %c0_76 = arith.constant 0 : index
    %533 = vector.load %arg8[%c0_75, %c0_76] : memref<256x64xf32, #tpu.memory_space<vmem>>, vector<256x64xf32>
    %534 = arith.truncf %533 : vector<256x64xf32> to vector<256x64xbf16>
    %cst_77 = arith.constant dense<0.000000e+00> : vector<8x64xf32>
    %535 = tpu.matmul %532, %534, %cst_77 {dimension_numbers = #tpu.dot_dimension_numbers<[1], [0], [0], [1], [0, 0, 1, 1], [], []>} : vector<8x256xbf16>, vector<256x64xbf16>, vector<8x64xf32> -> vector<8x64xf32>
    %c0_78 = arith.constant 0 : index
    %c0_79 = arith.constant 0 : index
    %536 = vector.load %arg9[%c0_78, %c0_79] : memref<1x64xf32, #tpu.memory_space<vmem>>, vector<1x64xf32>
    %537 = vector.broadcast %536 : vector<1x64xf32> to vector<8x64xf32>
    %538 = arith.addf %535, %537 : vector<8x64xf32>
    %539 = math.tanh %538 : vector<8x64xf32>
    %540 = arith.truncf %539 : vector<8x64xf32> to vector<8x64xbf16>
    %c0_80 = arith.constant 0 : index
    %c0_81 = arith.constant 0 : index
    %541 = vector.load %arg10[%c0_80, %c0_81] : memref<64x64xf32, #tpu.memory_space<vmem>>, vector<64x64xf32>
    %542 = arith.truncf %541 : vector<64x64xf32> to vector<64x64xbf16>
    %cst_82 = arith.constant dense<0.000000e+00> : vector<8x64xf32>
    %543 = tpu.matmul %540, %542, %cst_82 {dimension_numbers = #tpu.dot_dimension_numbers<[1], [0], [0], [1], [0, 0, 1, 1], [], []>} : vector<8x64xbf16>, vector<64x64xbf16>, vector<8x64xf32> -> vector<8x64xf32>
    %c0_83 = arith.constant 0 : index
    %c0_84 = arith.constant 0 : index
    %544 = vector.load %arg11[%c0_83, %c0_84] : memref<1x64xf32, #tpu.memory_space<vmem>>, vector<1x64xf32>
    %545 = vector.broadcast %544 : vector<1x64xf32> to vector<8x64xf32>
    %546 = arith.addf %543, %545 : vector<8x64xf32>
    %547 = math.tanh %546 : vector<8x64xf32>
    %548 = arith.truncf %547 : vector<8x64xf32> to vector<8x64xbf16>
    %c0_85 = arith.constant 0 : index
    %c0_86 = arith.constant 0 : index
    %549 = vector.load %arg12[%c0_85, %c0_86] : memref<64x3xf32, #tpu.memory_space<vmem>>, vector<64x3xf32>
    %550 = arith.truncf %549 : vector<64x3xf32> to vector<64x3xbf16>
    %cst_87 = arith.constant dense<0.000000e+00> : vector<8x3xf32>
    %551 = tpu.matmul %548, %550, %cst_87 {dimension_numbers = #tpu.dot_dimension_numbers<[1], [0], [0], [1], [0, 0, 1, 1], [], []>} : vector<8x64xbf16>, vector<64x3xbf16>, vector<8x3xf32> -> vector<8x3xf32>
    %c0_88 = arith.constant 0 : index
    %c0_89 = arith.constant 0 : index
    %552 = vector.load %arg13[%c0_88, %c0_89] : memref<1x3xf32, #tpu.memory_space<vmem>>, vector<1x3xf32>
    %553 = vector.broadcast %552 : vector<1x3xf32> to vector<8x3xf32>
    %554 = arith.addf %551, %553 : vector<8x3xf32>
    %c0_90 = arith.constant 0 : index
    %c0_91 = arith.constant 0 : index
    %555 = vector.load %arg14[%c0_90, %c0_91] : memref<8x3xf32, #tpu.memory_space<vmem>>, vector<8x3xf32>
    tpu.vector_store %arg14[%c0_90, %c0_91], %554 {strides = array<i32>} : memref<8x3xf32, #tpu.memory_space<vmem>>, vector<8x3xf32>,
    return
  }
}

</mosaic_0001>

<bundles_post_ra>
// kernel: nli_net_forward.1
= control target key start
LH: loop header
LB: loop body
LE: loop exit
PB: predicated region body
PF: predicated region fallthrough
CT: control target
= control target key end

     0   :  { %v3951_v3 = vmov 0   ;;  %vm84_vm0 = vcmask 261120   ;;  %s3936_s5 = inlined_call_operand.vmem [shape: f32[32,128], index: 5, kind: input, shape index: {}]   ;;  %s3937_s3 = inlined_call_operand.vmem [shape: f32[32,128], index: 3, kind: input, shape index: {}]   ;;  %s3938_s2 = inlined_call_operand.vmem [shape: f32[32,128], index: 2, kind: input, shape index: {}]   ;;  %s3939_s0 = inlined_call_operand.vmem [shape: f32[128,32], index: 0, kind: input, shape index: {}]   ;;  %s3940_s7 = inlined_call_operand.vmem [shape: f32[1,128], index: 7, kind: input, shape index: {}]   ;;  %s3941_s4 = inlined_call_operand.vmem [shape: f32[1,128], index: 4, kind: input, shape index: {}]   ;;  %s3942_s6 = inlined_call_operand.vmem [shape: f32[32,128], index: 6, kind: input, shape index: {}]   ;;  %s3943_s1 = inlined_call_operand.vmem [shape: s32[16,1], index: 1, kind: input, shape index: {}]   ;;  %s3944_s8 = inlined_call_operand.vmem [shape: f32[256,64], index: 8, kind: input, shape index: {}]   ;;  %s3945_s9 = inlined_call_operand.vmem [shape: f32[1,64], index: 9, kind: input, shape index: {}]   ;;  %s3946_s10 = inlined_call_operand.vmem [shape: f32[64,64], index: 10, kind: input, shape index: {}]   ;;  %s3947_s11 = inlined_call_operand.vmem [shape: f32[1,64], index: 11, kind: input, shape index: {}]   ;;  %s3948_s12 = inlined_call_operand.vmem [shape: f32[64,3], index: 12, kind: input, shape index: {}]   ;;  %s3949_s13 = inlined_call_operand.vmem [shape: f32[1,3], index: 13, kind: input, shape index: {}]   ;;  %s3950_s14 = inlined_call_operand.vmem [shape: f32[8,3], index: 14, kind: output, shape index: {}]  }
   0x1   :  { %v160_v0 = vld [vmem:[%s3936_s5 + $0x10] sm:$0xff]  ;;  %v161_v1 = vld [vmem:[%s3936_s5 + $0x18] sm:$0xff]  ;;  %2236 = vset.pattern.permute.xlu1 %v3951_v3  ;;  %2235 = vset.pattern.permute.xlu0 %v3951_v3  ;;  %v158_v10 = vld [vmem:[%s3936_s5] sm:$0xff] }
   0x2   :  { %v219_v2 = vld [vmem:[%s3937_s3 + $0x10] sm:$0xff]  ;;  %v163_v4 = vpack.c.bf16 %v161_v1, %v160_v0  ;;  %v220_v5 = vld [vmem:[%s3937_s3 + $0x18] sm:$0xff]  ;;  %2237 = vset.pattern.permute.xlu2 %v3951_v3  ;;  %v159_v11 = vld [vmem:[%s3936_s5 + $0x8] sm:$0xff] }
   0x3   :  { %v76_v6 = vld [vmem:[%s3938_s2 + $0x10] sm:$0xff]  ;;  %v77_v7 = vld [vmem:[%s3938_s2 + $0x18] sm:$0xff]  ;;  %v2613_v8 = vpack.c.bf16 %v220_v5, %v219_v2  ;;  %v217_v12 = vld [vmem:[%s3937_s3] sm:$0xff]  ;;  %v162_v13 = vpack.c.bf16 %v159_v11, %v158_v10 }
   0x4   :  { %v79_v9 = vpack.c.bf16 %v77_v7, %v76_v6  ;;  %174 = vmatpush.bf16.msra.mxu1 %v163_v4  ;;  %v218_v14 = vld [vmem:[%s3937_s3 + $0x8] sm:$0xff]  ;;  %v50_v15 = vld [vmem:[%s3939_s0] sm:$0xff]  ;;  %v52_v22 = vld [vmem:[%s3939_s0 + $0x10] sm:$0xff]  ;;  %s2516_s3 = smov 32  }
   0x5   :  { %v51_v16 = vld [vmem:[%s3939_s0 + $0x8] sm:$0xff]  ;;  %238 = vmatpush.bf16.msra.mxu2 %v2613_v8  ;;  %v2634_v17 = vpack.c.bf16 %v218_v14, %v217_v12  ;;  %v74_v18 = vld [vmem:[%s3938_s2] sm:$0xff]  ;;  %v53_v23 = vld [vmem:[%s3939_s0 + $0x18] sm:$0xff] }
   0x6   :  { %115 = vmatpush.bf16.msra.mxu0 %v79_v9  ;;  %v75_v19 = vld [vmem:[%s3938_s2 + $0x8] sm:$0xff]  ;;  %v66_v21 = vpack.c.bf16 %v51_v16, %v50_v15  ;;  %v67_v24 = vpack.c.bf16 %v53_v23, %v52_v22  ;;  %v54_v25 = vld [vmem:[%s3939_s0 + $0x20] sm:$0xff]  ;;  %v56_v28 = vld [vmem:[%s3939_s0 + $0x30] sm:$0xff] }
   0x7   :  { %v78_v20 = vpack.c.bf16 %v75_v19, %v74_v18  ;;  %v55_v26 = vld [vmem:[%s3939_s0 + $0x28] sm:$0xff]  ;;  %v57_v29 = vld [vmem:[%s3939_s0 + $0x38] sm:$0xff]  ;;  %v225_v31 = vld [vmem:[%s3942_s6 + $0x10] sm:$0xff] }
   0x8   :  { %175 = vmatpush.bf16.msra.mxu1 %v162_v13  ;;  %v68_v27 = vpack.c.bf16 %v55_v26, %v54_v25  ;;  %v69_v30 = vpack.c.bf16 %v57_v29, %v56_v28  ;;  %v226_v32 = vld [vmem:[%s3942_s6 + $0x18] sm:$0xff]  ;;  %v58_v34 = vld [vmem:[%s3939_s0 + $0x40] sm:$0xff]  ;;  %v59_v35 = vld [vmem:[%s3939_s0 + $0x48] sm:$0xff] }
   0x9   :  { %239 = vmatpush.bf16.msra.mxu2 %v2634_v17  ;;  %v2679_v33 = vpack.c.bf16 %v226_v32, %v225_v31  ;;  %v70_v36 = vpack.c.bf16 %v59_v35, %v58_v34  ;;  %v223_v37 = vld [vmem:[%s3942_s6] sm:$0xff]  ;;  %v224_v38 = vld [vmem:[%s3942_s6 + $0x8] sm:$0xff]  ;;  %v60_v40 = vld [vmem:[%s3939_s0 + $0x50] sm:$0xff] }
   0xa   :  { %116 = vmatpush.bf16.msra.mxu0 %v78_v20  ;;  %v2696_v39 = vpack.c.bf16 %v224_v38, %v223_v37  ;;  %v61_v41 = vld [vmem:[%s3939_s0 + $0x58] sm:$0xff]  ;;  %v62_v43 = vld [vmem:[%s3939_s0 + $0x60] sm:$0xff]  ;;  %v63_v44 = vld [vmem:[%s3939_s0 + $0x68] sm:$0xff] }
   0xb   :  { %2176 = vmatmul.msk.bf16.vlgmr.msra.gmra.mxu1 %vm84_vm0, %v66_v21  ;;  %254 = vmatpush.bf16.msra.mxu3 %v2679_v33  ;;  %v71_v42 = vpack.c.bf16 %v61_v41, %v60_v40  ;;  %v72_v45 = vpack.c.bf16 %v63_v44, %v62_v43  ;;  %v64_v46 = vld [vmem:[%s3939_s0 + $0x70] sm:$0xff]  ;;  %v65_v47 = vld [vmem:[%s3939_s0 + $0x78] sm:$0xff]  ;;  %v2734_v50 = vld [vmem:[%s3941_s4] ss:$0 sm:$0xff]  ;;  %s2515_s0 = smov 64  }
   0xc   :  { %240 = vmatmul.bf16.vlgmr.msra.gmra.mxu2 %v3951_v3  ;;  %v73_v48 = vpack.c.bf16 %v65_v47, %v64_v46 }
   0xd   :  { %461 = vmatpush.bf16.msrb.mxu2 %v2613_v8  ;;  %2168 = vmatmul.msk.bf16.vlgmr.msra.gmra.mxu0 %vm84_vm0, %v66_v21  ;;  %v2769_v21 = vld [vmem:[%s3940_s7] ss:$0 sm:$0xff] }
   0xf   :  { %255 = vmatpush.bf16.msra.mxu3 %v2696_v39 }
  0x11   :  { %462 = vmatpush.bf16.msrb.mxu2 %v2634_v17 }
  0x12   :  { %256 = vmatmul.bf16.vlgmr.msra.gmra.mxu3 %v3951_v3 }
  0x13   :  { %484 = vmatpush.bf16.msrb.mxu3 %v2679_v33 }
  0x15   :  { %695 = vmatpush.bf16.msra.mxu2 %v2613_v8 }
  0x17   :  { %485 = vmatpush.bf16.msrb.mxu3 %v2696_v39 }
  0x19   :  { %696 = vmatpush.bf16.msra.mxu2 %v2634_v17 }
  0x1b   :  { %2177 = vmatmul.msk.bf16.gmra.mxu1 %vm84_vm0, %v67_v24  ;;  %718 = vmatpush.bf16.msra.mxu3 %v2679_v33 }
  0x1d   :  { %2169 = vmatmul.msk.bf16.gmra.mxu0 %vm84_vm0, %v67_v24 }
  0x1f   :  { %719 = vmatpush.bf16.msra.mxu3 %v2696_v39 }
  0x2b   :  { %2178 = vmatmul.msk.bf16.gmra.mxu1 %vm84_vm0, %v68_v27 }
  0x2d   :  { %2170 = vmatmul.msk.bf16.gmra.mxu0 %vm84_vm0, %v68_v27 }
  0x3b   :  { %2179 = vmatmul.msk.bf16.gmra.mxu1 %vm84_vm0, %v69_v30 }
  0x3d   :  { %2171 = vmatmul.msk.bf16.gmra.mxu0 %vm84_vm0, %v69_v30 }
  0x4b   :  { %2180 = vmatmul.msk.bf16.gmra.mxu1 %vm84_vm0, %v70_v36 }
  0x4d   :  { %2172 = vmatmul.msk.bf16.gmra.mxu0 %vm84_vm0, %v70_v36 }
  0x5b   :  { %2181 = vmatmul.msk.bf16.gmra.mxu1 %vm84_vm0, %v71_v42 }
  0x5d   :  { %2173 = vmatmul.msk.bf16.gmra.mxu0 %vm84_vm0, %v71_v42 }
  0x6b   :  { %2182 = vmatmul.msk.bf16.gmra.mxu1 %vm84_vm0, %v72_v45 }
  0x6d   :  { %2174 = vmatmul.msk.bf16.gmra.mxu0 %vm84_vm0, %v72_v45 }
  0x7b   :  { %2183 = vmatmul.msk.bf16.gmra.mxu1 %vm84_vm0, %v73_v48 }
  0x7d   :  { %2175 = vmatmul.msk.bf16.gmra.mxu0 %vm84_vm0, %v73_v48 }
  0x88   :  { %v2729_v49 = vpop.f32.mrf.mxu1 }
  0x8a   :  { %v118_v51 = vpop.f32.mrf.mxu0 }
  0x8b   :  { %v119_v52 = vadd.f32 %v2734_v50, %v118_v51 }
  0x8f   :  { %v241_v53 = vpop.f32.mrf.mxu2 }
  0x90   :  { %v246_v54 = vadd.f32 %v241_v53, %v119_v52  ;;  %v2737_v55 = vpop.f32.mrf.mxu1 }
  0x92   :  { %v120_v56 = vpop.f32.mrf.mxu0  ;;  %2248 = vtanh.f32 %v246_v54  ;;  %v2184_v9 = vmul.f32 -1.442695, %v246_v54 }
  0x93   :  { %v121_v57 = vadd.f32 %v2734_v50, %v120_v56 }
  0x95   :  { %v257_v22 = vpop.f32.mrf.mxu3 }
  0x97   :  { %v243_v58 = vpop.f32.mrf.mxu2 }
  0x98   :  { %v2249_v59 = vpop.eup %2248  ;;  %v247_v60 = vadd.f32 %v243_v58, %v121_v57  ;;  %v2740_v61 = vpop.f32.mrf.mxu1 }
  0x99   :  { %308 = vrot.lane.b32.xlu0 %v2249_v59, %s2515_s0 }
  0x9a   :  { %2250 = vtanh.f32 %v247_v60  ;;  %v2185_v11 = vmul.f32 -1.442695, %v247_v60 }
  0x9b   :  { %2252 = vpow2.f32 %v2184_v9 }
  0x9c   :  { %2254 = vpow2.f32 %v2185_v11 }
  0x9d   :  { %v259_v34 = vpop.f32.mrf.mxu3 }
  0xa0   :  { %v2251_v62 = vpop.eup %2250  ;;  %v2743_v63 = vpop.f32.mrf.mxu1 }
  0xa1   :  { %310 = vrot.lane.b32.xlu0 %v2251_v62, %s2515_s0  ;;  %v2253_v12 = vpop.eup %2252 }
  0xa2   :  { %v270_v14 = vadd.f32 1.0, %v2253_v12  ;;  %v2255_v15 = vpop.eup %2254 }
  0xa3   :  { %v271_v18 = vadd.f32 1.0, %v2255_v15 }
  0xa4   :  { %2256 = vrcp.f32 %v270_v14  ;;  %vm277_vm1 = vweird.f32 %v270_v14  ;;  %v283_v32 = vand.u32 2147483648, %v270_v14  ;;  %v281_v36 = vand.u32 2147483647, %v270_v14 }
  0xa5   :  { %2258 = vrcp.f32 %v271_v18  ;;  %vm292_vm5 = vweird.f32 %v271_v18  ;;  %v298_v45 = vand.u32 2147483648, %v271_v18  ;;  %v296_v47 = vand.u32 2147483647, %v271_v18 }
  0xa6   :  { %v284_v41 = vor.u32 1.1754944e-38, %v283_v32  ;;  %vm282_vm4 = vcmp.eq.f32.partialorder %v281_v36, 8.507059e+37 }
  0xa7   :  { %v299_v53 = vor.u32 1.1754944e-38, %v298_v45  ;;  %vm297_vm8 = vcmp.eq.f32.partialorder %v296_v47, 8.507059e+37 }
  0xa8   :  { %v2746_v0 = vpop.f32.mrf.mxu1 }
  0xaa   :  { %v2257_v19 = vpop.eup %2256 }
  0xab   :  { %v273_v20 = vmul.f32 %v2257_v19, %v270_v14  ;;  %v2259_v26 = vpop.eup %2258  ;;  %vm278_vm2 = vweird.f32 %v2257_v19 }
  0xac   :  { %v288_v29 = vmul.f32 %v2259_v26, %v271_v18  ;;  %vm279_vm3 = vmor %vm277_vm1, %vm278_vm2  ;;  %vm293_vm6 = vweird.f32 %v2259_v26 }
  0xad   :  { %v274_v25 = vsub.f32 1.0, %v273_v20  ;;  %vm294_vm7 = vmor %vm292_vm5, %vm293_vm6 }
  0xae   :  { %v289_v37 = vsub.f32 1.0, %v288_v29 }
  0xaf   :  { %v275_v28 = vmul.f32 %v2257_v19, %v274_v25 }
  0xb0   :  { %v2748_v1 = vpop.f32.mrf.mxu1  ;;  %v290_v43 = vmul.f32 %v2259_v26, %v289_v37 }
  0xb1   :  { %v276_v35 = vadd.f32 %v2257_v19, %v275_v28 }
  0xb2   :  { %v291_v46 = vadd.f32 %v2259_v26, %v290_v43 }
  0xb3   :  { %v280_v42 = vsel %vm279_vm3, %v2257_v19, %v276_v35 }
  0xb4   :  { %v2774_v44 = vsel %vm282_vm4, %v284_v41, %v280_v42  ;;  %v295_v54 = vsel %vm294_vm7, %v2259_v26, %v291_v46 }
  0xb5   :  { %v2779_v56 = vsel %vm297_vm8, %v299_v53, %v295_v54  ;;  %v304_v18 = vmul.f32 0.0, %v2774_v44  ;;  %v2799_v54 = vld [vmem:[%s3943_s1 + $0x8] sm:$0xff] }
  0xb6   :  { %v305_v35 = vmul.f32 0.0, %v2779_v56  ;;  %vm413_vm2 = vcmp.gt.s32.totalorder %v2799_v54, 0  ;;  %vm415_vm4 = vcmp.gt.s32.totalorder %v2799_v54, 7 }
  0xb8   :  { %v2750_v2 = vpop.f32.mrf.mxu1 }
  0xc0   :  { %v2752_v4 = vpop.f32.mrf.mxu1 }
  0xc8   :  { %v2754_v5 = vpop.f32.mrf.mxu1 }
  0xd0   :  { %v2756_v6 = vpop.f32.mrf.mxu1 }
  0xd8   :  { %v2758_v7 = vpop.f32.mrf.mxu1 }
  0xe0   :  { %v2760_v10 = vpop.f32.mrf.mxu1 }
  0xe8   :  { %v2762_v13 = vpop.f32.mrf.mxu1 }
  0xf0   :  { %v2764_v16 = vpop.f32.mrf.mxu1 }
  0xf8   :  { %v212_v23 = vpop.f32.mrf.mxu1 }
  0xf9   :  { %v213_v24 = vadd.f32 %v2769_v21, %v212_v23 }
  0xfb   :  { %v262_v27 = vadd.f32 %v257_v22, %v213_v24 }
  0xfd   :  { %2260 = vtanh.f32 %v262_v27  ;;  %v2186_v59 = vmul.f32 -1.442695, %v262_v27 }
 0x100   :  { %v214_v30 = vpop.f32.mrf.mxu1 }
 0x101   :  { %v215_v31 = vadd.f32 %v2769_v21, %v214_v30 }
 0x103   :  { %v2261_v38 = vpop.eup %2260  ;;  %v263_v40 = vadd.f32 %v259_v34, %v215_v31 }
 0x104   :  { %382 = vrot.lane.b32.xlu1 %v2261_v38, %s2515_s0 }
 0x105   :  { %2262 = vtanh.f32 %v263_v40  ;;  %v2187_v60 = vmul.f32 -1.442695, %v263_v40 }
 0x106   :  { %2264 = vpow2.f32 %v2186_v59 }
 0x107   :  { %2266 = vpow2.f32 %v2187_v60 }
 0x10b   :  { %v2263_v48 = vpop.eup %2262  ;;  %v309_v51 = vpop.permute.xlu0 %308 }
 0x10c   :  { %v314_v52 = vmul.f32 %v309_v51, %v2774_v44  ;;  %384 = vrot.lane.b32.xlu1 %v2263_v48, %s2515_s0  ;;  %v2265_v62 = vpop.eup %2264 }
 0x10d   :  { %v344_v9 = vadd.f32 1.0, %v2265_v62  ;;  %v2267_v11 = vpop.eup %2266 }
 0x10e   :  { %318 = vrot.lane.b32.xlu2 %v314_v52, %s2516_s3  ;;  %v345_v12 = vadd.f32 1.0, %v2267_v11 }
 0x10f   :  { %2268 = vrcp.f32 %v344_v9  ;;  %v357_v28 = vand.u32 2147483648, %v344_v9  ;;  %vm351_vm10 = vweird.f32 %v344_v9  ;;  %v355_v30 = vand.u32 2147483647, %v344_v9 }
 0x110   :  { %2270 = vrcp.f32 %v345_v12  ;;  %v372_v43 = vand.u32 2147483648, %v345_v12  ;;  %vm366_vm14 = vweird.f32 %v345_v12  ;;  %v370_v45 = vand.u32 2147483647, %v345_v12 }
 0x111   :  { %v358_v36 = vor.u32 1.1754944e-38, %v357_v28  ;;  %vm356_vm12 = vcmp.eq.f32.partialorder %v355_v30, 8.507059e+37 }
 0x112   :  { %v373_v47 = vor.u32 1.1754944e-38, %v372_v43  ;;  %vm371_vm1 = vcmp.eq.f32.partialorder %v370_v45, 8.507059e+37  ;;  %v123_v43 = vpop.f32.mrf.mxu0 }
 0x113   :  { %v311_v57 = vpop.permute.xlu0 %310 }
 0x114   :  { %v315_v58 = vmul.f32 %v311_v57, %v2779_v56  ;;  %v2804_v57 = vld [vmem:[%s3943_s1] sm:$0xff] }
 0x115   :  { %v2269_v14 = vpop.eup %2268  ;;  %vm412_vm3 = vcmp.gt.s32.totalorder %v2804_v57, 0  ;;  %vm414_vm5 = vcmp.gt.s32.totalorder %v2804_v57, 7 }
 0x116   :  { %320 = vrot.lane.b32.xlu2 %v315_v58, %s2516_s3  ;;  %v347_v15 = vmul.f32 %v2269_v14, %v344_v9  ;;  %v2271_v20 = vpop.eup %2270  ;;  %vm352_vm9 = vweird.f32 %v2269_v14  ;;  %v417_v58 = vsel %vm413_vm2, 1, %v3951_v3  ;;  %v416_v59 = vsel %vm412_vm3, 1, %v3951_v3 }
 0x117   :  { %v362_v25 = vmul.f32 %v2271_v20, %v345_v12  ;;  %vm353_vm11 = vmor %vm351_vm10, %vm352_vm9  ;;  %vm367_vm13 = vweird.f32 %v2271_v20 }
 0x118   :  { %v348_v19 = vsub.f32 1.0, %v347_v15  ;;  %vm368_vm15 = vmor %vm366_vm14, %vm367_vm13 }
 0x119   :  { %v363_v27 = vsub.f32 1.0, %v362_v25  ;;  %v430_v25 = vsel %vm414_vm5, 1, %v3951_v3 }
 0x11a   :  { %v349_v24 = vmul.f32 %v2269_v14, %v348_v19  ;;  %v431_v19 = vsel %vm415_vm4, 1, %v3951_v3 }
 0x11b   :  { %v364_v34 = vmul.f32 %v2271_v20, %v363_v27 }
 0x11c   :  { %v350_v26 = vadd.f32 %v2269_v14, %v349_v24 }
 0x11d   :  { %v365_v42 = vadd.f32 %v2271_v20, %v364_v34 }
 0x11e   :  { %v354_v32 = vsel %vm353_vm11, %v2269_v14, %v350_v26 }
 0x11f   :  { %v2791_v40 = vsel %vm356_vm12, %v358_v36, %v354_v32  ;;  %v369_v46 = vsel %vm368_vm15, %v2271_v20, %v365_v42 }
 0x120   :  { %v374_v48 = vsel %vm371_vm1, %v373_v47, %v369_v46  ;;  %v378_v60 = vmul.f32 0.0, %v2791_v40  ;;  %v124_v46 = vadd.f32 %v2734_v50, %v123_v43 }
 0x121   :  { %v379_v11 = vmul.f32 0.0, %v374_v48 }
 0x168   :  { %v319_v22 = vpop.permute.xlu2 %318 }
 0x169   :  { %v2784_v23 = vadd.f32 %v319_v22, %v304_v18 }
 0x16b   :  { %2272 = vtanh.f32 %v2784_v23 }
 0x170   :  { %v321_v31 = vpop.permute.xlu2 %320 }
 0x171   :  { %v2273_v29 = vpop.eup %2272  ;;  %v2789_v37 = vadd.f32 %v321_v31, %v305_v35 }
 0x172   :  { %330 = vrot.lane.b32.xlu2 %v2273_v29, %s2515_s0 }
 0x173   :  { %2274 = vtanh.f32 %v2789_v37 }
 0x176   :  { %v383_v38 = vpop.permute.xlu1 %382 }
 0x177   :  { %v388_v41 = vmul.f32 %v383_v38, %v2791_v40 }
 0x179   :  { %392 = vrot.lane.b32.xlu0 %v388_v41, %s2516_s3  ;;  %v2275_v53 = vpop.eup %2274 }
 0x17e   :  { %v385_v51 = vpop.permute.xlu1 %384 }
 0x17f   :  { %v389_v52 = vmul.f32 %v385_v51, %v374_v48  ;;  %v125_v51 = vpop.f32.mrf.mxu0 }
 0x181   :  { %394 = vrot.lane.b32.xlu1 %v389_v52, %s2516_s3  ;;  %332 = vrot.lane.b32.xlu0 %v2275_v53, %s2515_s0  ;;  %v126_v52 = vadd.f32 %v2734_v50, %v125_v51 }
 0x189   :  { %422 = vperm.xlu1 %2236, %v417_v58   ;;  %419 = vperm.xlu0 %2235, %v416_v59  }
 0x1cc   :  { %v331_v26 = vpop.permute.xlu2 %330 }
 0x1cd   :  { %v336_v27 = vmul.f32 %v331_v26, %v2774_v44 }
 0x1eb   :  { %v393_v62 = vpop.permute.xlu0 %392 }
 0x1ec   :  { %v2813_v9 = vadd.f32 %v393_v62, %v378_v60 }
 0x1ee   :  { %2276 = vtanh.f32 %v2813_v9 }
 0x1f3   :  { %v395_v12 = vpop.permute.xlu1 %394  ;;  %v333_v18 = vpop.permute.xlu0 %332 }
 0x1f4   :  { %v2277_v14 = vpop.eup %2276  ;;  %v2816_v15 = vadd.f32 %v395_v12, %v379_v11  ;;  %v337_v28 = vmul.f32 %v333_v18, %v2779_v56 }
 0x1f5   :  { %404 = vrot.lane.b32.xlu1 %v2277_v14, %s2515_s0 }
 0x1f6   :  { %2278 = vtanh.f32 %v2816_v15 }
 0x1fb   :  { %v2824_v22 = vpop.permute.xlu1 %422  ;;  %v2826_v24 = vpop.permute.xlu0 %419 }
 0x1fc   :  { %v2279_v20 = vpop.eup %2278  ;;  %3965 = vst [vmem:[#allocation2_spill] sm:$0xff] %v2824_v22  ;;  %vm3954_vm6 = vcmp.eq.s32.totalorder %v2824_v22, 1  ;;  %vm3956_vm7 = vcmp.eq.s32.totalorder %v2826_v24, 1 }
 0x1fd   :  { %436 = vperm.xlu1 %2236, %v431_v19   ;;  %406 = vrot.lane.b32.xlu2 %v2279_v20, %s2515_s0  ;;  %3966 = vst [vmem:[#allocation3_spill] sm:$0xff] %v2826_v24  ;;  %v2835_v29 = vsel %vm3954_vm6, %v337_v28, 0.0  ;;  %v2839_v30 = vsel %vm3956_vm7, %v336_v27, 0.0 }
 0x1fe   :  { %v448_v31 = vpack.c.bf16 %v2835_v29, %v2839_v30 }
 0x205   :  { %433 = vperm.xlu2 %2237, %v430_v25  }
 0x20d   :  { %450 = vrot.lane.b32.xlu2 %v448_v31, %s2516_s3 }
 0x257   :  { %v407_v32 = vpop.permute.xlu2 %406 }
 0x258   :  { %v411_v36 = vmul.f32 %v407_v32, %v374_v48 }
 0x25f   :  { %v2844_v34 = vpop.permute.xlu2 %433 }
 0x260   :  { %vm3959_vm8 = vcmp.eq.s32.totalorder %v2844_v34, 1 }
 0x267   :  { %v405_v35 = vpop.permute.xlu1 %404  ;;  %v451_v44 = vpop.permute.xlu2 %450 }
 0x268   :  { %2188 = vmatmul.msk.bf16.vlgmr.msrb.gmra.mxu2 %vm84_vm0, %v451_v44  ;;  %v410_v56 = vmul.f32 %v405_v35, %v2791_v40 }
 0x269   :  { %929 = vmatpush.bf16.msrb.mxu2 %v2613_v8 }
 0x26a   :  { %v2856_v41 = vsel %vm3959_vm8, %v410_v56, 0.0 }
 0x26d   :  { %930 = vmatpush.bf16.msrb.mxu2 %v2634_v17 }
 0x26f   :  { %v2850_v38 = vpop.permute.xlu1 %436 }
 0x270   :  { %3967 = vst [vmem:[#allocation4_spill] sm:$0xff] %v2850_v38  ;;  %vm3958_vm9 = vcmp.eq.s32.totalorder %v2850_v38, 1 }
 0x271   :  { %v2860_v42 = vsel %vm3958_vm9, %v411_v36, 0.0 }
 0x272   :  { %v471_v40 = vpack.c.bf16 %v2860_v42, %v2856_v41 }
 0x274   :  { %473 = vrot.lane.b32.xlu0 %v471_v40, %s2516_s3 }
 0x2e6   :  { %v474_v45 = vpop.permute.xlu0 %473 }
 0x2e7   :  { %2189 = vmatmul.msk.bf16.vlgmr.msrb.gmra.mxu3 %vm84_vm0, %v474_v45 }
 0x2e8   :  { %952 = vmatpush.bf16.msrb.mxu3 %v2679_v33 }
 0x2eb   :  { %v464_v47 = vpop.f32.mrf.mxu2 }
 0x2ec   :  { %v469_v48 = vadd.f32 %v464_v47, %v124_v46  ;;  %953 = vmatpush.bf16.msrb.mxu3 %v2696_v39  ;;  %v208_v46 = vadd.f32 %v2769_v21, %v2762_v13 }
 0x2ee   :  { %2280 = vtanh.f32 %v469_v48  ;;  %v2190_v62 = vmul.f32 -1.442695, %v469_v48 }
 0x2f3   :  { %v466_v53 = vpop.f32.mrf.mxu2 }
 0x2f4   :  { %v2281_v58 = vpop.eup %2280  ;;  %v470_v59 = vadd.f32 %v466_v53, %v126_v52  ;;  %v210_v53 = vadd.f32 %v2769_v21, %v2764_v16 }
 0x2f5   :  { %538 = vrot.lane.b32.xlu1 %v2281_v58, %s2515_s0 }
 0x2f6   :  { %2282 = vtanh.f32 %v470_v59  ;;  %v2191_v14 = vmul.f32 -1.442695, %v470_v59 }
 0x2f7   :  { %2284 = vpow2.f32 %v2190_v62 }
 0x2fc   :  { %v2283_v60 = vpop.eup %2282 }
 0x2fd   :  { %540 = vrot.lane.b32.xlu2 %v2283_v60, %s2515_s0  ;;  %v2285_v11 = vpop.eup %2284 }
 0x2fe   :  { %v500_v12 = vadd.f32 1.0, %v2285_v11 }
 0x300   :  { %2286 = vrcp.f32 %v500_v12  ;;  %v513_v31 = vand.u32 2147483648, %v500_v12  ;;  %vm507_vm11 = vweird.f32 %v500_v12  ;;  %v511_v32 = vand.u32 2147483647, %v500_v12 }
 0x301   :  { %2288 = vpow2.f32 %v2191_v14 }
 0x302   :  { %v514_v56 = vor.u32 1.1754944e-38, %v513_v31  ;;  %vm512_vm13 = vcmp.eq.f32.partialorder %v511_v32, 8.507059e+37 }
 0x306   :  { %v2287_v18 = vpop.eup %2286 }
 0x307   :  { %v503_v19 = vmul.f32 %v2287_v18, %v500_v12  ;;  %v2289_v20 = vpop.eup %2288  ;;  %vm508_vm10 = vweird.f32 %v2287_v18 }
 0x308   :  { %v501_v26 = vadd.f32 1.0, %v2289_v20  ;;  %vm509_vm12 = vmor %vm507_vm11, %vm508_vm10 }
 0x309   :  { %v504_v25 = vsub.f32 1.0, %v503_v19 }
 0x30a   :  { %2290 = vrcp.f32 %v501_v26  ;;  %v528_v62 = vand.u32 2147483648, %v501_v26  ;;  %vm522_vm15 = vweird.f32 %v501_v26  ;;  %v526_v12 = vand.u32 2147483647, %v501_v26 }
 0x30b   :  { %v505_v27 = vmul.f32 %v2287_v18, %v504_v25 }
 0x30c   :  { %vm527_vm2 = vcmp.eq.f32.partialorder %v526_v12, 8.507059e+37 }
 0x30d   :  { %v506_v28 = vadd.f32 %v2287_v18, %v505_v27  ;;  %v2889_v27 = vsel %vm3956_vm7, %v2784_v23, 0.0 }
 0x30f   :  { %v510_v44 = vsel %vm509_vm12, %v2287_v18, %v506_v28  ;;  %v529_v18 = vor.u32 1.1754944e-38, %v528_v62 }
 0x310   :  { %v2291_v35 = vpop.eup %2290  ;;  %v2872_v43 = vsel %vm512_vm13, %v514_v56, %v510_v44 }
 0x311   :  { %v518_v36 = vmul.f32 %v2291_v35, %v501_v26  ;;  %vm523_vm14 = vweird.f32 %v2291_v35  ;;  %v534_v31 = vmul.f32 %v2872_v43, %v2889_v27 }
 0x312   :  { %vm524_vm1 = vmor %vm522_vm15, %vm523_vm14  ;;  %vm642_vm14 = vcmp.gt.s32.totalorder %v2804_v57, 1 }
 0x313   :  { %v519_v47 = vsub.f32 1.0, %v518_v36 }
 0x315   :  { %v520_v52 = vmul.f32 %v2291_v35, %v519_v47 }
 0x317   :  { %v521_v58 = vadd.f32 %v2291_v35, %v520_v52 }
 0x319   :  { %v525_v13 = vsel %vm524_vm1, %v2291_v35, %v521_v58  ;;  %vm645_vm1 = vcmp.gt.s32.totalorder %v2799_v54, 6 }
 0x31a   :  { %v2881_v19 = vsel %vm527_vm2, %v529_v18, %v525_v13  ;;  %vm644_vm2 = vcmp.gt.s32.totalorder %v2804_v57, 6 }
 0x357   :  { %v541_v14 = vpop.permute.xlu2 %540 }
 0x358   :  { %v545_v16 = vmul.f32 %v541_v14, %v2881_v19 }
 0x367   :  { %v539_v40 = vpop.permute.xlu1 %538 }
 0x368   :  { %v544_v45 = vmul.f32 %v539_v40, %v2872_v43 }
 0x36a   :  { %v487_v48 = vpop.f32.mrf.mxu3  ;;  %548 = vrot.lane.b32.xlu2 %v544_v45, %s2516_s3 }
 0x36b   :  { %v492_v51 = vadd.f32 %v487_v48, %v208_v46 }
 0x36d   :  { %2292 = vtanh.f32 %v492_v51  ;;  %v2192_v25 = vmul.f32 -1.442695, %v492_v51 }
 0x372   :  { %v489_v59 = vpop.f32.mrf.mxu3 }
 0x373   :  { %v2293_v60 = vpop.eup %2292  ;;  %v493_v11 = vadd.f32 %v489_v59, %v210_v53 }
 0x374   :  { %612 = vrot.lane.b32.xlu0 %v2293_v60, %s2515_s0 }
 0x375   :  { %2294 = vtanh.f32 %v493_v11  ;;  %v2193_v26 = vmul.f32 -1.442695, %v493_v11 }
 0x376   :  { %2296 = vpow2.f32 %v2192_v25 }
 0x377   :  { %2298 = vpow2.f32 %v2193_v26  ;;  %v2905_v26 = vsel %vm3954_vm6, %v2789_v37, 0.0 }
 0x37b   :  { %v2295_v20 = vpop.eup %2294 }
 0x37c   :  { %614 = vrot.lane.b32.xlu1 %v2295_v20, %s2515_s0  ;;  %550 = vrot.lane.b32.xlu0 %v545_v16, %s2516_s3  ;;  %v2297_v28 = vpop.eup %2296 }
 0x37d   :  { %v574_v44 = vadd.f32 1.0, %v2297_v28  ;;  %v2299_v56 = vpop.eup %2298 }
 0x37e   :  { %v575_v40 = vadd.f32 1.0, %v2299_v56 }
 0x37f   :  { %v587_v58 = vand.u32 2147483648, %v574_v44  ;;  %vm581_vm4 = vweird.f32 %v574_v44  ;;  %v585_v59 = vand.u32 2147483647, %v574_v44 }
 0x380   :  { %v602_v16 = vand.u32 2147483648, %v575_v40  ;;  %vm596_vm12 = vweird.f32 %v575_v40  ;;  %v600_v20 = vand.u32 2147483647, %v575_v40 }
 0x381   :  { %v588_v11 = vor.u32 1.1754944e-38, %v587_v58  ;;  %vm586_vm10 = vcmp.eq.f32.partialorder %v585_v59, 8.507059e+37  ;;  %v660_v58 = vsel %vm644_vm2, 1, %v3951_v3 }
 0x382   :  { %v603_v28 = vor.u32 1.1754944e-38, %v602_v16  ;;  %vm601_vm15 = vcmp.eq.f32.partialorder %v600_v20, 8.507059e+37 }
 0x3c4   :  { %v549_v32 = vpop.permute.xlu2 %548 }
 0x3c5   :  { %v2893_v35 = vadd.f32 %v549_v32, %v534_v31  ;;  %v535_v31 = vmul.f32 %v2881_v19, %v2905_v26 }
 0x3c7   :  { %2300 = vtanh.f32 %v2893_v35 }
 0x3c8   :  { %2302 = vrcp.f32 %v574_v44 }
 0x3c9   :  { %2304 = vrcp.f32 %v575_v40 }
 0x3cd   :  { %v2301_v36 = vpop.eup %2300 }
 0x3ce   :  { %560 = vrot.lane.b32.xlu0 %v2301_v36, %s2515_s0  ;;  %v2303_v45 = vpop.eup %2302  ;;  %v646_v36 = vsel %vm642_vm14, 1, %v3951_v3 }
 0x3cf   :  { %v577_v23 = vmul.f32 %v2303_v45, %v574_v44  ;;  %v2305_v47 = vpop.eup %2304  ;;  %vm582_vm3 = vweird.f32 %v2303_v45 }
 0x3d0   :  { %v592_v51 = vmul.f32 %v2305_v47, %v575_v40  ;;  %vm583_vm5 = vmor %vm581_vm4, %vm582_vm3  ;;  %vm597_vm11 = vweird.f32 %v2305_v47  ;;  %vm643_vm3 = vcmp.gt.s32.totalorder %v2799_v54, 1 }
 0x3d1   :  { %v578_v46 = vsub.f32 1.0, %v577_v23  ;;  %vm598_vm13 = vmor %vm596_vm12, %vm597_vm11  ;;  %v661_v23 = vsel %vm645_vm1, 1, %v3951_v3 }
 0x3d2   :  { %v593_v53 = vsub.f32 1.0, %v592_v51 }
 0x3d3   :  { %v579_v48 = vmul.f32 %v2303_v45, %v578_v46  ;;  %v2920_v46 = vsel %vm3958_vm9, %v2816_v15, 0.0 }
 0x3d4   :  { %v594_v62 = vmul.f32 %v2305_v47, %v593_v53  ;;  %v2931_v53 = vsel %vm3959_vm8, %v2813_v9, 0.0 }
 0x3d5   :  { %v580_v52 = vadd.f32 %v2303_v45, %v579_v48 }
 0x3d6   :  { %v595_v18 = vadd.f32 %v2305_v47, %v594_v62 }
 0x3d7   :  { %v584_v60 = vsel %vm583_vm5, %v2303_v45, %v580_v52 }
 0x3d8   :  { %v2897_v13 = vsel %vm586_vm10, %v588_v11, %v584_v60  ;;  %v599_v25 = vsel %vm598_vm13, %v2305_v47, %v595_v18  ;;  %v647_v11 = vsel %vm643_vm3, 1, %v3951_v3 }
 0x3d9   :  { %v604_v32 = vsel %vm601_vm15, %v603_v28, %v599_v25  ;;  %v608_v15 = vmul.f32 %v2897_v13, %v2931_v53 }
 0x3da   :  { %v609_v47 = vmul.f32 %v604_v32, %v2920_v46 }
 0x3e6   :  { %v613_v12 = vpop.permute.xlu0 %612 }
 0x3e7   :  { %v618_v14 = vmul.f32 %v613_v12, %v2897_v13 }
 0x3e9   :  { %622 = vrot.lane.b32.xlu1 %v618_v14, %s2516_s3 }
 0x3ee   :  { %v615_v44 = vpop.permute.xlu1 %614  ;;  %v551_v56 = vpop.permute.xlu0 %550 }
 0x3ef   :  { %v619_v40 = vmul.f32 %v615_v44, %v604_v32  ;;  %v2910_v45 = vadd.f32 %v551_v56, %v535_v31 }
 0x3f1   :  { %2306 = vtanh.f32 %v2910_v45  ;;  %649 = vperm.xlu1 %2236, %v646_v36   ;;  %624 = vrot.lane.b32.xlu2 %v619_v40, %s2516_s3 }
 0x3f7   :  { %v2307_v37 = vpop.eup %2306 }
 0x3f9   :  { %562 = vrot.lane.b32.xlu1 %v2307_v37, %s2515_s0 }
 0x401   :  { %666 = vperm.xlu1 %2236, %v661_v23  }
 0x440   :  { %v561_v12 = vpop.permute.xlu0 %560 }
 0x441   :  { %v2946_v16 = vmul.f32 %v561_v12, %v2872_v43 }
 0x44b   :  { %v625_v48 = vpop.permute.xlu2 %624 }
 0x44c   :  { %v2923_v51 = vadd.f32 %v625_v48, %v609_v47  ;;  %v128_v48 = vpop.f32.mrf.mxu0 }
 0x44e   :  { %2308 = vtanh.f32 %v2923_v51 }
 0x454   :  { %v2309_v52 = vpop.eup %2308 }
 0x455   :  { %636 = vrot.lane.b32.xlu0 %v2309_v52, %s2515_s0  ;;  %v129_v52 = vadd.f32 %v2734_v50, %v128_v48 }
 0x45b   :  { %v623_v59 = vpop.permute.xlu1 %622 }
 0x45c   :  { %v2936_v60 = vadd.f32 %v623_v59, %v608_v15  ;;  %v130_v59 = vpop.f32.mrf.mxu0 }
 0x45d   :  { %663 = vperm.xlu0 %2235, %v660_v58  }
 0x45e   :  { %2310 = vtanh.f32 %v2936_v60 }
 0x463   :  { %v2942_v9 = vpop.permute.xlu1 %649 }
 0x464   :  { %v2311_v62 = vpop.eup %2310  ;;  %vm3961_vm4 = vcmp.eq.s32.totalorder %v2942_v9, 1 }
 0x465   :  { %634 = vrot.lane.b32.xlu2 %v2311_v62, %s2515_s0  ;;  %v2958_v31 = vsel %vm3961_vm4, %v2946_v16, %v2839_v30  ;;  %v131_v62 = vadd.f32 %v2734_v50, %v130_v59 }
 0x46b   :  { %v563_v18 = vpop.permute.xlu1 %562 }
 0x46c   :  { %v2949_v20 = vmul.f32 %v563_v18, %v2881_v19 }
 0x46d   :  { %652 = vperm.xlu2 %2237, %v647_v11  }
 0x473   :  { %v2969_v44 = vpop.permute.xlu1 %666 }
 0x474   :  { %vm3962_vm10 = vcmp.eq.s32.totalorder %v2969_v44, 1 }
 0x4bf   :  { %v635_v14 = vpop.permute.xlu2 %634 }
 0x4c0   :  { %v2974_v36 = vmul.f32 %v635_v14, %v2897_v13 }
 0x4c7   :  { %v2951_v25 = vpop.permute.xlu2 %652  ;;  %v637_v28 = vpop.permute.xlu0 %636 }
 0x4c8   :  { %vm3960_vm5 = vcmp.eq.s32.totalorder %v2951_v25, 1  ;;  %v2971_v56 = vmul.f32 %v637_v28, %v604_v32  ;;  %v203_v28 = vadd.f32 %v2769_v21, %v2758_v7 }
 0x4c9   :  { %v2964_v43 = vsel %vm3960_vm5, %v2949_v20, %v2835_v29 }
 0x4ca   :  { %v682_v19 = vpack.c.bf16 %v2964_v43, %v2958_v31  ;;  %v2990_v32 = vsel %vm3962_vm10, %v2971_v56, %v2860_v42 }
 0x4cc   :  { %684 = vrot.lane.b32.xlu2 %v682_v19, %s2516_s3 }
 0x4cf   :  { %v2976_v40 = vpop.permute.xlu0 %663 }
 0x4d0   :  { %vm3963_vm11 = vcmp.eq.s32.totalorder %v2976_v40, 1 }
 0x4d1   :  { %v2984_v37 = vsel %vm3963_vm11, %v2974_v36, %v2856_v41 }
 0x4d2   :  { %v705_v13 = vpack.c.bf16 %v2990_v32, %v2984_v37 }
 0x4d4   :  { %707 = vrot.lane.b32.xlu0 %v705_v13, %s2516_s3 }
 0x526   :  { %v685_v23 = vpop.permute.xlu2 %684 }
 0x527   :  { %2194 = vmatmul.msk.bf16.vlgmr.msra.gmra.mxu2 %vm84_vm0, %v685_v23  ;;  %v205_v23 = vadd.f32 %v2769_v21, %v2760_v10 }
 0x528   :  { %1163 = vmatpush.bf16.msra.mxu2 %v2613_v8 }
 0x52c   :  { %1164 = vmatpush.bf16.msra.mxu2 %v2634_v17 }
 0x546   :  { %v708_v47 = vpop.permute.xlu0 %707 }
 0x547   :  { %2195 = vmatmul.msk.bf16.vlgmr.msra.gmra.mxu3 %vm84_vm0, %v708_v47 }
 0x548   :  { %1186 = vmatpush.bf16.msra.mxu3 %v2679_v33 }
 0x54c   :  { %1187 = vmatpush.bf16.msra.mxu3 %v2696_v39 }
 0x5aa   :  { %v698_v15 = vpop.f32.mrf.mxu2 }
 0x5ab   :  { %v703_v58 = vadd.f32 %v698_v15, %v129_v52 }
 0x5ad   :  { %2312 = vtanh.f32 %v703_v58  ;;  %v2196_v7 = vmul.f32 -1.442695, %v703_v58 }
 0x5b2   :  { %v700_v11 = vpop.f32.mrf.mxu2 }
 0x5b3   :  { %v2313_v12 = vpop.eup %2312  ;;  %v704_v14 = vadd.f32 %v700_v11, %v131_v62 }
 0x5b4   :  { %772 = vrot.lane.b32.xlu1 %v2313_v12, %s2515_s0 }
 0x5b5   :  { %2314 = vtanh.f32 %v704_v14  ;;  %v2197_v15 = vmul.f32 -1.442695, %v704_v14 }
 0x5bb   :  { %v2315_v18 = vpop.eup %2314 }
 0x5bc   :  { %774 = vrot.lane.b32.xlu2 %v2315_v18, %s2515_s0 }
 0x5ca   :  { %v721_v19 = vpop.f32.mrf.mxu3 }
 0x5cb   :  { %v726_v13 = vadd.f32 %v721_v19, %v203_v28 }
 0x5cd   :  { %2316 = vtanh.f32 %v726_v13 }
 0x5d2   :  { %v723_v47 = vpop.f32.mrf.mxu3 }
 0x5d3   :  { %v2317_v50 = vpop.eup %2316  ;;  %v727_v48 = vadd.f32 %v723_v47, %v205_v23 }
 0x5d4   :  { %846 = vrot.lane.b32.xlu0 %v2317_v50, %s2515_s0 }
 0x5d5   :  { %2318 = vtanh.f32 %v727_v48 }
 0x5d6   :  { %2320 = vpow2.f32 %v2197_v15 }
 0x5db   :  { %v2319_v52 = vpop.eup %2318 }
 0x5dc   :  { %848 = vrot.lane.b32.xlu1 %v2319_v52, %s2515_s0  ;;  %v2321_v59 = vpop.eup %2320 }
 0x5dd   :  { %v735_v62 = vadd.f32 1.0, %v2321_v59 }
 0x5df   :  { %2322 = vrcp.f32 %v735_v62  ;;  %v762_v47 = vand.u32 2147483648, %v735_v62  ;;  %vm756_vm13 = vweird.f32 %v735_v62  ;;  %v760_v50 = vand.u32 2147483647, %v735_v62 }
 0x5e0   :  { %2324 = vpow2.f32 %v2196_v7 }
 0x5e1   :  { %v763_v15 = vor.u32 1.1754944e-38, %v762_v47  ;;  %vm761_vm15 = vcmp.eq.f32.partialorder %v760_v50, 8.507059e+37 }
 0x5e5   :  { %v2323_v11 = vpop.eup %2322 }
 0x5e6   :  { %v2325_v12 = vpop.eup %2324  ;;  %v752_v18 = vmul.f32 %v2323_v11, %v735_v62  ;;  %vm757_vm12 = vweird.f32 %v2323_v11  ;;  %v2199_v62 = vmul.f32 -1.442695, %v727_v48 }
 0x5e7   :  { %v734_v10 = vadd.f32 1.0, %v2325_v12  ;;  %vm758_vm14 = vmor %vm756_vm13, %vm757_vm12 }
 0x5e8   :  { %v753_v21 = vsub.f32 1.0, %v752_v18  ;;  %v2198_v18 = vmul.f32 -1.442695, %v726_v13 }
 0x5e9   :  { %2326 = vrcp.f32 %v734_v10  ;;  %v747_v3 = vand.u32 2147483648, %v734_v10  ;;  %vm741_vm2 = vweird.f32 %v734_v10 }
 0x5ea   :  { %v754_v28 = vmul.f32 %v2323_v11, %v753_v21  ;;  %2328 = vpow2.f32 %v2198_v18 }
 0x5eb   :  { %v748_v50 = vor.u32 1.1754944e-38, %v747_v3  ;;  %2330 = vpow2.f32 %v2199_v62 }
 0x5ec   :  { %v755_v19 = vadd.f32 %v2323_v11, %v754_v28 }
 0x5ee   :  { %v759_v14 = vsel %vm758_vm14, %v2323_v11, %v755_v19  ;;  %v745_v11 = vand.u32 2147483647, %v734_v10 }
 0x5ef   :  { %v2327_v23 = vpop.eup %2326  ;;  %v3011_v59 = vsel %vm761_vm15, %v763_v15, %v759_v14 }
 0x5f0   :  { %v737_v52 = vmul.f32 %v2327_v23, %v734_v10  ;;  %vm742_vm1 = vweird.f32 %v2327_v23  ;;  %v2329_v19 = vpop.eup %2328  ;;  %vm746_vm12 = vcmp.eq.f32.partialorder %v745_v11, 8.507059e+37 }
 0x5f1   :  { %vm743_vm3 = vmor %vm741_vm2, %vm742_vm1  ;;  %v808_v14 = vadd.f32 1.0, %v2329_v19 }
 0x5f2   :  { %v738_v12 = vsub.f32 1.0, %v737_v52 }
 0x5f3   :  { %2332 = vrcp.f32 %v808_v14  ;;  %v821_v62 = vand.u32 2147483648, %v808_v14  ;;  %vm815_vm14 = vweird.f32 %v808_v14  ;;  %v819_v11 = vand.u32 2147483647, %v808_v14 }
 0x5f4   :  { %v739_v21 = vmul.f32 %v2327_v23, %v738_v12 }
 0x5f5   :  { %vm820_vm1 = vcmp.eq.f32.partialorder %v819_v11, 8.507059e+37 }
 0x5f6   :  { %v740_v28 = vadd.f32 %v2327_v23, %v739_v21 }
 0x5f8   :  { %v744_v47 = vsel %vm743_vm3, %v2327_v23, %v740_v28 }
 0x5f9   :  { %v3015_v15 = vsel %vm746_vm12, %v748_v50, %v744_v47  ;;  %v822_v50 = vor.u32 1.1754944e-38, %v821_v62 }
 0x616   :  { %v775_v58 = vpop.permute.xlu2 %774 }
 0x617   :  { %v779_v7 = vmul.f32 %v775_v58, %v3011_v59  ;;  %v2331_v58 = vpop.eup %2330 }
 0x618   :  { %v2333_v48 = vpop.eup %2332 }
 0x619   :  { %784 = vrot.lane.b32.xlu0 %v779_v7, %s2516_s3  ;;  %v809_v7 = vadd.f32 1.0, %v2331_v58  ;;  %v811_v10 = vmul.f32 %v2333_v48, %v808_v14  ;;  %vm816_vm13 = vweird.f32 %v2333_v48 }
 0x61a   :  { %vm817_vm15 = vmor %vm815_vm14, %vm816_vm13  ;;  %vm876_vm13 = vcmp.gt.s32.totalorder %v2804_v57, 2 }
 0x61b   :  { %2334 = vrcp.f32 %v809_v7  ;;  %v812_v12 = vsub.f32 1.0, %v811_v10  ;;  %vm830_vm3 = vweird.f32 %v809_v7 }
 0x61d   :  { %v813_v23 = vmul.f32 %v2333_v48, %v812_v12  ;;  %v836_v12 = vand.u32 2147483648, %v809_v7 }
 0x61f   :  { %v814_v21 = vadd.f32 %v2333_v48, %v813_v23  ;;  %v834_v23 = vand.u32 2147483647, %v809_v7  ;;  %v837_v14 = vor.u32 1.1754944e-38, %v836_v12 }
 0x621   :  { %v2335_v18 = vpop.eup %2334  ;;  %v818_v19 = vsel %vm817_vm15, %v2333_v48, %v814_v21  ;;  %vm835_vm14 = vcmp.eq.f32.partialorder %v834_v23, 8.507059e+37  ;;  %vm879_vm15 = vcmp.gt.s32.totalorder %v2799_v54, 5 }
 0x622   :  { %v826_v3 = vmul.f32 %v2335_v18, %v809_v7  ;;  %vm831_vm2 = vweird.f32 %v2335_v18  ;;  %v3033_v7 = vsel %vm3961_vm4, %v2893_v35, %v2889_v27 }
 0x623   :  { %vm832_vm12 = vmor %vm830_vm3, %vm831_vm2  ;;  %vm877_vm2 = vcmp.gt.s32.totalorder %v2799_v54, 2 }
 0x624   :  { %v827_v28 = vsub.f32 1.0, %v826_v3 }
 0x626   :  { %v773_v13 = vpop.permute.xlu1 %772  ;;  %v828_v47 = vmul.f32 %v2335_v18, %v827_v28  ;;  %v3968_v28 = vmov 0  }
 0x627   :  { %v778_v52 = vmul.f32 %v773_v13, %v3015_v15  ;;  %v880_v62 = vsel %vm876_vm13, 1, %v3968_v28  ;;  %v895_v12 = vsel %vm879_vm15, 1, %v3968_v28 }
 0x628   :  { %v829_v10 = vadd.f32 %v2335_v18, %v828_v47 }
 0x629   :  { %782 = vrot.lane.b32.xlu2 %v778_v52, %s2516_s3  ;;  %v3019_v52 = vsel %vm820_vm1, %v822_v50, %v818_v19  ;;  %v3044_v50 = vsel %vm3960_vm5, %v2910_v45, %v2905_v26  ;;  %v3059_v26 = vsel %vm3962_vm10, %v2923_v51, %v2920_v46  ;;  %vm878_vm1 = vcmp.gt.s32.totalorder %v2804_v57, 5 }
 0x62a   :  { %v833_v3 = vsel %vm832_vm12, %v2335_v18, %v829_v10  ;;  %v768_v18 = vmul.f32 %v3015_v15, %v3033_v7  ;;  %v894_v51 = vsel %vm878_vm1, 1, %v3968_v28  ;;  %v881_v57 = vsel %vm877_vm2, 1, %v3968_v28 }
 0x62b   :  { %v3024_v48 = vsel %vm835_vm14, %v837_v14, %v833_v3 }
 0x62c   :  { %v843_v45 = vmul.f32 %v3024_v48, %v3059_v26 }
 0x646   :  { %v847_v13 = vpop.permute.xlu0 %846 }
 0x647   :  { %v852_v58 = vmul.f32 %v847_v13, %v3019_v52  ;;  %v769_v13 = vmul.f32 %v3011_v59, %v3044_v50 }
 0x649   :  { %856 = vrot.lane.b32.xlu1 %v852_v58, %s2516_s3 }
 0x64e   :  { %v849_v21 = vpop.permute.xlu1 %848 }
 0x64f   :  { %v853_v11 = vmul.f32 %v849_v21, %v3024_v48  ;;  %v3072_v21 = vsel %vm3963_vm11, %v2936_v60, %v2931_v53  ;;  %v674_v60 = vsel %vm3961_vm4, %v2946_v16, 0.0  ;;  %v679_v16 = vsel %vm3962_vm10, %v2971_v56, 0.0 }
 0x650   :  { %v842_v46 = vmul.f32 %v3019_v52, %v3072_v21 }
 0x651   :  { %883 = vperm.xlu1 %2236, %v880_v62   ;;  %858 = vrot.lane.b32.xlu2 %v853_v11, %s2516_s3 }
 0x683   :  { %v783_v19 = vpop.permute.xlu2 %782 }
 0x684   :  { %v3037_v47 = vadd.f32 %v783_v19, %v768_v18  ;;  %v444_v19 = vmax.f32 %v2839_v30, -1e+30  ;;  %v675_v30 = vsel %vm3960_vm5, %v2949_v20, 0.0 }
 0x686   :  { %2336 = vtanh.f32 %v3037_v47 }
 0x68b   :  { %v785_v58 = vpop.permute.xlu0 %784 }
 0x68c   :  { %v2337_v27 = vpop.eup %2336  ;;  %v3048_v35 = vadd.f32 %v785_v58, %v769_v13 }
 0x68d   :  { %794 = vrot.lane.b32.xlu0 %v2337_v27, %s2515_s0  ;;  %v3091_v27 = vmax.f32 %v444_v19, %v674_v60  ;;  %v446_v19 = vmax.f32 %v2856_v41, -1e+30 }
 0x68e   :  { %2338 = vtanh.f32 %v3048_v35 }
 0x694   :  { %v2339_v10 = vpop.eup %2338 }
 0x695   :  { %796 = vrot.lane.b32.xlu1 %v2339_v10, %s2515_s0 }
 0x69d   :  { %900 = vperm.xlu1 %2236, %v895_v12  }
 0x6ab   :  { %v859_v23 = vpop.permute.xlu2 %858 }
 0x6ac   :  { %v3063_v3 = vadd.f32 %v859_v23, %v843_v45  ;;  %v447_v23 = vmax.f32 %v2860_v42, -1e+30 }
 0x6ae   :  { %2340 = vtanh.f32 %v3063_v3 }
 0x6b4   :  { %v2341_v14 = vpop.eup %2340 }
 0x6b5   :  { %870 = vrot.lane.b32.xlu0 %v2341_v14, %s2515_s0 }
 0x6bb   :  { %v857_v62 = vpop.permute.xlu1 %856 }
 0x6bc   :  { %v3077_v11 = vadd.f32 %v857_v62, %v842_v46 }
 0x6bd   :  { %897 = vperm.xlu0 %2235, %v894_v51  }
 0x6be   :  { %2342 = vtanh.f32 %v3077_v11 }
 0x6c3   :  { %v3083_v53 = vpop.permute.xlu1 %883 }
 0x6c4   :  { %v2343_v18 = vpop.eup %2342  ;;  %vm888_vm3 = vcmp.eq.s32.totalorder %v3083_v53, 1 }
 0x6c5   :  { %868 = vrot.lane.b32.xlu2 %v2343_v18, %s2515_s0  ;;  %v3112_v18 = vmax.f32 %v447_v23, %v679_v16 }
 0x6cd   :  { %886 = vperm.xlu2 %2237, %v881_v57  }
 0x6ff   :  { %v795_v13 = vpop.permute.xlu0 %794 }
 0x700   :  { %v800_v58 = vmul.f32 %v795_v13, %v3015_v15  ;;  %v445_v15 = vmax.f32 %v2835_v29, -1e+30 }
 0x702   :  { %v3095_v54 = vsel %vm888_vm3, %v800_v58, 0.0  ;;  %v3116_v20 = vmax.f32 %v445_v15, %v675_v30  ;;  %v3122_v29 = vsel %vm888_vm3, %v800_v58, %v2958_v31  ;;  %v3182_v15 = vld [vmem:[%s3941_s4] ss:$0 sm:$0xff] }
 0x707   :  { %v797_v12 = vpop.permute.xlu1 %796 }
 0x708   :  { %v801_v46 = vmul.f32 %v797_v12, %v3011_v59 }
 0x70f   :  { %v3107_v14 = vpop.permute.xlu1 %900 }
 0x710   :  { %vm903_vm13 = vcmp.eq.s32.totalorder %v3107_v14, 1 }
 0x71f   :  { %v869_v45 = vpop.permute.xlu2 %868 }
 0x720   :  { %v874_v13 = vmul.f32 %v869_v45, %v3019_v52 }
 0x727   :  { %v871_v51 = vpop.permute.xlu0 %870  ;;  %v3110_v62 = vpop.permute.xlu2 %886 }
 0x728   :  { %v875_v57 = vmul.f32 %v871_v51, %v3024_v48  ;;  %vm3964_vm12 = vcmp.eq.s32.totalorder %v3110_v62, 1 }
 0x729   :  { %v3127_v42 = vsel %vm3964_vm12, %v801_v46, %v2964_v43  ;;  %v3131_v56 = vsel %vm3964_vm12, %v801_v46, 0.0  ;;  %v678_v43 = vsel %vm3963_vm11, %v2974_v36, 0.0 }
 0x72a   :  { %v3135_v59 = vsel %vm903_vm13, %v875_v57, 0.0  ;;  %v916_v48 = vpack.c.bf16 %v3127_v42, %v3122_v29  ;;  %v3152_v12 = vmax.f32 %v446_v19, %v678_v43  ;;  %v3162_v16 = vsel %vm903_vm13, %v875_v57, %v2990_v32  ;;  %v133_v32 = vpop.f32.mrf.mxu0 }
 0x72b   :  { %v134_v23 = vadd.f32 %v3182_v15, %v133_v32 }
 0x72c   :  { %918 = vrot.lane.b32.xlu2 %v916_v48, %s2516_s3 }
 0x72f   :  { %v3149_v58 = vpop.permute.xlu0 %897 }
 0x730   :  { %vm902_vm14 = vcmp.eq.s32.totalorder %v3149_v58, 1 }
 0x731   :  { %v3157_v30 = vsel %vm902_vm14, %v874_v13, %v2984_v37  ;;  %v3166_v41 = vsel %vm902_vm14, %v874_v13, 0.0 }
 0x732   :  { %v939_v36 = vpack.c.bf16 %v3162_v16, %v3157_v30  ;;  %v135_v57 = vpop.f32.mrf.mxu0 }
 0x733   :  { %v136_v48 = vadd.f32 %v3182_v15, %v135_v57 }
 0x734   :  { %941 = vrot.lane.b32.xlu0 %v939_v36, %s2516_s3 }
 0x786   :  { %v919_v45 = vpop.permute.xlu2 %918 }
 0x787   :  { %2200 = vmatmul.msk.bf16.vlgmr.msrb.gmra.mxu2 %vm84_vm0, %v919_v45  ;;  %v3191_v45 = vld [vmem:[%s3940_s7] ss:$0 sm:$0xff] }
 0x788   :  { %1373 = vmatpush.bf16.msrb.mxu2 %v2613_v8 }
 0x78c   :  { %1374 = vmatpush.bf16.msrb.mxu2 %v2634_v17 }
 0x7a6   :  { %v942_v37 = vpop.permute.xlu0 %941 }
 0x7a7   :  { %2201 = vmatmul.msk.bf16.vlgmr.msrb.gmra.mxu3 %vm84_vm0, %v942_v37  ;;  %v198_v37 = vadd.f32 %v3191_v45, %v2754_v5 }
 0x7a8   :  { %1396 = vmatpush.bf16.msrb.mxu3 %v2679_v33 }
 0x7ac   :  { %1397 = vmatpush.bf16.msrb.mxu3 %v2696_v39 }
 0x80a   :  { %v932_v46 = vpop.f32.mrf.mxu2 }
 0x80b   :  { %v937_v51 = vadd.f32 %v932_v46, %v134_v23  ;;  %v200_v46 = vadd.f32 %v3191_v45, %v2756_v6 }
 0x80d   :  { %2344 = vtanh.f32 %v937_v51  ;;  %v2202_v5 = vmul.f32 -1.442695, %v937_v51 }
 0x812   :  { %v934_v43 = vpop.f32.mrf.mxu2 }
 0x813   :  { %v2345_v19 = vpop.eup %2344  ;;  %v938_v13 = vadd.f32 %v934_v43, %v136_v48 }
 0x814   :  { %1006 = vrot.lane.b32.xlu1 %v2345_v19, %s2515_s0 }
 0x815   :  { %2346 = vtanh.f32 %v938_v13 }
 0x81b   :  { %v2347_v36 = vpop.eup %2346 }
 0x81c   :  { %1008 = vrot.lane.b32.xlu2 %v2347_v36, %s2515_s0  ;;  %v2203_v36 = vmul.f32 -1.442695, %v938_v13 }
 0x82a   :  { %v955_v32 = vpop.f32.mrf.mxu3 }
 0x82b   :  { %v960_v23 = vadd.f32 %v955_v32, %v198_v37 }
 0x82d   :  { %2348 = vtanh.f32 %v960_v23 }
 0x832   :  { %v957_v57 = vpop.f32.mrf.mxu3 }
 0x833   :  { %v2349_v48 = vpop.eup %2348  ;;  %v961_v43 = vadd.f32 %v957_v57, %v200_v46 }
 0x834   :  { %1080 = vrot.lane.b32.xlu0 %v2349_v48, %s2515_s0 }
 0x835   :  { %2350 = vtanh.f32 %v961_v43 }
 0x836   :  { %2352 = vpow2.f32 %v2203_v36 }
 0x83b   :  { %v2351_v19 = vpop.eup %2350 }
 0x83c   :  { %1082 = vrot.lane.b32.xlu1 %v2351_v19, %s2515_s0  ;;  %v2353_v52 = vpop.eup %2352 }
 0x83d   :  { %v969_v60 = vadd.f32 1.0, %v2353_v52 }
 0x83f   :  { %2354 = vrcp.f32 %v969_v60  ;;  %v996_v22 = vand.u32 2147483648, %v969_v60  ;;  %vm990_vm1 = vweird.f32 %v969_v60  ;;  %v994_v19 = vand.u32 2147483647, %v969_v60 }
 0x840   :  { %2356 = vpow2.f32 %v2202_v5 }
 0x841   :  { %v997_v52 = vor.u32 1.1754944e-38, %v996_v22  ;;  %vm995_vm6 = vcmp.eq.f32.partialorder %v994_v19, 8.507059e+37 }
 0x845   :  { %v2355_v37 = vpop.eup %2354 }
 0x846   :  { %v2357_v32 = vpop.eup %2356  ;;  %v986_v31 = vmul.f32 %v2355_v37, %v969_v60  ;;  %vm991_vm15 = vweird.f32 %v2355_v37  ;;  %v2205_v60 = vmul.f32 -1.442695, %v961_v43 }
 0x847   :  { %v968_v6 = vadd.f32 1.0, %v2357_v32  ;;  %vm992_vm2 = vmor %vm990_vm1, %vm991_vm15 }
 0x848   :  { %v987_v10 = vsub.f32 1.0, %v986_v31  ;;  %v2204_v31 = vmul.f32 -1.442695, %v960_v23 }
 0x849   :  { %2358 = vrcp.f32 %v968_v6  ;;  %v981_v38 = vand.u32 2147483648, %v968_v6  ;;  %vm975_vm15 = vweird.f32 %v968_v6 }
 0x84a   :  { %v988_v46 = vmul.f32 %v2355_v37, %v987_v10  ;;  %2360 = vpow2.f32 %v2204_v31 }
 0x84b   :  { %v982_v19 = vor.u32 1.1754944e-38, %v981_v38  ;;  %2362 = vpow2.f32 %v2205_v60 }
 0x84c   :  { %v989_v57 = vadd.f32 %v2355_v37, %v988_v46 }
 0x84e   :  { %v993_v13 = vsel %vm992_vm2, %v2355_v37, %v989_v57  ;;  %v979_v37 = vand.u32 2147483647, %v968_v6 }
 0x84f   :  { %v2359_v48 = vpop.eup %2358  ;;  %v3199_v5 = vsel %vm995_vm6, %v997_v52, %v993_v13 }
 0x850   :  { %v971_v36 = vmul.f32 %v2359_v48, %v968_v6  ;;  %vm976_vm7 = vweird.f32 %v2359_v48  ;;  %v2361_v22 = vpop.eup %2360  ;;  %vm980_vm6 = vcmp.eq.f32.partialorder %v979_v37, 8.507059e+37 }
 0x851   :  { %vm977_vm1 = vmor %vm975_vm15, %vm976_vm7  ;;  %v1042_v13 = vadd.f32 1.0, %v2361_v22 }
 0x852   :  { %v972_v32 = vsub.f32 1.0, %v971_v36  ;;  %v2363_v36 = vpop.eup %2362 }
 0x853   :  { %2364 = vrcp.f32 %v1042_v13  ;;  %v1055_v60 = vand.u32 2147483648, %v1042_v13  ;;  %vm1049_vm2 = vweird.f32 %v1042_v13  ;;  %v1053_v37 = vand.u32 2147483647, %v1042_v13 }
 0x854   :  { %v973_v10 = vmul.f32 %v2359_v48, %v972_v32 }
 0x856   :  { %v974_v46 = vadd.f32 %v2359_v48, %v973_v10 }
 0x858   :  { %v978_v57 = vsel %vm977_vm1, %v2359_v48, %v974_v46  ;;  %vm1054_vm1 = vcmp.eq.f32.partialorder %v1053_v37, 8.507059e+37 }
 0x859   :  { %v3203_v52 = vsel %vm980_vm6, %v982_v19, %v978_v57  ;;  %v2365_v43 = vpop.eup %2364  ;;  %v1056_v19 = vor.u32 1.1754944e-38, %v1055_v60 }
 0x85a   :  { %v1045_v6 = vmul.f32 %v2365_v43, %v1042_v13  ;;  %vm1050_vm7 = vweird.f32 %v2365_v43  ;;  %v2510_v13 = vld [vmem:[%s3943_s1] sm:$0xff] }
 0x85b   :  { %vm1051_vm15 = vmor %vm1049_vm2, %vm1050_vm7  ;;  %vm1110_vm7 = vcmp.gt.s32.totalorder %v2510_v13, 3 }
 0x85c   :  { %v1046_v32 = vsub.f32 1.0, %v1045_v6  ;;  %v1114_v60 = vsel %vm1110_vm7, 1, %v3968_v28 }
 0x85e   :  { %v1047_v48 = vmul.f32 %v2365_v43, %v1046_v32 }
 0x860   :  { %v1048_v10 = vadd.f32 %v2365_v43, %v1047_v48 }
 0x862   :  { %v1052_v22 = vsel %vm1051_vm15, %v2365_v43, %v1048_v10 }
 0x876   :  { %v1009_v51 = vpop.permute.xlu2 %1008 }
 0x877   :  { %v1013_v24 = vmul.f32 %v1009_v51, %v3199_v5  ;;  %v1043_v51 = vadd.f32 1.0, %v2363_v36 }
 0x879   :  { %1018 = vrot.lane.b32.xlu0 %v1013_v24, %s2516_s3  ;;  %2366 = vrcp.f32 %v1043_v51  ;;  %v1070_v32 = vand.u32 2147483648, %v1043_v51  ;;  %vm1064_vm9 = vweird.f32 %v1043_v51  ;;  %v1068_v48 = vand.u32 2147483647, %v1043_v51 }
 0x87b   :  { %v1071_v43 = vor.u32 1.1754944e-38, %v1070_v32  ;;  %vm1069_vm2 = vcmp.eq.f32.partialorder %v1068_v48, 8.507059e+37  ;;  %v2511_v32 = vld [vmem:[%s3943_s1 + $0x8] sm:$0xff] }
 0x87c   :  { %vm1111_vm15 = vcmp.gt.s32.totalorder %v2511_v32, 3 }
 0x87f   :  { %v2367_v31 = vpop.eup %2366 }
 0x880   :  { %v1060_v38 = vmul.f32 %v2367_v31, %v1043_v51  ;;  %vm1065_vm6 = vweird.f32 %v2367_v31  ;;  %v3220_v51 = vsel %vm888_vm3, %v3037_v47, %v3033_v7 }
 0x881   :  { %vm1066_vm8 = vmor %vm1064_vm9, %vm1065_vm6  ;;  %vm1112_vm9 = vcmp.gt.s32.totalorder %v2510_v13, 4  ;;  %v1115_v13 = vsel %vm1111_vm15, 1, %v3968_v28 }
 0x882   :  { %v1061_v46 = vsub.f32 1.0, %v1060_v38 }
 0x884   :  { %v1062_v57 = vmul.f32 %v2367_v31, %v1061_v46 }
 0x886   :  { %v1007_v23 = vpop.permute.xlu1 %1006  ;;  %v1063_v6 = vadd.f32 %v2367_v31, %v1062_v57 }
 0x887   :  { %v1012_v24 = vmul.f32 %v1007_v23, %v3203_v52 }
 0x888   :  { %v1067_v38 = vsel %vm1066_vm8, %v2367_v31, %v1063_v6  ;;  %v1002_v31 = vmul.f32 %v3203_v52, %v3220_v51  ;;  %vm1113_vm8 = vcmp.gt.s32.totalorder %v2511_v32, 4 }
 0x889   :  { %1016 = vrot.lane.b32.xlu2 %v1012_v24, %s2516_s3  ;;  %v3207_v24 = vsel %vm1054_vm1, %v1056_v19, %v1052_v22  ;;  %v1072_v10 = vsel %vm1069_vm2, %v1071_v43, %v1067_v38  ;;  %v3231_v19 = vsel %vm3964_vm12, %v3048_v35, %v3044_v50  ;;  %v1129_v50 = vsel %vm1113_vm8, 1, %v3968_v28 }
 0x88a   :  { %v3248_v35 = vsel %vm903_vm13, %v3063_v3, %v3059_v26  ;;  %v1128_v3 = vsel %vm1112_vm9, 1, %v3968_v28 }
 0x88b   :  { %v1077_v48 = vmul.f32 %v1072_v10, %v3248_v35 }
 0x8a6   :  { %v1081_v23 = vpop.permute.xlu0 %1080 }
 0x8a7   :  { %v1086_v36 = vmul.f32 %v1081_v23, %v3207_v24  ;;  %v1003_v23 = vmul.f32 %v3199_v5, %v3231_v19 }
 0x8a9   :  { %1090 = vrot.lane.b32.xlu1 %v1086_v36, %s2516_s3 }
 0x8ae   :  { %v1083_v46 = vpop.permute.xlu1 %1082 }
 0x8af   :  { %v1087_v37 = vmul.f32 %v1083_v46, %v1072_v10 }
 0x8b1   :  { %1117 = vperm.xlu1 %2236, %v1114_v60   ;;  %1092 = vrot.lane.b32.xlu2 %v1087_v37, %s2516_s3  ;;  %v3259_v60 = vsel %vm902_vm14, %v3077_v11, %v3072_v21 }
 0x8b2   :  { %v1076_v26 = vmul.f32 %v3207_v24, %v3259_v60 }
 0x8e3   :  { %v1017_v22 = vpop.permute.xlu2 %1016 }
 0x8e4   :  { %v3224_v57 = vadd.f32 %v1017_v22, %v1002_v31 }
 0x8e6   :  { %2368 = vtanh.f32 %v3224_v57 }
 0x8eb   :  { %v1019_v36 = vpop.permute.xlu0 %1018 }
 0x8ec   :  { %v2369_v7 = vpop.eup %2368  ;;  %v3235_v47 = vadd.f32 %v1019_v36, %v1003_v23 }
 0x8ed   :  { %1028 = vrot.lane.b32.xlu0 %v2369_v7, %s2515_s0  ;;  %v3969_v7 = vmax.f32 %v3091_v27, %v3095_v54 }
 0x8ee   :  { %2370 = vtanh.f32 %v3235_v47 }
 0x8f4   :  { %v2371_v6 = vpop.eup %2370 }
 0x8f5   :  { %1030 = vrot.lane.b32.xlu1 %v2371_v6, %s2515_s0 }
 0x8fd   :  { %1134 = vperm.xlu1 %2236, %v1129_v50  }
 0x90b   :  { %v1093_v38 = vpop.permute.xlu2 %1092 }
 0x90c   :  { %v3251_v43 = vadd.f32 %v1093_v38, %v1077_v48 }
 0x90e   :  { %2372 = vtanh.f32 %v3251_v43 }
 0x914   :  { %v2373_v46 = vpop.eup %2372 }
 0x915   :  { %1104 = vrot.lane.b32.xlu0 %v2373_v46, %s2515_s0 }
 0x91b   :  { %v1091_v37 = vpop.permute.xlu1 %1090 }
 0x91c   :  { %v3264_v31 = vadd.f32 %v1091_v37, %v1076_v26 }
 0x91d   :  { %1131 = vperm.xlu0 %2235, %v1128_v3   ;;  %v3970_v3 = vmax.f32 %v3116_v20, %v3131_v56 }
 0x91e   :  { %2374 = vtanh.f32 %v3264_v31 }
 0x923   :  { %v3269_v21 = vpop.permute.xlu1 %1117 }
 0x924   :  { %v2375_v22 = vpop.eup %2374  ;;  %vm1122_vm1 = vcmp.eq.s32.totalorder %v3269_v21, 1 }
 0x925   :  { %1102 = vrot.lane.b32.xlu2 %v2375_v22, %s2515_s0 }
 0x92d   :  { %1120 = vperm.xlu2 %2237, %v1115_v13  }
 0x95f   :  { %v1029_v11 = vpop.permute.xlu0 %1028 }
 0x960   :  { %v1034_v23 = vmul.f32 %v1029_v11, %v3203_v52 }
 0x962   :  { %v1142_v36 = vsel %vm1122_vm1, %v1034_v23, 0.0  ;;  %v3290_v27 = vsel %vm1122_vm1, %v1034_v23, %v3122_v29  ;;  %v3971_v29 = vmax.f32 %v3112_v18, %v3135_v59  ;;  %v3972_v59 = vmax.f32 %v3152_v12, %v3166_v41  ;;  %v138_v23 = vpop.f32.mrf.mxu0 }
 0x963   :  { %v3278_v6 = vmax.f32 %v3969_v7, %v1142_v36  ;;  %v139_v12 = vadd.f32 %v3182_v15, %v138_v23 }
 0x967   :  { %v1031_v50 = vpop.permute.xlu1 %1030 }
 0x968   :  { %v1035_v28 = vmul.f32 %v1031_v50, %v3199_v5 }
 0x96a   :  { %v140_v7 = vpop.f32.mrf.mxu0 }
 0x96b   :  { %v141_v50 = vadd.f32 %v3182_v15, %v140_v7 }
 0x96f   :  { %v3280_v48 = vpop.permute.xlu1 %1134 }
 0x970   :  { %vm1137_vm7 = vcmp.eq.s32.totalorder %v3280_v48, 1 }
 0x97f   :  { %v1103_v32 = vpop.permute.xlu2 %1102 }
 0x987   :  { %v1105_v38 = vpop.permute.xlu0 %1104  ;;  %v3283_v46 = vpop.permute.xlu2 %1120 }
 0x988   :  { %v1109_v52 = vmul.f32 %v1105_v38, %v1072_v10  ;;  %vm1123_vm6 = vcmp.eq.s32.totalorder %v3283_v46, 1 }
 0x989   :  { %v3295_v54 = vsel %vm1123_vm6, %v1035_v28, %v3127_v42  ;;  %v1143_v5 = vsel %vm1123_vm6, %v1035_v28, 0.0  ;;  %v1108_v42 = vmul.f32 %v1103_v32, %v3207_v24 }
 0x98a   :  { %v1147_v10 = vsel %vm1137_vm7, %v1109_v52, 0.0  ;;  %v1150_v26 = vpack.c.bf16 %v3295_v54, %v3290_v27  ;;  %v3306_v37 = vmax.f32 %v3970_v3, %v1143_v5  ;;  %v3326_v20 = vsel %vm1137_vm7, %v1109_v52, %v3162_v16 }
 0x98b   :  { %v3311_v22 = vmax.f32 %v3971_v29, %v1147_v10  ;;  %v193_v5 = vadd.f32 %v3191_v45, %v2750_v2  ;;  %v195_v3 = vadd.f32 %v3191_v45, %v2752_v4 }
 0x98c   :  { %1152 = vrot.lane.b32.xlu2 %v1150_v26, %s2516_s3 }
 0x98f   :  { %v3315_v13 = vpop.permute.xlu0 %1131 }
 0x990   :  { %vm1136_vm2 = vcmp.eq.s32.totalorder %v3315_v13, 1 }
 0x991   :  { %v3321_v11 = vsel %vm1136_vm2, %v1108_v42, %v3157_v30  ;;  %v1146_v18 = vsel %vm1136_vm2, %v1108_v42, 0.0 }
 0x992   :  { %v1173_v56 = vpack.c.bf16 %v3326_v20, %v3321_v11  ;;  %v3335_v24 = vmax.f32 %v3972_v59, %v1146_v18 }
 0x994   :  { %1175 = vrot.lane.b32.xlu0 %v1173_v56, %s2516_s3 }
 0x9e6   :  { %v1153_v30 = vpop.permute.xlu2 %1152 }
 0x9e7   :  { %2206 = vmatmul.msk.bf16.vlgmr.msra.gmra.mxu2 %vm84_vm0, %v1153_v30 }
 0x9e8   :  { %1583 = vmatpush.bf16.msra.mxu2 %v2613_v8 }
 0x9ec   :  { %1584 = vmatpush.bf16.msra.mxu2 %v2634_v17 }
 0xa06   :  { %v1176_v16 = vpop.permute.xlu0 %1175 }
 0xa07   :  { %2207 = vmatmul.msk.bf16.vlgmr.msra.gmra.mxu3 %vm84_vm0, %v1176_v16 }
 0xa08   :  { %1606 = vmatpush.bf16.msra.mxu3 %v2679_v33 }
 0xa0c   :  { %1607 = vmatpush.bf16.msra.mxu3 %v2696_v39 }
 0xa6a   :  { %v1166_v41 = vpop.f32.mrf.mxu2 }
 0xa6b   :  { %v1171_v36 = vadd.f32 %v1166_v41, %v139_v12 }
 0xa6d   :  { %2376 = vtanh.f32 %v1171_v36  ;;  %v2208_v2 = vmul.f32 -1.442695, %v1171_v36 }
 0xa72   :  { %v1168_v32 = vpop.f32.mrf.mxu2 }
 0xa73   :  { %v2377_v28 = vpop.eup %2376  ;;  %v1172_v38 = vadd.f32 %v1168_v32, %v141_v50 }
 0xa74   :  { %1240 = vrot.lane.b32.xlu1 %v2377_v28, %s2515_s0 }
 0xa75   :  { %2378 = vtanh.f32 %v1172_v38  ;;  %v2209_v59 = vmul.f32 -1.442695, %v1172_v38 }
 0xa7b   :  { %v2379_v52 = vpop.eup %2378 }
 0xa7c   :  { %1242 = vrot.lane.b32.xlu2 %v2379_v52, %s2515_s0 }
 0xa8a   :  { %v1189_v10 = vpop.f32.mrf.mxu3 }
 0xa8b   :  { %v1194_v26 = vadd.f32 %v1189_v10, %v193_v5 }
 0xa8d   :  { %2380 = vtanh.f32 %v1194_v26 }
 0xa92   :  { %v1191_v29 = vpop.f32.mrf.mxu3 }
 0xa93   :  { %v2381_v42 = vpop.eup %2380  ;;  %v1195_v18 = vadd.f32 %v1191_v29, %v195_v3 }
 0xa94   :  { %1314 = vrot.lane.b32.xlu0 %v2381_v42, %s2515_s0 }
 0xa95   :  { %2382 = vtanh.f32 %v1195_v18 }
 0xa96   :  { %2384 = vpow2.f32 %v2209_v59  ;;  %v2210_v59 = vmul.f32 -1.442695, %v1194_v26 }
 0xa9b   :  { %v2383_v56 = vpop.eup %2382 }
 0xa9c   :  { %1316 = vrot.lane.b32.xlu1 %v2383_v56, %s2515_s0  ;;  %v2385_v30 = vpop.eup %2384 }
 0xa9d   :  { %v1203_v16 = vadd.f32 1.0, %v2385_v30 }
 0xa9f   :  { %2386 = vrcp.f32 %v1203_v16  ;;  %v1230_v52 = vand.u32 2147483648, %v1203_v16  ;;  %vm1224_vm9 = vweird.f32 %v1203_v16  ;;  %v1228_v5 = vand.u32 2147483647, %v1203_v16 }
 0xaa0   :  { %2388 = vpow2.f32 %v2208_v2 }
 0xaa1   :  { %v1231_v3 = vor.u32 1.1754944e-38, %v1230_v52  ;;  %vm1229_vm5 = vcmp.eq.f32.partialorder %v1228_v5, 8.507059e+37 }
 0xaa5   :  { %v2387_v23 = vpop.eup %2386 }
 0xaa6   :  { %v2389_v12 = vpop.eup %2388  ;;  %v1220_v41 = vmul.f32 %v2387_v23, %v1203_v16  ;;  %vm1225_vm8 = vweird.f32 %v2387_v23  ;;  %v2211_v16 = vmul.f32 -1.442695, %v1195_v18 }
 0xaa7   :  { %v1202_v4 = vadd.f32 1.0, %v2389_v12  ;;  %vm1226_vm15 = vmor %vm1224_vm9, %vm1225_vm8 }
 0xaa8   :  { %v1221_v7 = vsub.f32 1.0, %v1220_v41 }
 0xaa9   :  { %2390 = vrcp.f32 %v1202_v4  ;;  %v1215_v12 = vand.u32 2147483648, %v1202_v4  ;;  %vm1209_vm8 = vweird.f32 %v1202_v4 }
 0xaaa   :  { %v1222_v50 = vmul.f32 %v2387_v23, %v1221_v7  ;;  %2392 = vpow2.f32 %v2210_v59 }
 0xaab   :  { %2394 = vpow2.f32 %v2211_v16 }
 0xaac   :  { %v1223_v32 = vadd.f32 %v2387_v23, %v1222_v50  ;;  %v1216_v50 = vor.u32 1.1754944e-38, %v1215_v12 }
 0xaae   :  { %v1227_v38 = vsel %vm1226_vm15, %v2387_v23, %v1223_v32  ;;  %v1213_v23 = vand.u32 2147483647, %v1202_v4 }
 0xaaf   :  { %v2391_v28 = vpop.eup %2390  ;;  %v3354_v29 = vsel %vm1229_vm5, %v1231_v3, %v1227_v38 }
 0xab0   :  { %v1205_v10 = vmul.f32 %v2391_v28, %v1202_v4  ;;  %vm1210_vm4 = vweird.f32 %v2391_v28  ;;  %v2393_v41 = vpop.eup %2392  ;;  %vm1214_vm5 = vcmp.eq.f32.partialorder %v1213_v23, 8.507059e+37 }
 0xab1   :  { %vm1211_vm9 = vmor %vm1209_vm8, %vm1210_vm4  ;;  %v1276_v32 = vadd.f32 1.0, %v2393_v41  ;;  %v2395_v38 = vpop.eup %2394 }
 0xab2   :  { %v1206_v56 = vsub.f32 1.0, %v1205_v10  ;;  %v1277_v10 = vadd.f32 1.0, %v2395_v38 }
 0xab3   :  { %2396 = vrcp.f32 %v1276_v32  ;;  %vm1283_vm15 = vweird.f32 %v1276_v32 }
 0xab4   :  { %v1207_v30 = vmul.f32 %v2391_v28, %v1206_v56  ;;  %2398 = vrcp.f32 %v1277_v10  ;;  %vm1298_vm10 = vweird.f32 %v1277_v10  ;;  %v1302_v38 = vand.u32 2147483647, %v1277_v10 }
 0xab6   :  { %v1208_v2 = vadd.f32 %v2391_v28, %v1207_v30  ;;  %v1289_v30 = vand.u32 2147483648, %v1276_v32  ;;  %vm1303_vm12 = vcmp.eq.f32.partialorder %v1302_v38, 8.507059e+37 }
 0xab8   :  { %v1212_v7 = vsel %vm1211_vm9, %v2391_v28, %v1208_v2  ;;  %v1287_v2 = vand.u32 2147483647, %v1276_v32  ;;  %v1290_v23 = vor.u32 1.1754944e-38, %v1289_v30 }
 0xab9   :  { %v3358_v52 = vsel %vm1214_vm5, %v1216_v50, %v1212_v7  ;;  %v2397_v18 = vpop.eup %2396 }
 0xaba   :  { %v1279_v4 = vmul.f32 %v2397_v18, %v1276_v32  ;;  %vm1284_vm4 = vweird.f32 %v2397_v18  ;;  %vm1288_vm9 = vcmp.eq.f32.partialorder %v1287_v2, 8.507059e+37 }
 0xabb   :  { %vm1285_vm8 = vmor %vm1283_vm15, %vm1284_vm4 }
 0xabc   :  { %v1280_v3 = vsub.f32 1.0, %v1279_v4 }
 0xabe   :  { %v1281_v28 = vmul.f32 %v2397_v18, %v1280_v3 }
 0xac0   :  { %v1282_v56 = vadd.f32 %v2397_v18, %v1281_v28 }
 0xac2   :  { %v1286_v12 = vsel %vm1285_vm8, %v2397_v18, %v1282_v56 }
 0xac3   :  { %v1291_v7 = vsel %vm1288_vm9, %v1290_v23, %v1286_v12 }
 0xad6   :  { %v1243_v36 = vpop.permute.xlu2 %1242 }
 0xad7   :  { %v1247_v42 = vmul.f32 %v1243_v36, %v3354_v29  ;;  %v2399_v36 = vpop.eup %2398 }
 0xad8   :  { %vm1299_vm5 = vweird.f32 %v2399_v36 }
 0xad9   :  { %1252 = vrot.lane.b32.xlu0 %v1247_v42, %s2516_s3  ;;  %v1294_v42 = vmul.f32 %v2399_v36, %v1277_v10  ;;  %vm1300_vm11 = vmor %vm1298_vm10, %vm1299_vm5 }
 0xadb   :  { %v1295_v59 = vsub.f32 1.0, %v1294_v42  ;;  %v3368_v42 = vsel %vm1122_vm1, %v3224_v57, %v3220_v51 }
 0xadc   :  { %v1236_v56 = vmul.f32 %v3358_v52, %v3368_v42 }
 0xadd   :  { %v1296_v16 = vmul.f32 %v2399_v36, %v1295_v59 }
 0xae6   :  { %v1241_v26 = vpop.permute.xlu1 %1240 }
 0xae7   :  { %v1246_v5 = vmul.f32 %v1241_v26, %v3358_v52  ;;  %v1297_v26 = vadd.f32 %v2399_v36, %v1296_v16 }
 0xae9   :  { %1250 = vrot.lane.b32.xlu2 %v1246_v5, %s2516_s3  ;;  %v1304_v5 = vand.u32 2147483648, %v1277_v10  ;;  %v1301_v4 = vsel %vm1300_vm11, %v2399_v36, %v1297_v26  ;;  %v3379_v36 = vsel %vm1123_vm6, %v3235_v47, %v3231_v19  ;;  %v3392_v19 = vsel %vm1137_vm7, %v3251_v43, %v3248_v35 }
 0xaea   :  { %v1237_v30 = vmul.f32 %v3354_v29, %v3379_v36 }
 0xaeb   :  { %v1305_v3 = vor.u32 1.1754944e-38, %v1304_v5 }
 0xaed   :  { %v1306_v32 = vsel %vm1303_vm12, %v1305_v3, %v1301_v4 }
 0xaee   :  { %v1311_v47 = vmul.f32 %v1306_v32, %v3392_v19 }
 0xb06   :  { %v1315_v41 = vpop.permute.xlu0 %1314 }
 0xb07   :  { %v1320_v50 = vmul.f32 %v1315_v41, %v1291_v7 }
 0xb09   :  { %1324 = vrot.lane.b32.xlu1 %v1320_v50, %s2516_s3  ;;  %v3403_v50 = vsel %vm1136_vm2, %v3264_v31, %v3259_v60 }
 0xb0a   :  { %v1310_v26 = vmul.f32 %v1291_v7, %v3403_v50 }
 0xb0e   :  { %v1317_v28 = vpop.permute.xlu1 %1316 }
 0xb0f   :  { %v1321_v18 = vmul.f32 %v1317_v28, %v1306_v32 }
 0xb11   :  { %1326 = vrot.lane.b32.xlu2 %v1321_v18, %s2516_s3 }
 0xb43   :  { %v1251_v59 = vpop.permute.xlu2 %1250 }
 0xb44   :  { %v3372_v10 = vadd.f32 %v1251_v59, %v1236_v56 }
 0xb46   :  { %2400 = vtanh.f32 %v3372_v10  ;;  %v3512_v21 = vsel %vm1136_vm2, %v3372_v10, %v3368_v42 }
 0xb4b   :  { %v1253_v2 = vpop.permute.xlu0 %1252 }
 0xb4c   :  { %v2401_v51 = vpop.eup %2400  ;;  %v3383_v57 = vadd.f32 %v1253_v2, %v1237_v30 }
 0xb4d   :  { %1262 = vrot.lane.b32.xlu0 %v2401_v51, %s2515_s0 }
 0xb4e   :  { %2402 = vtanh.f32 %v3383_v57 }
 0xb54   :  { %v2403_v12 = vpop.eup %2402 }
 0xb55   :  { %1264 = vrot.lane.b32.xlu1 %v2403_v12, %s2515_s0 }
 0xb6b   :  { %v1327_v16 = vpop.permute.xlu2 %1326 }
 0xb6c   :  { %v3395_v23 = vadd.f32 %v1327_v16, %v1311_v47 }
 0xb6e   :  { %2404 = vtanh.f32 %v3395_v23 }
 0xb74   :  { %v2405_v41 = vpop.eup %2404 }
 0xb75   :  { %1338 = vrot.lane.b32.xlu0 %v2405_v41, %s2515_s0 }
 0xb7b   :  { %v1325_v35 = vpop.permute.xlu1 %1324 }
 0xb7c   :  { %v3406_v43 = vadd.f32 %v1325_v35, %v1310_v26 }
 0xb7e   :  { %2406 = vtanh.f32 %v3406_v43 }
 0xb84   :  { %v2407_v5 = vpop.eup %2406 }
 0xb85   :  { %1336 = vrot.lane.b32.xlu2 %v2407_v5, %s2515_s0 }
 0xbbf   :  { %v1263_v38 = vpop.permute.xlu0 %1262 }
 0xbc0   :  { %v1268_v4 = vmul.f32 %v1263_v38, %v3358_v52 }
 0xbc2   :  { %v3413_v3 = vsel %vm1136_vm2, %v1268_v4, 0.0  ;;  %v3425_v56 = vsel %vm1136_vm2, %v1268_v4, %v3290_v27 }
 0xbc3   :  { %v1354_v60 = vmax.f32 %v3278_v6, %v3413_v3 }
 0xbc7   :  { %v1265_v31 = vpop.permute.xlu1 %1264 }
 0xbc8   :  { %v1269_v28 = vmul.f32 %v1265_v31, %v3354_v29 }
 0xbca   :  { %v3420_v18 = vsel %vm1137_vm7, %v1269_v28, 0.0  ;;  %v3430_v52 = vsel %vm1137_vm7, %v1269_v28, %v3295_v54 }
 0xbcb   :  { %v1355_v59 = vmax.f32 %v3306_v37, %v3420_v18  ;;  %v1360_v29 = vpack.c.bf16 %v3430_v52, %v3425_v56 }
 0xbcd   :  { %1362 = vrot.lane.b32.xlu1 %v1360_v29, %s2516_s3 }
 0xbdf   :  { %v1337_v30 = vpop.permute.xlu2 %1336 }
 0xbe0   :  { %v1342_v2 = vmul.f32 %v1337_v30, %v1291_v7 }
 0xbe2   :  { %v3439_v51 = vsel %vm1122_vm1, %v1342_v2, 0.0  ;;  %v3450_v16 = vsel %vm1122_vm1, %v1342_v2, %v3321_v11 }
 0xbe3   :  { %v1358_v27 = vmax.f32 %v3335_v24, %v3439_v51 }
 0xbe7   :  { %v1339_v12 = vpop.permute.xlu0 %1338 }
 0xbe8   :  { %v1343_v54 = vmul.f32 %v1339_v12, %v1306_v32 }
 0xbea   :  { %v3445_v47 = vsel %vm1123_vm6, %v1343_v54, 0.0  ;;  %v3455_v7 = vsel %vm1123_vm6, %v1343_v54, %v3326_v20  ;;  %v143_v20 = vpop.f32.mrf.mxu0 }
 0xbeb   :  { %v1383_v32 = vpack.c.bf16 %v3455_v7, %v3450_v16  ;;  %v144_v35 = vadd.f32 %v3182_v15, %v143_v20  ;;  %v3975_v24 = vmax.f32 %v3311_v22, %v3445_v47 }
 0xbed   :  { %1385 = vrot.lane.b32.xlu2 %v1383_v32, %s2516_s3 }
 0xbf2   :  { %v145_v4 = vpop.f32.mrf.mxu0 }
 0xbf3   :  { %v146_v31 = vadd.f32 %v3182_v15, %v145_v4 }
 0xc3f   :  { %v1363_v26 = vpop.permute.xlu1 %1362 }
 0xc40   :  { %2212 = vmatmul.msk.bf16.vlgmr.msrb.gmra.mxu2 %vm84_vm0, %v1363_v26 }
 0xc41   :  { %1793 = vmatpush.bf16.msrb.mxu2 %v2613_v8  ;;  %v188_v8 = vadd.f32 %v3191_v45, %v2746_v0 }
 0xc45   :  { %1794 = vmatpush.bf16.msrb.mxu2 %v2634_v17 }
 0xc47   :  { %v1386_v11 = vpop.permute.xlu2 %1385 }
 0xc48   :  { %2213 = vmatmul.msk.bf16.vlgmr.msrb.gmra.mxu3 %vm84_vm0, %v1386_v11 }
 0xc49   :  { %1816 = vmatpush.bf16.msrb.mxu3 %v2679_v33  ;;  %v190_v33 = vadd.f32 %v3191_v45, %v2748_v1 }
 0xc4d   :  { %1817 = vmatpush.bf16.msrb.mxu3 %v2696_v39 }
 0xcc3   :  { %v1376_v5 = vpop.f32.mrf.mxu2 }
 0xcc4   :  { %v1381_v38 = vadd.f32 %v1376_v5, %v144_v35 }
 0xcc6   :  { %2408 = vtanh.f32 %v1381_v38  ;;  %v2214_v20 = vmul.f32 -1.442695, %v1381_v38 }
 0xccb   :  { %v1378_v17 = vpop.f32.mrf.mxu2  ;;  %v1399_v28 = vpop.f32.mrf.mxu3 }
 0xccc   :  { %v2409_v29 = vpop.eup %2408  ;;  %v1382_v30 = vadd.f32 %v1378_v17, %v146_v31  ;;  %v1404_v2 = vadd.f32 %v1399_v28, %v188_v8 }
 0xccd   :  { %1450 = vrot.lane.b32.xlu0 %v2409_v29, %s2515_s0 }
 0xcce   :  { %2410 = vtanh.f32 %v1382_v30  ;;  %v2216_v15 = vmul.f32 -1.442695, %v1404_v2  ;;  %v2215_v45 = vmul.f32 -1.442695, %v1382_v30 }
 0xccf   :  { %2412 = vtanh.f32 %v1404_v2 }
 0xcd3   :  { %v1401_v39 = vpop.f32.mrf.mxu3 }
 0xcd4   :  { %v2411_v12 = vpop.eup %2410  ;;  %v1405_v54 = vadd.f32 %v1401_v39, %v190_v33 }
 0xcd5   :  { %v2413_v32 = vpop.eup %2412  ;;  %1452 = vrot.lane.b32.xlu1 %v2411_v12, %s2515_s0 }
 0xcd6   :  { %2414 = vtanh.f32 %v1405_v54  ;;  %1524 = vrot.lane.b32.xlu2 %v2413_v32, %s2515_s0  ;;  %v2217_v8 = vmul.f32 -1.442695, %v1405_v54 }
 0xcd7   :  { %2416 = vpow2.f32 %v2216_v15 }
 0xcdc   :  { %v2415_v0 = vpop.eup %2414 }
 0xcdd   :  { %1526 = vrot.lane.b32.xlu0 %v2415_v0, %s2515_s0  ;;  %v2417_v26 = vpop.eup %2416 }
 0xcde   :  { %v1486_v11 = vadd.f32 1.0, %v2417_v26 }
 0xce0   :  { %2418 = vrcp.f32 %v1486_v11  ;;  %v1499_v39 = vand.u32 2147483648, %v1486_v11  ;;  %vm1493_vm11 = vweird.f32 %v1486_v11  ;;  %v1497_v38 = vand.u32 2147483647, %v1486_v11 }
 0xce1   :  { %2420 = vpow2.f32 %v2214_v20 }
 0xce2   :  { %2422 = vpow2.f32 %v2215_v45  ;;  %v1500_v0 = vor.u32 1.1754944e-38, %v1499_v39  ;;  %vm1498_vm4 = vcmp.eq.f32.partialorder %v1497_v38, 8.507059e+37 }
 0xce6   :  { %v2419_v1 = vpop.eup %2418 }
 0xce7   :  { %v2421_v35 = vpop.eup %2420  ;;  %v1489_v5 = vmul.f32 %v2419_v1, %v1486_v11  ;;  %vm1494_vm10 = vweird.f32 %v2419_v1 }
 0xce8   :  { %v1412_v4 = vadd.f32 1.0, %v2421_v35  ;;  %v2423_v17 = vpop.eup %2422  ;;  %vm1495_vm12 = vmor %vm1493_vm11, %vm1494_vm10 }
 0xce9   :  { %v1490_v31 = vsub.f32 1.0, %v1489_v5  ;;  %v1413_v29 = vadd.f32 1.0, %v2423_v17 }
 0xcea   :  { %2424 = vrcp.f32 %v1412_v4  ;;  %vm1419_vm8 = vweird.f32 %v1412_v4 }
 0xceb   :  { %v1491_v28 = vmul.f32 %v2419_v1, %v1490_v31  ;;  %2426 = vpow2.f32 %v2217_v8  ;;  %vm1434_vm11 = vweird.f32 %v1413_v29 }
 0xcec   :  { %2428 = vrcp.f32 %v1413_v29 }
 0xced   :  { %v1492_v33 = vadd.f32 %v2419_v1, %v1491_v28  ;;  %v1423_v28 = vand.u32 2147483647, %v1412_v4 }
 0xcef   :  { %v1496_v32 = vsel %vm1495_vm12, %v2419_v1, %v1492_v33  ;;  %v1425_v1 = vand.u32 2147483648, %v1412_v4  ;;  %vm1424_vm5 = vcmp.eq.f32.partialorder %v1423_v28, 8.507059e+37 }
 0xcf0   :  { %v2425_v2 = vpop.eup %2424  ;;  %v3478_v26 = vsel %vm1498_vm4, %v1500_v0, %v1496_v32 }
 0xcf1   :  { %v2427_v12 = vpop.eup %2426  ;;  %v1415_v30 = vmul.f32 %v2425_v2, %v1412_v4  ;;  %vm1420_vm15 = vweird.f32 %v2425_v2 }
 0xcf2   :  { %v1487_v15 = vadd.f32 1.0, %v2427_v12  ;;  %v2429_v45 = vpop.eup %2428  ;;  %vm1421_vm9 = vmor %vm1419_vm8, %vm1420_vm15  ;;  %v1426_v12 = vor.u32 1.1754944e-38, %v1425_v1 }
 0xcf3   :  { %v1416_v20 = vsub.f32 1.0, %v1415_v30  ;;  %v1430_v31 = vmul.f32 %v2429_v45, %v1413_v29  ;;  %vm1435_vm10 = vweird.f32 %v2429_v45 }
 0xcf4   :  { %2430 = vrcp.f32 %v1487_v15  ;;  %vm1436_vm12 = vmor %vm1434_vm11, %vm1435_vm10  ;;  %v1514_v28 = vand.u32 2147483648, %v1487_v15  ;;  %vm1508_vm8 = vweird.f32 %v1487_v15 }
 0xcf5   :  { %v1417_v5 = vmul.f32 %v2425_v2, %v1416_v20  ;;  %v1431_v8 = vsub.f32 1.0, %v1430_v31 }
 0xcf7   :  { %v1418_v11 = vadd.f32 %v2425_v2, %v1417_v5  ;;  %v1432_v39 = vmul.f32 %v2429_v45, %v1431_v8  ;;  %v1438_v5 = vand.u32 2147483647, %v1413_v29 }
 0xcf9   :  { %v1422_v33 = vsel %vm1421_vm9, %v2425_v2, %v1418_v11  ;;  %vm1439_vm4 = vcmp.eq.f32.partialorder %v1438_v5, 8.507059e+37 }
 0xcfa   :  { %v2431_v17 = vpop.eup %2430  ;;  %v1427_v32 = vsel %vm1424_vm5, %v1426_v12, %v1422_v33  ;;  %v1512_v33 = vand.u32 2147483647, %v1487_v15 }
 0xcfb   :  { %v1504_v38 = vmul.f32 %v2431_v17, %v1487_v15  ;;  %vm1509_vm15 = vweird.f32 %v2431_v17  ;;  %v3495_v15 = vsel %vm1122_vm1, %v3406_v43, %v3403_v50  ;;  %vm3973_vm1 = vcmp.eq.s32.totalorder %v3110_v62, 1 }
 0xcfc   :  { %vm1510_vm9 = vmor %vm1508_vm8, %vm1509_vm15  ;;  %vm1513_vm5 = vcmp.eq.f32.partialorder %v1512_v33, 8.507059e+37 }
 0xcfd   :  { %v1505_v20 = vsub.f32 1.0, %v1504_v38  ;;  %v1515_v38 = vor.u32 1.1754944e-38, %v1514_v28 }
 0xcff   :  { %v1506_v4 = vmul.f32 %v2431_v17, %v1505_v20 }
 0xd01   :  { %v1507_v1 = vadd.f32 %v2431_v17, %v1506_v4 }
 0xd30   :  { %v1525_v54 = vpop.permute.xlu2 %1524 }
 0xd31   :  { %v1530_v35 = vmul.f32 %v1525_v54, %v3478_v26  ;;  %v1433_v54 = vadd.f32 %v2429_v45, %v1432_v39  ;;  %v1511_v39 = vsel %vm1510_vm9, %v2431_v17, %v1507_v1 }
 0xd33   :  { %1534 = vrot.lane.b32.xlu0 %v1530_v35, %s2516_s3  ;;  %v1440_v35 = vand.u32 2147483648, %v1413_v29  ;;  %v1437_v31 = vsel %vm1436_vm12, %v2429_v45, %v1433_v54  ;;  %v1516_v29 = vsel %vm1513_vm5, %v1515_v38, %v1511_v39 }
 0xd35   :  { %v1441_v41 = vor.u32 1.1754944e-38, %v1440_v35 }
 0xd37   :  { %v1442_v11 = vsel %vm1439_vm4, %v1441_v41, %v1437_v31  ;;  %v3489_v41 = vsel %vm1137_vm7, %v3383_v57, %v3379_v36  ;;  %v1446_v57 = vmul.f32 %v1427_v32, %v3512_v21  ;;  %v3523_v31 = vsel %vm1123_vm6, %v3395_v23, %v3392_v19  ;;  %vm3974_vm6 = vmmov %vm3973_vm1 }
 0xd38   :  { %v1447_v17 = vmul.f32 %v1442_v11, %v3489_v41  ;;  %v1521_v13 = vmul.f32 %v1516_v29, %v3523_v31 }
 0xd3f   :  { %v1451_v30 = vpop.permute.xlu0 %1450 }
 0xd40   :  { %v1456_v0 = vmul.f32 %v1451_v30, %v1427_v32  ;;  %v1520_v30 = vmul.f32 %v3478_v26, %v3495_v15 }
 0xd42   :  { %1460 = vrot.lane.b32.xlu1 %v1456_v0, %s2516_s3 }
 0xd47   :  { %v1453_v2 = vpop.permute.xlu1 %1452 }
 0xd48   :  { %v1457_v8 = vmul.f32 %v1453_v2, %v1442_v11 }
 0xd4a   :  { %1462 = vrot.lane.b32.xlu2 %v1457_v8, %s2516_s3 }
 0xd4f   :  { %v1527_v12 = vpop.permute.xlu0 %1526 }
 0xd50   :  { %v1531_v45 = vmul.f32 %v1527_v12, %v1516_v29 }
 0xd52   :  { %1536 = vrot.lane.b32.xlu1 %v1531_v45, %s2516_s3 }
 0xda4   :  { %v1463_v0 = vpop.permute.xlu2 %1462 }
 0xda5   :  { %v1535_v54 = vpop.permute.xlu0 %1534  ;;  %v3500_v20 = vadd.f32 %v1463_v0, %v1447_v17 }
 0xda6   :  { %v3502_v35 = vadd.f32 %v1535_v54, %v1520_v30  ;;  %v3597_v30 = vld [vmem:[%s3940_s7] ss:$0 sm:$0xff] }
 0xda7   :  { %2432 = vtanh.f32 %v3500_v20  ;;  %v183_v0 = vadd.f32 %v3597_v30, %v2740_v61 }
 0xda8   :  { %2434 = vtanh.f32 %v3502_v35 }
 0xdad   :  { %v2433_v48 = vpop.eup %2432 }
 0xdae   :  { %v2435_v36 = vpop.eup %2434  ;;  %1474 = vrot.lane.b32.xlu0 %v2433_v48, %s2515_s0 }
 0xdaf   :  { %1546 = vrot.lane.b32.xlu1 %v2435_v36, %s2515_s0 }
 0xdb4   :  { %v1461_v50 = vpop.permute.xlu1 %1460 }
 0xdb5   :  { %v3515_v43 = vadd.f32 %v1461_v50, %v1446_v57 }
 0xdb7   :  { %2436 = vtanh.f32 %v3515_v43 }
 0xdbd   :  { %v2437_v5 = vpop.eup %2436 }
 0xdbe   :  { %1472 = vrot.lane.b32.xlu2 %v2437_v5, %s2515_s0  ;;  %v185_v5 = vadd.f32 %v3597_v30, %v2743_v63 }
 0xdc4   :  { %v1537_v42 = vpop.permute.xlu1 %1536 }
 0xdc5   :  { %v3526_v10 = vadd.f32 %v1537_v42, %v1521_v13 }
 0xdc7   :  { %2438 = vtanh.f32 %v3526_v10 }
 0xdcd   :  { %v2439_v4 = vpop.eup %2438 }
 0xdce   :  { %1548 = vrot.lane.b32.xlu2 %v2439_v4, %s2515_s0 }
 0xe18   :  { %v1473_v2 = vpop.permute.xlu2 %1472 }
 0xe19   :  { %v1478_v8 = vmul.f32 %v1473_v2, %v1427_v32 }
 0xe1b   :  { %v1562_v1 = vsel %vm902_vm14, %v1478_v8, 0.0  ;;  %v3543_v32 = vsel %vm902_vm14, %v1478_v8, %v3425_v56 }
 0xe1c   :  { %v3535_v46 = vmax.f32 %v1354_v60, %v1562_v1 }
 0xe20   :  { %v1475_v19 = vpop.permute.xlu0 %1474 }
 0xe21   :  { %v1547_v23 = vpop.permute.xlu1 %1546  ;;  %v1479_v28 = vmul.f32 %v1475_v19, %v1442_v11 }
 0xe22   :  { %v1552_v33 = vmul.f32 %v1547_v23, %v3478_v26 }
 0xe23   :  { %v1563_v39 = vsel %vm903_vm13, %v1479_v28, 0.0  ;;  %v3548_v38 = vsel %vm903_vm13, %v1479_v28, %v3430_v52 }
 0xe24   :  { %v1566_v6 = vsel %vm888_vm3, %v1552_v33, 0.0  ;;  %v3555_v3 = vmax.f32 %v1355_v59, %v1563_v39  ;;  %v1570_v60 = vpack.c.bf16 %v3548_v38, %v3543_v32  ;;  %v3570_v37 = vsel %vm888_vm3, %v1552_v33, %v3450_v16 }
 0xe25   :  { %v3562_v56 = vmax.f32 %v1358_v27, %v1566_v6 }
 0xe26   :  { %1572 = vrot.lane.b32.xlu0 %v1570_v60, %s2516_s3 }
 0xe28   :  { %v1549_v52 = vpop.permute.xlu2 %1548 }
 0xe29   :  { %v1553_v26 = vmul.f32 %v1549_v52, %v1516_v29  ;;  %v148_v29 = vpop.f32.mrf.mxu0 }
 0xe2b   :  { %v1567_v11 = vsel %vm3973_vm1, %v1553_v26, 0.0  ;;  %v3575_v18 = vsel %vm3974_vm6, %v1553_v26, %v3455_v7  ;;  %v3590_v7 = vld [vmem:[%s3941_s4] ss:$0 sm:$0xff] }
 0xe2c   :  { %v3580_v59 = vmax.f32 %v3975_v24, %v1567_v11  ;;  %v1593_v51 = vpack.c.bf16 %v3575_v18, %v3570_v37  ;;  %v149_v22 = vadd.f32 %v3590_v7, %v148_v29 }
 0xe2e   :  { %1595 = vrot.lane.b32.xlu1 %v1593_v51, %s2516_s3 }
 0xe31   :  { %v150_v45 = vpop.f32.mrf.mxu0 }
 0xe32   :  { %v151_v17 = vadd.f32 %v3590_v7, %v150_v45 }
 0xe98   :  { %v1573_v27 = vpop.permute.xlu0 %1572 }
 0xe99   :  { %2218 = vmatmul.msk.bf16.vlgmr.msra.gmra.mxu2 %vm84_vm0, %v1573_v27 }
 0xea0   :  { %v1596_v16 = vpop.permute.xlu1 %1595 }
 0xea1   :  { %2219 = vmatmul.msk.bf16.vlgmr.msra.gmra.mxu3 %vm84_vm0, %v1596_v16 }
 0xf1c   :  { %v1586_v47 = vpop.f32.mrf.mxu2 }
 0xf1d   :  { %v1591_v12 = vadd.f32 %v1586_v47, %v149_v22 }
 0xf1f   :  { %2440 = vtanh.f32 %v1591_v12  ;;  %v2220_v8 = vmul.f32 -1.442695, %v1591_v12 }
 0xf24   :  { %v1588_v54 = vpop.f32.mrf.mxu2  ;;  %v1609_v48 = vpop.f32.mrf.mxu3 }
 0xf25   :  { %v2441_v36 = vpop.eup %2440  ;;  %v1592_v57 = vadd.f32 %v1588_v54, %v151_v17  ;;  %v1614_v50 = vadd.f32 %v1609_v48, %v183_v0 }
 0xf26   :  { %1660 = vrot.lane.b32.xlu2 %v2441_v36, %s2515_s0 }
 0xf27   :  { %2442 = vtanh.f32 %v1592_v57  ;;  %v2221_v60 = vmul.f32 -1.442695, %v1592_v57  ;;  %v2222_v52 = vmul.f32 -1.442695, %v1614_v50 }
 0xf28   :  { %2444 = vtanh.f32 %v1614_v50 }
 0xf2c   :  { %v1611_v13 = vpop.f32.mrf.mxu3 }
 0xf2d   :  { %v2443_v42 = vpop.eup %2442  ;;  %v1615_v4 = vadd.f32 %v1611_v13, %v185_v5 }
 0xf2e   :  { %v2445_v2 = vpop.eup %2444  ;;  %1662 = vrot.lane.b32.xlu0 %v2443_v42, %s2515_s0 }
 0xf2f   :  { %2446 = vtanh.f32 %v1615_v4  ;;  %1734 = vrot.lane.b32.xlu1 %v2445_v2, %s2515_s0  ;;  %v2223_v23 = vmul.f32 -1.442695, %v1615_v4 }
 0xf30   :  { %2448 = vpow2.f32 %v2220_v8 }
 0xf35   :  { %v2447_v61 = vpop.eup %2446 }
 0xf36   :  { %1736 = vrot.lane.b32.xlu2 %v2447_v61, %s2515_s0  ;;  %v2449_v1 = vpop.eup %2448 }
 0xf37   :  { %v1622_v19 = vadd.f32 1.0, %v2449_v1 }
 0xf39   :  { %2450 = vrcp.f32 %v1622_v19  ;;  %v1635_v51 = vand.u32 2147483648, %v1622_v19  ;;  %vm1629_vm2 = vweird.f32 %v1622_v19  ;;  %v1633_v27 = vand.u32 2147483647, %v1622_v19 }
 0xf3a   :  { %2452 = vpow2.f32 %v2223_v23 }
 0xf3b   :  { %v1636_v12 = vor.u32 1.1754944e-38, %v1635_v51  ;;  %vm1634_vm11 = vcmp.eq.f32.partialorder %v1633_v27, 8.507059e+37 }
 0xf3f   :  { %v2451_v63 = vpop.eup %2450 }
 0xf40   :  { %v2453_v28 = vpop.eup %2452  ;;  %v1625_v33 = vmul.f32 %v2451_v63, %v1622_v19  ;;  %vm1630_vm7 = vweird.f32 %v2451_v63 }
 0xf41   :  { %v1697_v39 = vadd.f32 1.0, %v2453_v28  ;;  %vm1631_vm10 = vmor %vm1629_vm2, %vm1630_vm7 }
 0xf42   :  { %v1626_v6 = vsub.f32 1.0, %v1625_v33 }
 0xf43   :  { %2454 = vrcp.f32 %v1697_v39  ;;  %v1724_v13 = vand.u32 2147483648, %v1697_v39  ;;  %vm1718_vm4 = vweird.f32 %v1697_v39  ;;  %v1722_v4 = vand.u32 2147483647, %v1697_v39 }
 0xf44   :  { %v1627_v26 = vmul.f32 %v2451_v63, %v1626_v6  ;;  %2456 = vpow2.f32 %v2221_v60 }
 0xf45   :  { %2458 = vpow2.f32 %v2222_v52  ;;  %v1725_v8 = vor.u32 1.1754944e-38, %v1724_v13  ;;  %vm1723_vm8 = vcmp.eq.f32.partialorder %v1722_v4, 8.507059e+37  ;;  %v3632_v13 = vsel %vm888_vm3, %v3502_v35, %v3495_v15 }
 0xf46   :  { %v1628_v11 = vadd.f32 %v2451_v63, %v1627_v26  ;;  %vm3977_vm3 = vcmp.eq.s32.totalorder %v2976_v40, 1 }
 0xf48   :  { %v1632_v29 = vsel %vm1631_vm10, %v2451_v63, %v1628_v11 }
 0xf49   :  { %v2455_v24 = vpop.eup %2454  ;;  %v3607_v0 = vsel %vm1634_vm11, %v1636_v12, %v1632_v29 }
 0xf4a   :  { %v2457_v16 = vpop.eup %2456  ;;  %v1714_v22 = vmul.f32 %v2455_v24, %v1697_v39  ;;  %vm1719_vm12 = vweird.f32 %v2455_v24 }
 0xf4b   :  { %v2459_v47 = vpop.eup %2458  ;;  %v1623_v45 = vadd.f32 1.0, %v2457_v16  ;;  %vm1720_vm15 = vmor %vm1718_vm4, %vm1719_vm12 }
 0xf4c   :  { %v1696_v54 = vadd.f32 1.0, %v2459_v47  ;;  %v1715_v36 = vsub.f32 1.0, %v1714_v22  ;;  %vm3979_vm12 = vmmov %vm3977_vm3 }
 0xf4d   :  { %2460 = vrcp.f32 %v1623_v45  ;;  %v1650_v26 = vand.u32 2147483648, %v1623_v45  ;;  %vm1644_vm1 = vweird.f32 %v1623_v45 }
 0xf4e   :  { %2462 = vrcp.f32 %v1696_v54  ;;  %v1716_v57 = vmul.f32 %v2455_v24, %v1715_v36  ;;  %v1709_v11 = vand.u32 2147483648, %v1696_v54  ;;  %vm1703_vm6 = vweird.f32 %v1696_v54 }
 0xf4f   :  { %v1707_v51 = vand.u32 2147483647, %v1696_v54  ;;  %v1651_v29 = vor.u32 1.1754944e-38, %v1650_v26 }
 0xf50   :  { %v1717_v50 = vadd.f32 %v2455_v24, %v1716_v57  ;;  %v1710_v22 = vor.u32 1.1754944e-38, %v1709_v11 }
 0xf51   :  { %vm1708_vm11 = vcmp.eq.f32.partialorder %v1707_v51, 8.507059e+37 }
 0xf52   :  { %v1721_v2 = vsel %vm1720_vm15, %v2455_v24, %v1717_v50  ;;  %v1648_v24 = vand.u32 2147483647, %v1623_v45  ;;  %vm3981_vm15 = vcmp.eq.s32.totalorder %v2942_v9, 1 }
 0xf53   :  { %v2461_v5 = vpop.eup %2460  ;;  %v3611_v19 = vsel %vm1723_vm8, %v1725_v8, %v1721_v2  ;;  %vm3982_vm8 = vcmp.eq.s32.totalorder %v2951_v25, 1 }
 0xf54   :  { %v2463_v42 = vpop.eup %2462  ;;  %v1640_v61 = vmul.f32 %v2461_v5, %v1623_v45  ;;  %vm1645_vm9 = vweird.f32 %v2461_v5  ;;  %vm1649_vm10 = vcmp.eq.f32.partialorder %v1648_v24, 8.507059e+37  ;;  %v3621_v45 = vsel %vm902_vm14, %v3515_v43, %v3512_v21 }
 0xf55   :  { %v1699_v1 = vmul.f32 %v2463_v42, %v1696_v54  ;;  %vm1704_vm5 = vweird.f32 %v2463_v42  ;;  %vm1646_vm7 = vmor %vm1644_vm1, %vm1645_vm9  ;;  %v1656_v54 = vmul.f32 %v3607_v0, %v3621_v45  ;;  %vm3976_vm14 = vcmp.eq.s32.totalorder %v3110_v62, 1 }
 0xf56   :  { %v1641_v28 = vsub.f32 1.0, %v1640_v61  ;;  %vm1705_vm2 = vmor %vm1703_vm6, %vm1704_vm5  ;;  %v3643_v43 = vsel %vm3976_vm14, %v3526_v10, %v3523_v31  ;;  %v3656_v62 = vsel %vm903_vm13, %v3500_v20, %v3489_v41  ;;  %vm3978_vm13 = vcmp.eq.s32.totalorder %v2969_v44, 1 }
 0xf57   :  { %v1700_v33 = vsub.f32 1.0, %v1699_v1  ;;  %v1731_v53 = vmul.f32 %v3611_v19, %v3643_v43  ;;  %vm3980_vm4 = vmmov %vm3978_vm13 }
 0xf58   :  { %v1642_v6 = vmul.f32 %v2461_v5, %v1641_v28  ;;  %vm3983_vm9 = vmmov %vm3981_vm15 }
 0xf59   :  { %v1701_v60 = vmul.f32 %v2463_v42, %v1700_v33  ;;  %vm3984_vm5 = vmmov %vm3982_vm8 }
 0xf5a   :  { %v1643_v52 = vadd.f32 %v2461_v5, %v1642_v6 }
 0xf5b   :  { %v1702_v39 = vadd.f32 %v2463_v42, %v1701_v60 }
 0xf5c   :  { %v1647_v27 = vsel %vm1646_vm7, %v2461_v5, %v1643_v52 }
 0xf5d   :  { %v1706_v16 = vsel %vm1705_vm2, %v2463_v42, %v1702_v39  ;;  %v1652_v12 = vsel %vm1649_vm10, %v1651_v29, %v1647_v27 }
 0xf5e   :  { %v1657_v31 = vmul.f32 %v1652_v12, %v3656_v62 }
 0xf80   :  { %v1661_v17 = vpop.permute.xlu2 %1660 }
 0xf81   :  { %v1666_v48 = vmul.f32 %v1661_v17, %v3607_v0 }
 0xf83   :  { %1670 = vrot.lane.b32.xlu0 %v1666_v48, %s2516_s3  ;;  %v1711_v48 = vsel %vm1708_vm11, %v1710_v22, %v1706_v16 }
 0xf84   :  { %v1730_v42 = vmul.f32 %v1711_v48, %v3632_v13 }
 0xf90   :  { %v1737_v23 = vpop.permute.xlu2 %1736 }
 0xf91   :  { %v1741_v63 = vmul.f32 %v1737_v23, %v3611_v19 }
 0xf93   :  { %1746 = vrot.lane.b32.xlu0 %v1741_v63, %s2516_s3 }
 0xfa0   :  { %v1663_v47 = vpop.permute.xlu0 %1662 }
 0xfa1   :  { %v1735_v17 = vpop.permute.xlu1 %1734  ;;  %v1667_v36 = vmul.f32 %v1663_v47, %v1652_v12 }
 0xfa2   :  { %v1740_v57 = vmul.f32 %v1735_v17, %v1711_v48 }
 0xfa3   :  { %1672 = vrot.lane.b32.xlu1 %v1667_v36, %s2516_s3 }
 0xfa4   :  { %1744 = vrot.lane.b32.xlu2 %v1740_v57, %s2516_s3 }
 0xff5   :  { %v1671_v50 = vpop.permute.xlu0 %1670 }
 0xff6   :  { %v3625_v5 = vadd.f32 %v1671_v50, %v1656_v54 }
 0xff8   :  { %2464 = vtanh.f32 %v3625_v5 }
 0xffe   :  { %v2465_v4 = vpop.eup %2464  ;;  %v1745_v58 = vpop.permute.xlu2 %1744 }
 0xfff   :  { %v3635_v21 = vadd.f32 %v1745_v58, %v1730_v42  ;;  %1682 = vrot.lane.b32.xlu1 %v2465_v4, %s2515_s0  ;;  %v178_v4 = vadd.f32 %v3597_v30, %v2729_v49 }
0x1001   :  { %2466 = vtanh.f32 %v3635_v21 }
0x1005   :  { %v1747_v15 = vpop.permute.xlu0 %1746 }
0x1006   :  { %v3647_v35 = vadd.f32 %v1747_v15, %v1731_v53  ;;  %v180_v15 = vadd.f32 %v3597_v30, %v2737_v55 }
0x1007   :  { %v2467_v2 = vpop.eup %2466 }
0x1008   :  { %2468 = vtanh.f32 %v3647_v35  ;;  %1756 = vrot.lane.b32.xlu0 %v2467_v2, %s2515_s0 }
0x100e   :  { %v2469_v61 = vpop.eup %2468 }
0x100f   :  { %1758 = vrot.lane.b32.xlu1 %v2469_v61, %s2515_s0 }
0x1015   :  { %v1673_v10 = vpop.permute.xlu1 %1672 }
0x1016   :  { %v3659_v8 = vadd.f32 %v1673_v10, %v1657_v31 }
0x1018   :  { %2470 = vtanh.f32 %v3659_v8 }
0x101e   :  { %v2471_v1 = vpop.eup %2470 }
0x101f   :  { %1684 = vrot.lane.b32.xlu2 %v2471_v1, %s2515_s0 }
0x1071   :  { %v1683_v23 = vpop.permute.xlu1 %1682 }
0x1072   :  { %v1688_v63 = vmul.f32 %v1683_v23, %v3607_v0 }
0x1074   :  { %v3666_v28 = vsel %vm3977_vm3, %v1688_v63, 0.0  ;;  %v1764_v52 = vsel %vm3979_vm12, %v1688_v63, %v3543_v32 }
0x1075   :  { %v1774_v14 = vmax.f32 %v3535_v46, %v3666_v28 }
0x1079   :  { %v1685_v41 = vpop.permute.xlu2 %1684 }
0x107a   :  { %v1757_v20 = vpop.permute.xlu0 %1756  ;;  %v1689_v33 = vmul.f32 %v1685_v41, %v1652_v12  ;;  %v153_v12 = vpop.f32.mrf.mxu0 }
0x107b   :  { %v1762_v6 = vmul.f32 %v1757_v20, %v1711_v48  ;;  %v154_v17 = vadd.f32 %v3590_v7, %v153_v12 }
0x107c   :  { %v3672_v60 = vsel %vm3978_vm13, %v1689_v33, 0.0  ;;  %v1765_v0 = vsel %vm3980_vm4, %v1689_v33, %v3548_v38 }
0x107d   :  { %v3682_v39 = vsel %vm3981_vm15, %v1762_v6, 0.0  ;;  %v1775_v26 = vmax.f32 %v3555_v3, %v3672_v60  ;;  %v1780_v11 = vpack.c.bf16 %v1765_v0, %v1764_v52  ;;  %v1768_v38 = vsel %vm3983_vm9, %v1762_v6, %v3570_v37  ;;  %v2030_v60 = vld [vmem:[%s3944_s8 + $0x70] sm:$0xff] }
0x107e   :  { %v1778_v24 = vmax.f32 %v3562_v56, %v3682_v39  ;;  %v2031_v56 = vld [vmem:[%s3944_s8 + $0x78] sm:$0xff]  ;;  %v2046_v39 = vld [vmem:[%s3944_s8 + $0xf0] sm:$0xff] }
0x107f   :  { %1782 = vrot.lane.b32.xlu2 %v1780_v11, %s2516_s3 }
0x1081   :  { %v1759_v51 = vpop.permute.xlu1 %1758 }
0x1082   :  { %v1763_v32 = vmul.f32 %v1759_v51, %v3611_v19  ;;  %v155_v36 = vpop.f32.mrf.mxu0 }
0x1084   :  { %v3692_v27 = vsel %vm3982_vm8, %v1763_v32, 0.0  ;;  %v1769_v16 = vsel %vm3984_vm5, %v1763_v32, %v3575_v18  ;;  %v156_v18 = vadd.f32 %v3590_v7, %v155_v36 }
0x1085   :  { %v1779_v29 = vmax.f32 %v3580_v59, %v3692_v27  ;;  %v1803_v22 = vpack.c.bf16 %v1769_v16, %v1768_v38  ;;  %v2047_v59 = vld [vmem:[%s3944_s8 + $0xf8] sm:$0xff]  ;;  %v2029_v27 = vld [vmem:[%s3944_s8 + $0x68] sm:$0xff] }
0x1087   :  { %1805 = vrot.lane.b32.xlu0 %v1803_v22, %s2516_s3 }
0x10d9   :  { %v1783_v47 = vpop.permute.xlu2 %1782 }
0x10da   :  { %2224 = vmatmul.msk.bf16.vlgmr.msrb.gmra.mxu2 %vm84_vm0, %v1783_v47 }
0x10f9   :  { %v1806_v19 = vpop.permute.xlu0 %1805 }
0x10fa   :  { %2225 = vmatmul.msk.bf16.vlgmr.msrb.gmra.mxu3 %vm84_vm0, %v1806_v19 }
0x115d   :  { %v1796_v37 = vpop.f32.mrf.mxu2 }
0x115e   :  { %v1801_v48 = vadd.f32 %v1796_v37, %v154_v17 }
0x1160   :  { %2472 = vtanh.f32 %v1801_v48  ;;  %v2226_v49 = vmul.f32 -1.442695, %v1801_v48 }
0x1165   :  { %v1798_v57 = vpop.f32.mrf.mxu2 }
0x1166   :  { %v2473_v54 = vpop.eup %2472  ;;  %v1802_v50 = vadd.f32 %v1798_v57, %v156_v18 }
0x1167   :  { %1870 = vrot.lane.b32.xlu1 %v2473_v54, %s2515_s0 }
0x1168   :  { %2474 = vtanh.f32 %v1802_v50  ;;  %v2227_v10 = vmul.f32 -1.442695, %v1802_v50 }
0x116e   :  { %v2475_v42 = vpop.eup %2474 }
0x116f   :  { %1872 = vrot.lane.b32.xlu2 %v2475_v42, %s2515_s0 }
0x117d   :  { %v1819_v58 = vpop.f32.mrf.mxu3 }
0x117e   :  { %v1824_v53 = vadd.f32 %v1819_v58, %v178_v4 }
0x1180   :  { %2476 = vtanh.f32 %v1824_v53  ;;  %v2228_v12 = vmul.f32 -1.442695, %v1824_v53 }
0x1185   :  { %v1821_v2 = vpop.f32.mrf.mxu3 }
0x1186   :  { %v2477_v7 = vpop.eup %2476  ;;  %v1825_v61 = vadd.f32 %v1821_v2, %v180_v15 }
0x1187   :  { %1944 = vrot.lane.b32.xlu0 %v2477_v7, %s2515_s0 }
0x1188   :  { %2478 = vtanh.f32 %v1825_v61  ;;  %v2229_v36 = vmul.f32 -1.442695, %v1825_v61 }
0x1189   :  { %2480 = vpow2.f32 %v2227_v10 }
0x118e   :  { %v2479_v31 = vpop.eup %2478 }
0x118f   :  { %1946 = vrot.lane.b32.xlu1 %v2479_v31, %s2515_s0  ;;  %v2481_v1 = vpop.eup %2480 }
0x1190   :  { %v1833_v23 = vadd.f32 1.0, %v2481_v1 }
0x1192   :  { %2482 = vrcp.f32 %v1833_v23  ;;  %v1860_v0 = vand.u32 2147483648, %v1833_v23  ;;  %vm1854_vm6 = vweird.f32 %v1833_v23  ;;  %v1858_v11 = vand.u32 2147483647, %v1833_v23 }
0x1193   :  { %2484 = vpow2.f32 %v2226_v49 }
0x1194   :  { %v1861_v38 = vor.u32 1.1754944e-38, %v1860_v0  ;;  %vm1859_vm2 = vcmp.eq.f32.partialorder %v1858_v11, 8.507059e+37 }
0x1198   :  { %v2483_v63 = vpop.eup %2482 }
0x1199   :  { %v2485_v41 = vpop.eup %2484  ;;  %v1850_v20 = vmul.f32 %v2483_v63, %v1833_v23  ;;  %vm1855_vm1 = vweird.f32 %v2483_v63 }
0x119a   :  { %v1832_v55 = vadd.f32 1.0, %v2485_v41  ;;  %vm1856_vm7 = vmor %vm1854_vm6, %vm1855_vm1  ;;  %vm3985_vm6 = vcmp.eq.s32.totalorder %v2976_v40, 1 }
0x119b   :  { %v1851_v30 = vsub.f32 1.0, %v1850_v20 }
0x119c   :  { %2486 = vrcp.f32 %v1832_v55  ;;  %v1845_v48 = vand.u32 2147483648, %v1832_v55  ;;  %vm1839_vm11 = vweird.f32 %v1832_v55  ;;  %v1843_v18 = vand.u32 2147483647, %v1832_v55 }
0x119d   :  { %v1852_v33 = vmul.f32 %v2483_v63, %v1851_v30  ;;  %2488 = vpow2.f32 %v2228_v12 }
0x119e   :  { %v1846_v50 = vor.u32 1.1754944e-38, %v1845_v48  ;;  %2490 = vpow2.f32 %v2229_v36  ;;  %vm1844_vm3 = vcmp.eq.f32.partialorder %v1843_v18, 8.507059e+37 }
0x119f   :  { %v1853_v6 = vadd.f32 %v2483_v63, %v1852_v33 }
0x11a1   :  { %v1857_v51 = vsel %vm1856_vm7, %v2483_v63, %v1853_v6  ;;  %vm3986_vm7 = vcmp.eq.s32.totalorder %v2969_v44, 1 }
0x11a2   :  { %v2487_v52 = vpop.eup %2486  ;;  %v3715_v22 = vsel %vm1859_vm2, %v1861_v38, %v1857_v51  ;;  %v1767_v18 = vsel %vm3986_vm7, %v3659_v8, %v3656_v62  ;;  %vm3987_vm2 = vcmp.eq.s32.totalorder %v2951_v25, 1 }
0x11a3   :  { %v1835_v32 = vmul.f32 %v2487_v52, %v1832_v55  ;;  %vm1840_vm10 = vweird.f32 %v2487_v52  ;;  %v2489_v57 = vpop.eup %2488 }
0x11a4   :  { %vm1841_vm14 = vmor %vm1839_vm11, %vm1840_vm10  ;;  %v1906_v42 = vadd.f32 1.0, %v2489_v57  ;;  %v2491_v15 = vpop.eup %2490  ;;  %v1867_v57 = vmul.f32 %v3715_v22, %v1767_v18  ;;  %vm3988_vm10 = vcmp.eq.s32.totalorder %v2942_v9, 1  ;;  %vm3989_vm11 = vcmp.eq.s32.totalorder %v2844_v34, 1  ;;  %v2020_v18 = vld [vmem:[%s3944_s8 + $0x20] sm:$0xff] }
0x11a5   :  { %v1836_v19 = vsub.f32 1.0, %v1835_v32  ;;  %v1907_v2 = vadd.f32 1.0, %v2491_v15  ;;  %v1770_v8 = vsel %vm3988_vm10, %v3635_v21, %v3632_v13  ;;  %v3990_v21 = vld [vmem:[#allocation4_spill] sm:$0xff] }
0x11a6   :  { %2492 = vrcp.f32 %v1906_v42  ;;  %v1919_v41 = vand.u32 2147483648, %v1906_v42  ;;  %vm1913_vm12 = vweird.f32 %v1906_v42  ;;  %v1917_v20 = vand.u32 2147483647, %v1906_v42 }
0x11a7   :  { %v1837_v17 = vmul.f32 %v2487_v52, %v1836_v19  ;;  %2494 = vrcp.f32 %v1907_v2  ;;  %v1934_v51 = vand.u32 2147483648, %v1907_v2  ;;  %vm1928_vm9 = vweird.f32 %v1907_v2 }
0x11a8   :  { %v1920_v33 = vor.u32 1.1754944e-38, %v1919_v41  ;;  %vm1918_vm15 = vcmp.eq.f32.partialorder %v1917_v20, 8.507059e+37  ;;  %v1932_v32 = vand.u32 2147483647, %v1907_v2  ;;  %v2045_v41 = vld [vmem:[%s3944_s8 + $0xe8] sm:$0xff] }
0x11a9   :  { %v1838_v37 = vadd.f32 %v2487_v52, %v1837_v17  ;;  %v1766_v17 = vsel %vm3985_vm6, %v3625_v5, %v3621_v45  ;;  %v1771_v45 = vsel %vm3987_vm2, %v3647_v35, %v3643_v43 }
0x11aa   :  { %vm1933_vm1 = vcmp.eq.f32.partialorder %v1932_v32, 8.507059e+37  ;;  %v2025_v32 = vld [vmem:[%s3944_s8 + $0x48] sm:$0xff] }
0x11ab   :  { %v1842_v54 = vsel %vm1841_vm14, %v2487_v52, %v1838_v37  ;;  %vm3991_vm14 = vcmp.eq.s32.totalorder %v3990_v21, 1 }
0x11ac   :  { %v3719_v58 = vsel %vm1844_vm3, %v1846_v50, %v1842_v54  ;;  %v2493_v7 = vpop.eup %2492 }
0x11ad   :  { %v1909_v61 = vmul.f32 %v2493_v7, %v1906_v42  ;;  %v2495_v10 = vpop.eup %2494  ;;  %vm1914_vm13 = vweird.f32 %v2493_v7  ;;  %v1866_v37 = vmul.f32 %v3719_v58, %v1766_v17 }
0x11ae   :  { %v1924_v23 = vmul.f32 %v2495_v10, %v1907_v2  ;;  %vm1915_vm4 = vmor %vm1913_vm12, %vm1914_vm13  ;;  %vm1929_vm8 = vweird.f32 %v2495_v10  ;;  %vm2011_vm12 = vcmask 523264  }
0x11af   :  { %v1910_v31 = vsub.f32 1.0, %v1909_v61  ;;  %vm1930_vm5 = vmor %vm1928_vm9, %vm1929_vm8 }
0x11b0   :  { %v1925_v63 = vsub.f32 1.0, %v1924_v23  ;;  %v3994_v23 = vld [vmem:[#allocation2_spill] sm:$0xff] }
0x11b1   :  { %v1911_v1 = vmul.f32 %v2493_v7, %v1910_v31  ;;  %vm3995_vm13 = vcmp.eq.s32.totalorder %v3994_v23, 1 }
0x11b2   :  { %v1926_v30 = vmul.f32 %v2495_v10, %v1925_v63  ;;  %v2044_v63 = vld [vmem:[%s3944_s8 + $0xe0] sm:$0xff] }
0x11b3   :  { %v1912_v49 = vadd.f32 %v2493_v7, %v1911_v1  ;;  %v3992_v1 = vld [vmem:[#allocation3_spill] sm:$0xff] }
0x11b4   :  { %v1927_v11 = vadd.f32 %v2495_v10, %v1926_v30  ;;  %vm3993_vm3 = vcmp.eq.s32.totalorder %v3992_v1, 1  ;;  %v2026_v30 = vld [vmem:[%s3944_s8 + $0x50] sm:$0xff] }
0x11b5   :  { %v1916_v55 = vsel %vm1915_vm4, %v2493_v7, %v1912_v49  ;;  %v2102_v1 = vld [vmem:[%s3946_s10 + $0x30] sm:$0xff] }
0x11b6   :  { %v1921_v52 = vsel %vm1918_vm15, %v1920_v33, %v1916_v55  ;;  %v1931_v38 = vsel %vm1930_vm5, %v2495_v10, %v1927_v11  ;;  %v2062_v55 = vpack.c.bf16 %v2045_v41, %v2044_v63  ;;  %v2027_v33 = vld [vmem:[%s3944_s8 + $0x58] sm:$0xff]  ;;  %v2024_v11 = vld [vmem:[%s3944_s8 + $0x40] sm:$0xff] }
0x11b7   :  { %v2099_v63 = vld [vmem:[%s3946_s10 + $0x18] sm:$0xff] }
0x11c9   :  { %v1873_v16 = vpop.permute.xlu2 %1872 }
0x11ca   :  { %v1877_v47 = vmul.f32 %v1873_v16, %v3715_v22  ;;  %v1935_v16 = vor.u32 1.1754944e-38, %v1934_v51 }
0x11cc   :  { %1882 = vrot.lane.b32.xlu0 %v1877_v47, %s2516_s3  ;;  %v1936_v47 = vsel %vm1933_vm1, %v1935_v16, %v1931_v38  ;;  %v2040_v38 = vld [vmem:[%s3944_s8 + $0xc0] sm:$0xff]  ;;  %v2041_v16 = vld [vmem:[%s3944_s8 + $0xc8] sm:$0xff] }
0x11cd   :  { %v1941_v5 = vmul.f32 %v1936_v47, %v1771_v45  ;;  %v2060_v17 = vpack.c.bf16 %v2041_v16, %v2040_v38  ;;  %v2018_v45 = vld [vmem:[%s3944_s8 + $0x10] sm:$0xff] }
0x11d9   :  { %v1871_v4 = vpop.permute.xlu1 %1870 }
0x11da   :  { %v1876_v53 = vmul.f32 %v1871_v4, %v3719_v58 }
0x11dc   :  { %1880 = vrot.lane.b32.xlu2 %v1876_v53, %s2516_s3  ;;  %v1940_v53 = vmul.f32 %v1921_v52, %v1770_v8 }
0x11f9   :  { %v1945_v6 = vpop.permute.xlu0 %1944 }
0x11fa   :  { %v1950_v0 = vmul.f32 %v1945_v6, %v1921_v52  ;;  %v2053_v6 = vpack.c.bf16 %v2027_v33, %v2026_v30  ;;  %v2136_v33 = vld [vmem:[%s3948_s12 + $0x30] sm:$0xff] }
0x11fc   :  { %1954 = vrot.lane.b32.xlu1 %v1950_v0, %s2516_s3  ;;  %v2043_v0 = vld [vmem:[%s3944_s8 + $0xd8] sm:$0xff] }
0x1201   :  { %v1947_v19 = vpop.permute.xlu1 %1946 }
0x1202   :  { %v1951_v12 = vmul.f32 %v1947_v19, %v1936_v47  ;;  %v2022_v19 = vld [vmem:[%s3944_s8 + $0x30] sm:$0xff] }
0x1204   :  { %1956 = vrot.lane.b32.xlu2 %v1951_v12, %s2516_s3  ;;  %v2023_v12 = vld [vmem:[%s3944_s8 + $0x38] sm:$0xff] }
0x1236   :  { %v1881_v48 = vpop.permute.xlu2 %1880 }
0x1237   :  { %v1886_v36 = vadd.f32 %v1881_v48, %v1866_v37  ;;  %v2038_v37 = vld [vmem:[%s3944_s8 + $0xb0] sm:$0xff]  ;;  %v2039_v48 = vld [vmem:[%s3944_s8 + $0xb8] sm:$0xff] }
0x1239   :  { %2496 = vtanh.f32 %v1886_v36  ;;  %v2051_v36 = vpack.c.bf16 %v2023_v12, %v2022_v19 }
0x123e   :  { %v1883_v54 = vpop.permute.xlu0 %1882 }
0x123f   :  { %v2497_v50 = vpop.eup %2496  ;;  %v1887_v42 = vadd.f32 %v1883_v54, %v1867_v57  ;;  %v2021_v57 = vld [vmem:[%s3944_s8 + $0x28] sm:$0xff]  ;;  %v2059_v54 = vpack.c.bf16 %v2039_v48, %v2038_v37 }
0x1240   :  { %1892 = vrot.lane.b32.xlu0 %v2497_v50, %s2515_s0  ;;  %v2036_v50 = vld [vmem:[%s3944_s8 + $0xa0] sm:$0xff]  ;;  %v2135_v37 = vld [vmem:[%s3948_s12 + $0x28] sm:$0xff] }
0x1241   :  { %2498 = vtanh.f32 %v1887_v42  ;;  %v2037_v42 = vld [vmem:[%s3944_s8 + $0xa8] sm:$0xff] }
0x1247   :  { %v2499_v40 = vpop.eup %2498 }
0x1248   :  { %1894 = vrot.lane.b32.xlu1 %v2499_v40, %s2515_s0  ;;  %v2050_v40 = vpack.c.bf16 %v2021_v57, %v2020_v18  ;;  %v2133_v18 = vld [vmem:[%s3948_s12 + $0x18] sm:$0xff] }
0x125e   :  { %v1957_v4 = vpop.permute.xlu2 %1956 }
0x125f   :  { %v1961_v44 = vadd.f32 %v1957_v4, %v1941_v5  ;;  %v2019_v5 = vld [vmem:[%s3944_s8 + $0x18] sm:$0xff]  ;;  %v2058_v4 = vpack.c.bf16 %v2037_v42, %v2036_v50  ;;  %v2131_v50 = vld [vmem:[%s3948_s12 + $0x8] sm:$0xff] }
0x1260   :  { %v2049_v8 = vpack.c.bf16 %v2019_v5, %v2018_v45 }
0x1261   :  { %2500 = vtanh.f32 %v1961_v44  ;;  %v2034_v44 = vld [vmem:[%s3944_s8 + $0x90] sm:$0xff] }
0x1267   :  { %v2501_v62 = vpop.eup %2500 }
0x1268   :  { %1968 = vrot.lane.b32.xlu0 %v2501_v62, %s2515_s0  ;;  %v2035_v62 = vld [vmem:[%s3944_s8 + $0x98] sm:$0xff] }
0x126e   :  { %v1955_v15 = vpop.permute.xlu1 %1954 }
0x126f   :  { %v1960_v2 = vadd.f32 %v1955_v15, %v1940_v53  ;;  %v2016_v53 = vld [vmem:[%s3944_s8] sm:$0xff]  ;;  %v2017_v15 = vld [vmem:[%s3944_s8 + $0x8] sm:$0xff] }
0x1271   :  { %2502 = vtanh.f32 %v1960_v2  ;;  %v2057_v2 = vpack.c.bf16 %v2035_v62, %v2034_v44 }
0x1277   :  { %v2503_v7 = vpop.eup %2502 }
0x1278   :  { %1966 = vrot.lane.b32.xlu2 %v2503_v7, %s2515_s0  ;;  %v2032_v7 = vld [vmem:[%s3944_s8 + $0x80] sm:$0xff] }
0x12b2   :  { %v1893_v25 = vpop.permute.xlu0 %1892 }
0x12b3   :  { %v1898_v43 = vmul.f32 %v1893_v25, %v3719_v58  ;;  %v2033_v25 = vld [vmem:[%s3944_s8 + $0x88] sm:$0xff] }
0x12b5   :  { %v1974_v35 = vsel %vm3989_vm11, %v1898_v43, 0.0  ;;  %v2048_v43 = vpack.c.bf16 %v2017_v15, %v2016_v53 }
0x12b6   :  { %v1976_v61 = vmax.f32 %v1774_v14, %v1974_v35 }
0x12b8   :  { %1983 = vrot.lane.b32.xlu1 %v1976_v61, %s2516_s3  ;;  %v2056_v61 = vpack.c.bf16 %v2033_v25, %v2032_v7 }
0x12ba   :  { %v1895_v9 = vpop.permute.xlu1 %1894 }
0x12bb   :  { %v1899_v13 = vmul.f32 %v1895_v9, %v3715_v22 }
0x12bd   :  { %v1975_v31 = vsel %vm3991_vm14, %v1899_v13, 0.0 }
0x12be   :  { %v1977_v10 = vmax.f32 %v1775_v26, %v1975_v31  ;;  %v2055_v26 = vpack.c.bf16 %v2031_v56, %v2030_v60 }
0x12c0   :  { %1992 = vrot.lane.b32.xlu0 %v1977_v10, %s2516_s3  ;;  %2068 = vmatpush.bf16.msrb.mxu0 %v2055_v26 }
0x12d2   :  { %v1967_v34 = vpop.permute.xlu2 %1966 }
0x12d3   :  { %v1972_v58 = vmul.f32 %v1967_v34, %v1921_v52  ;;  %v2042_v52 = vld [vmem:[%s3944_s8 + $0xd0] sm:$0xff] }
0x12d4   :  { %v2061_v51 = vpack.c.bf16 %v2043_v0, %v2042_v52  ;;  %v2245_v0 = vld [vmem:[%s3945_s9] ss:$0 sm:$0xff] }
0x12d5   :  { %v1978_v46 = vsel %vm3993_vm3, %v1972_v58, 0.0 }
0x12d6   :  { %v1980_v28 = vmax.f32 %v1778_v24, %v1978_v46  ;;  %v2028_v24 = vld [vmem:[%s3944_s8 + $0x60] sm:$0xff]  ;;  %v2103_v46 = vld [vmem:[%s3946_s10 + $0x38] sm:$0xff] }
0x12d7   :  { %v2054_v20 = vpack.c.bf16 %v2029_v27, %v2028_v24  ;;  %v2101_v24 = vld [vmem:[%s3946_s10 + $0x28] sm:$0xff] }
0x12d8   :  { %1987 = vrot.lane.b32.xlu2 %v1980_v28, %s2515_s0  ;;  %v2107_v28 = vpack.c.bf16 %v2103_v46, %v2102_v1 }
0x12d9   :  { %2069 = vmatpush.bf16.msrb.mxu0 %v2054_v20  ;;  %v2096_v20 = vld [vmem:[%s3946_s10] sm:$0xff] }
0x12da   :  { %v1969_v14 = vpop.permute.xlu0 %1968  ;;  %2119 = vmatpush.bf16.msra.mxu2 %v2107_v28 }
0x12db   :  { %v1973_v22 = vmul.f32 %v1969_v14, %v1936_v47  ;;  %v2052_v47 = vpack.c.bf16 %v2025_v32, %v2024_v11 }
0x12dd   :  { %v1979_v49 = vsel %vm3995_vm13, %v1973_v22, 0.0  ;;  %2070 = vmatpush.bf16.msrb.mxu0 %v2053_v6  ;;  %v2137_v6 = vld [vmem:[%s3948_s12 + $0x38] sm:$0xff] }
0x12de   :  { %v1981_v3 = vmax.f32 %v1779_v29, %v1979_v49  ;;  %v2063_v29 = vpack.c.bf16 %v2047_v59, %v2046_v39  ;;  %v2100_v59 = vld [vmem:[%s3946_s10 + $0x20] sm:$0xff]  ;;  %v2141_v52 = vpack.c.bf16 %v2137_v6, %v2136_v33 }
0x12df   :  { %v2106_v27 = vpack.c.bf16 %v2101_v24, %v2100_v59 }
0x12e0   :  { %1996 = vrot.lane.b32.xlu1 %v1981_v3, %s2515_s0  ;;  %2081 = vmatpush.bf16.msrb.mxu1 %v2063_v29  ;;  %v2098_v29 = vld [vmem:[%s3946_s10 + $0x10] sm:$0xff] }
0x12e1   :  { %2071 = vmatpush.bf16.msrb.mxu0 %v2052_v47  ;;  %2120 = vmatpush.bf16.msra.mxu2 %v2106_v27  ;;  %v2105_v41 = vpack.c.bf16 %v2099_v63, %v2098_v29 }
0x12e2   :  { %2153 = vmatpush.bf16.msra.mxu3 %v2141_v52 }
0x12e4   :  { %2082 = vmatpush.bf16.msrb.mxu1 %v2062_v55  ;;  %v2097_v55 = vld [vmem:[%s3946_s10 + $0x8] sm:$0xff] }
0x12e5   :  { %2072 = vmatpush.bf16.msrb.mxu0 %v2051_v36  ;;  %2121 = vmatpush.bf16.msra.mxu2 %v2105_v41  ;;  %v2104_v30 = vpack.c.bf16 %v2097_v55, %v2096_v20  ;;  %v2132_v36 = vld [vmem:[%s3948_s12 + $0x10] sm:$0xff] }
0x12e6   :  { %v2139_v57 = vpack.c.bf16 %v2133_v18, %v2132_v36 }
0x12e8   :  { %2083 = vmatpush.bf16.msrb.mxu1 %v2061_v51 }
0x12e9   :  { %2073 = vmatpush.bf16.msrb.mxu0 %v2050_v40  ;;  %2122 = vmatpush.bf16.msra.mxu2 %v2104_v30  ;;  %v2246_v40 = vld [vmem:[%s3947_s11] ss:$0 sm:$0xff] }
0x12ec   :  { %2084 = vmatpush.bf16.msrb.mxu1 %v2060_v17  ;;  %v2134_v17 = vld [vmem:[%s3948_s12 + $0x20] sm:$0xff] }
0x12ed   :  { %2074 = vmatpush.bf16.msrb.mxu0 %v2049_v8  ;;  %v2140_v48 = vpack.c.bf16 %v2135_v37, %v2134_v17  ;;  %v2247_v8 = vld [vmem:[%s3949_s13] ss:$0 sm:$0xff] }
0x12ef   :  { %2154 = vmatpush.bf16.msra.mxu3 %v2140_v48 }
0x12f0   :  { %2085 = vmatpush.bf16.msrb.mxu1 %v2059_v54  ;;  %v2130_v54 = vld [vmem:[%s3948_s12] sm:$0xff] }
0x12f1   :  { %2075 = vmatpush.bf16.msrb.mxu0 %v2048_v43  ;;  %v2138_v42 = vpack.c.bf16 %v2131_v50, %v2130_v54 }
0x12f3   :  { %2155 = vmatpush.bf16.msra.mxu3 %v2139_v57 }
0x12f4   :  { %2086 = vmatpush.bf16.msrb.mxu1 %v2058_v4 }
0x12f7   :  { %2156 = vmatpush.bf16.msra.mxu3 %v2138_v42 }
0x12f8   :  { %2087 = vmatpush.bf16.msrb.mxu1 %v2057_v2 }
0x12fc   :  { %2088 = vmatpush.bf16.msrb.mxu1 %v2056_v61 }
0x132a   :  { %v1984_v35 = vpop.permute.xlu1 %1983 }
0x1332   :  { %v1988_v9 = vpop.permute.xlu2 %1987  ;;  %v1993_v13 = vpop.permute.xlu0 %1992 }
0x1333   :  { %v1990_v31 = vsel %vm84_vm0, %v1984_v35, %v1988_v9 }
0x1352   :  { %v1997_v21 = vpop.permute.xlu1 %1996 }
0x1353   :  { %v1999_v10 = vsel %vm84_vm0, %v1993_v13, %v1997_v21  ;;  %vm2162_vm0 = vcmask 23552  }
0x1354   :  { %v2002_v34 = vmul.f32 %v1999_v10, %v1990_v31  ;;  %v2000_v14 = vsub.f32 %v1990_v31, %v1999_v10 }
0x1356   :  { %v2238_v58 = vpack.i.bf16 %v2002_v34, %v1999_v10  ;;  %v2001_v23 = vand.u32 2147483647, %v2000_v14 }
0x1358   :  { %2239 = vrot.lane.b32.xlu2 %v2238_v58, %s2515_s0 }
0x13b2   :  { %v2240_v22 = vpop.permute.xlu2 %2239 }
0x13b3   :  { %v2242_v49 = vunpack.i.h.bf16 %v2240_v22  ;;  %v2241_v3 = vunpack.i.l.bf16 %v2240_v22 }
0x13b5   :  { %v2012_v60 = vsel %vm2011_vm12, %v1990_v31, %v2241_v3  ;;  %v2013_v56 = vsel %vm2011_vm12, %v2001_v23, %v2242_v49 }
0x13b6   :  { %v2014_v39 = vpack.c.bf16 %v2012_v60, %v2012_v60  ;;  %v2015_v26 = vpack.c.bf16 %v2013_v56, %v2013_v56 }
0x13b8   :  { %2076 = vmatmul.bf16.vlgmr.msrb.gmra.mxu0 %v2014_v39  ;;  %2089 = vmatmul.bf16.vlgmr.msrb.gmra.mxu1 %v2015_v26 }
0x1435   :  { %v2077_v11 = vpop.f32.mrf.mxu0  ;;  %v2090_v51 = vpop.f32.mrf.mxu1 }
0x1436   :  { %v2078_v32 = vadd.f32 %v2245_v0, %v2077_v11 }
0x1438   :  { %v2091_v38 = vadd.f32 %v2090_v51, %v2078_v32 }
0x143a   :  { %2504 = vtanh.f32 %v2091_v38 }
0x143d   :  { %v2079_v16 = vpop.f32.mrf.mxu0  ;;  %v2092_v47 = vpop.f32.mrf.mxu1 }
0x1440   :  { %v2505_v19 = vpop.eup %2504 }
0x1441   :  { %v2095_v12 = vpack.c.bf16 %v2505_v19, %v2505_v19 }
0x1443   :  { %2230 = vmatmul.msk.bf16.vlgmr.msra.gmra.mxu2 %vm2011_vm12, %v2095_v12 }
0x14c6   :  { %v2124_v45 = vpop.f32.mrf.mxu2 }
0x14c7   :  { %v2125_v5 = vadd.f32 %v2246_v40, %v2124_v45 }
0x14c9   :  { %2506 = vtanh.f32 %v2125_v5 }
0x14ce   :  { %v2126_v4 = vpop.f32.mrf.mxu2 }
0x14cf   :  { %v2507_v44 = vpop.eup %2506 }
0x14d0   :  { %v2129_v62 = vpack.c.bf16 %v2507_v44, %v2507_v44 }
0x14d2   :  { %2231 = vmatmul.msk.bf16.vlgmr.msra.gmra.mxu3 %vm2011_vm12, %v2129_v62 }
0x1555   :  { %v2158_v53 = vpop.f32.mrf.mxu3 }
0x1556   :  { %v2159_v15 = vadd.f32 %v2247_v8, %v2158_v53 }
0x1558   :  { %2163 = vst.msk [vmem:[%s3950_s14] sm:$0xff] %vm2162_vm0, %v2159_v15 }
0x155d   :  { %v2160_v2 = vpop.f32.mrf.mxu3 }

</bundles_post_ra>
